<compile_context>
chip_gen: v5e
topology: v5e:2x2
jax: 0.10.0
libtpu: 0.0.40
codegen_flags: <defaults>
</compile_context>

<pallas_src>
import jax
import jax.numpy as jnp
import numpy as np
from jax.experimental import pallas as pl

EPS = 1e-5  # nn.BatchNorm2d default eps

# Spatial sizes through the network (input 32x32).
H0 = 32
H1 = (H0 - 3) // 2 + 1      # 15  after MaxPool2d(3, 2)
H2 = (H1 - 3) // 2 + 1      # 7   after MaxPool2d(3, 2)
H3 = (H2 - 5) // 1 + 1      # 3   after AvgPool2d(5, 1)


# ----------------------------- fused kernel -----------------------------

def net_kernel(a0_ref,
               rc1_ref, wb1_ref, g1_ref, gt1_ref, ga1_ref, be1_ref,
               rp1_ref, sp1_ref,
               rc2_ref, wb2_ref, g2_ref, gt2_ref, ga2_ref, be2_ref,
               rp2_ref, sp2_ref,
               rc3_ref, wb3_ref, g3_ref, gt3_ref, ga3_ref, be3_ref,
               ra_ref, sa_ref,
               rf_ref, wf_ref, bf_ref,
               o_ref):
    f32 = jnp.float32

    def mm(a, b):
        return jnp.dot(a, b, preferred_element_type=f32)

    def conv_bn_relu(a, rc_ref, wb_ref, g_ref, gt_ref, ga_ref, be_ref):
        # --- 3x3 conv, padding=1, as 5 small MXU matmuls ---
        # dy = 1 (no row shift) uses `a` directly; dy = 0 / 2 use the 0/1
        # row-shift matrices (which also realize the zero row-padding).
        y = mm(a, wb_ref[1])
        y = y + mm(mm(rc_ref[0], a), wb_ref[0])
        y = y + mm(mm(rc_ref[2], a), wb_ref[2])          # (N*H, W*Cout)

        # --- train-mode BatchNorm (batch statistics, biased var) + ReLU ---
        cout = ga_ref.shape[1]
        count = y.shape[0] * (y.shape[1] // cout)        # N*H*W (static)
        colsum = jnp.sum(y, axis=0, keepdims=True)       # (1, W*Cout)
        colsq = jnp.sum(y * y, axis=0, keepdims=True)
        s1 = mm(colsum, g_ref[...])                      # (1, Cout)  MXU group-sum
        s2 = mm(colsq, g_ref[...])
        inv = 1.0 / count
        mean = s1 * inv
        var = s2 * inv - mean * mean                     # biased (PyTorch BN fwd)
        scale = ga_ref[...] * jax.lax.rsqrt(var + EPS)   # folded affine
        shift = be_ref[...] - mean * scale
        scale_f = mm(scale, gt_ref[...])                 # tile to (1, W*Cout)
        shift_f = mm(shift, gt_ref[...])
        return jnp.maximum(y * scale_f + shift_f, 0.0)   # single FMA + ReLU

    def max_pool_3x3_s2(z, rp_ref, sp_ref):
        # max over 9 taps; 0/1 selection matmuls move data exactly.
        out = None
        for py in range(3):
            rows = mm(rp_ref[py], z)                     # pick rows 2*ho+py
            for px in range(3):
                cand = mm(rows, sp_ref[px])              # pick cols 2*wo+px
                out = cand if out is None else jnp.maximum(out, cand)
        return out

    a0 = a0_ref[...]                                     # (N*32, 32*3)

    z1 = conv_bn_relu(a0, rc1_ref, wb1_ref, g1_ref, gt1_ref, ga1_ref, be1_ref)
    p1 = max_pool_3x3_s2(z1, rp1_ref, sp1_ref)           # (N*15, 15*8)
    z2 = conv_bn_relu(p1, rc2_ref, wb2_ref, g2_ref, gt2_ref, ga2_ref, be2_ref)
    p2 = max_pool_3x3_s2(z2, rp2_ref, sp2_ref)           # (N*7, 7*16)
    z3 = conv_bn_relu(p2, rc3_ref, wb3_ref, g3_ref, gt3_ref, ga3_ref, be3_ref)

    # AvgPool2d(5, 1) is linear -> a single left/right matmul pair.
    a3 = mm(mm(ra_ref[...], z3), sa_ref[...]) * (1.0 / 25.0)   # (N*3, 3*32)

    # fc1: NCHW-flatten order is folded into wf at init; per spatial row h
    # select the image rows and accumulate.
    logits = bf_ref[...]                                 # (1, 10) -> broadcast
    for h in range(H3):
        logits = logits + mm(mm(rf_ref[h], a3), wf_ref[h])

    # log_softmax(dim=1)
    m = jnp.max(logits, axis=-1, keepdims=True)
    s = logits - m
    lse = jnp.log(jnp.sum(jnp.exp(s), axis=-1, keepdims=True))
    o_ref[...] = s - lse


def net_forward(x_nchw, consts):
    """x_nchw: (N, 3, 32, 32) f32.  consts: tuple from pack_constants()."""
    N, C, H, W = x_nchw.shape
    # One tiny layout op on the 12 KB input (NCHW -> row-major (n*H+h, w*C+c)).
    a0 = jnp.transpose(x_nchw, (0, 2, 3, 1)).reshape(N * H, W * C)
    num_class = consts[-1].shape[-1]
    return pl.pallas_call(
        net_kernel,
        out_shape=jax.ShapeDtypeStruct((N, num_class), jnp.float32),
    )(a0, *consts)


# ------------------- host-side constant packing (init time) -------------------

def _pack_conv(w, gamma, beta, N, H, W):
    """w: (Cout, Cin, 3, 3) numpy -> [rc, wb, g, gt, gamma(1,C), beta(1,C)]."""
    cout, cin = w.shape[0], w.shape[1]
    NH = N * H
    # Row shift matrices (dy = 0,1,2); index 1 is identity (unused in-kernel).
    rc = np.zeros((3, NH, NH), np.float32)
    for dy in range(3):
        for n in range(N):
            for h in range(H):
                hin = h + dy - 1
                if 0 <= hin < H:
                    rc[dy, n * H + h, n * H + hin] = 1.0
    # Block column weights: wb[dy][win*Cin+ci, wo*Cout+co] = w[co,ci,dy,win-wo+1]
    wb = np.zeros((3, W * cin, W * cout), np.float32)
    for dy in range(3):
        for dx in range(3):
            tap = w[:, :, dy, dx].T.astype(np.float32)   # (Cin, Cout)
            for wo in range(W):
                win = wo + dx - 1
                if 0 <= win < W:
                    wb[dy, win * cin:(win + 1) * cin,
                       wo * cout:(wo + 1) * cout] = tap
    # Channel grouping matrices for BN stats / per-channel broadcast.
    g = np.zeros((W * cout, cout), np.float32)
    eye = np.eye(cout, dtype=np.float32)
    for wpos in range(W):
        g[wpos * cout:(wpos + 1) * cout, :] = eye
    gt = np.ascontiguousarray(g.T)
    return [rc, wb, g, gt,
            np.asarray(gamma, np.float32).reshape(1, cout),
            np.asarray(beta, np.float32).reshape(1, cout)]


def _pack_maxpool(N, H, W, C, k=3, s=2):
    Ho, Wo = (H - k) // s + 1, (W - k) // s + 1
    rp = np.zeros((k, N * Ho, N * H), np.float32)
    for py in range(k):
        for n in range(N):
            for ho in range(Ho):
                rp[py, n * Ho + ho, n * H + s * ho + py] = 1.0
    sp = np.zeros((k, W * C, Wo * C), np.float32)
    eye = np.eye(C, dtype=np.float32)
    for px in range(k):
        for wo in range(Wo):
            win = s * wo + px
            sp[px, win * C:(win + 1) * C, wo * C:(wo + 1) * C] = eye
    return [rp, sp]


def _pack_avgpool(N, H, W, C, k=5, s=1):
    Ho, Wo = (H - k) // s + 1, (W - k) // s + 1
    ra = np.zeros((N * Ho, N * H), np.float32)
    for n in range(N):
        for ho in range(Ho):
            for py in range(k):
                ra[n * Ho + ho, n * H + s * ho + py] = 1.0
    sa = np.zeros((W * C, Wo * C), np.float32)
    eye = np.eye(C, dtype=np.float32)
    for wo in range(Wo):
        for px in range(k):
            win = s * wo + px
            sa[win * C:(win + 1) * C, wo * C:(wo + 1) * C] = eye
    return [ra, sa]


def _pack_fc(fc_w, fc_b, N, Ho, Wo, C):
    """Fold the NCHW `x.view(-1, C*H*W)` ordering into the fc weight."""
    num_class = fc_w.shape[0]
    rf = np.zeros((Ho, N, N * Ho), np.float32)
    for h in range(Ho):
        for n in range(N):
            rf[h, n, n * Ho + h] = 1.0
    wf = np.zeros((Ho, Wo * C, num_class), np.float32)
    for h in range(Ho):
        for w_ in range(Wo):
            for c in range(C):
                wf[h, w_ * C + c, :] = fc_w[:, c * Ho * Wo + h * Wo + w_]
    bf = np.asarray(fc_b, np.float32).reshape(1, num_class)
    return [rf, wf, bf]


def pack_constants(p, N):
    c = []
    c += _pack_conv(p['w1'], *p['bn1'], N=N, H=H0, W=H0)
    c += _pack_maxpool(N=N, H=H0, W=H0, C=8)
    c += _pack_conv(p['w2'], *p['bn2'], N=N, H=H1, W=H1)
    c += _pack_maxpool(N=N, H=H1, W=H1, C=16)
    c += _pack_conv(p['w3'], *p['bn3'], N=N, H=H2, W=H2)
    c += _pack_avgpool(N=N, H=H2, W=H2, C=32)
    c += _pack_fc(p['fc_w'], p['fc_b'], N=N, Ho=H3, Wo=H3, C=32)
    return tuple(jnp.asarray(a) for a in c)


# ------------------------- parameter init (PyTorch-style) -------------------------

def init_params(key, num_of_class=10):
    ks = jax.random.split(key, 4)

    def conv_w(k, cout, cin):
        std = np.sqrt(2.0 / (3 * 3 * cout))              # normal(0, sqrt(2/n))
        w = np.asarray(jax.random.normal(k, (cout, cin, 3, 3), jnp.float32))
        return (w * std).astype(np.float32)

    def bn(c):
        return (np.ones((c,), np.float32), np.zeros((c,), np.float32))

    fan_in = 32 * H3 * H3
    lim = 1.0 / np.sqrt(fan_in)
    fc_w = np.asarray(jax.random.uniform(ks[3], (num_of_class, fan_in),
                                         jnp.float32, minval=-lim, maxval=lim),
                      dtype=np.float32)
    return {
        'w1': conv_w(ks[0], 8, 3), 'bn1': bn(8),
        'w2': conv_w(ks[1], 16, 8), 'bn2': bn(16),
        'w3': conv_w(ks[2], 32, 16), 'bn3': bn(32),
        'fc_w': fc_w,
        'fc_b': np.zeros((num_of_class,), np.float32),
    }


# ------------------------- pure-JAX reference (for self-check) -------------------------

def reference_forward(x, p):
    hi = jax.lax.Precision.HIGHEST

    def conv(x, w):
        return jax.lax.conv_general_dilated(
            x, jnp.asarray(w), (1, 1), ((1, 1), (1, 1)),
            dimension_numbers=('NCHW', 'OIHW', 'NCHW'), precision=hi)

    def bn(x, gb):
        gamma, beta = gb
        mean = jnp.mean(x, axis=(0, 2, 3), keepdims=True)
        var = jnp.mean(jnp.square(x - mean), axis=(0, 2, 3), keepdims=True)
        xhat = (x - mean) * jax.lax.rsqrt(var + EPS)
        return xhat * gamma.reshape(1, -1, 1, 1) + beta.reshape(1, -1, 1, 1)

    def maxpool(x, k, s):
        return jax.lax.reduce_window(x, -jnp.inf, jax.lax.max,
                                     (1, 1, k, k), (1, 1, s, s), 'VALID')

    def avgpool(x, k, s):
        acc = jax.lax.reduce_window(x, 0.0, jax.lax.add,
                                    (1, 1, k, k), (1, 1, s, s), 'VALID')
        return acc / float(k * k)

    x = maxpool(jax.nn.relu(bn(conv(x, p['w1']), p['bn1'])), 3, 2)
    x = maxpool(jax.nn.relu(bn(conv(x, p['w2']), p['bn2'])), 3, 2)
    x = avgpool(jax.nn.relu(bn(conv(x, p['w3']), p['bn3'])), 5, 1)
    x = x.reshape(x.shape[0], -1)                        # NCHW flatten == .view
    logits = x @ jnp.asarray(p['fc_w']).T + jnp.asarray(p['fc_b'])
    return jax.nn.log_softmax(logits, axis=-1)


# ------------------------- main -------------------------

if __name__ == "__main__":
    root = jax.random.PRNGKey(0)
    k_x, k_p = jax.random.split(root)

    N = 2
    x = jax.random.normal(k_x, (N, 3, 32, 32), jnp.float32)   # NCHW like PyTorch
    params = init_params(k_p, num_of_class=10)
    consts = pack_constants(params, N)

    fwd = jax.jit(net_forward)
    out = jax.block_until_ready(fwd(x, consts))

    assert out.shape == (N, 10)
    out_np = np.asarray(out)
    assert np.all(np.isfinite(out_np))
    # log_softmax rows must sum to 1 in prob space
    assert np.allclose(np.exp(out_np).sum(axis=-1), 1.0, atol=1e-4)

    # cross-check against a pure-JAX reference of the same module
    ref = np.asarray(reference_forward(x, params))
    np.testing.assert_allclose(out_np, ref, atol=2e-2, rtol=0.0)

    print("KERNEL_OK")
</pallas_src>

<mosaic_0001>
module attributes {stable_mosaic.version = 11 : i64} {
  func.func @net_kernel(%arg0: memref<64x96xf32, #tpu.memory_space<vmem>>, %arg1: memref<3x64x64xf32, #tpu.memory_space<vmem>>, %arg2: memref<3x96x256xf32, #tpu.memory_space<vmem>>, %arg3: memref<256x8xf32, #tpu.memory_space<vmem>>, %arg4: memref<8x256xf32, #tpu.memory_space<vmem>>, %arg5: memref<1x8xf32, #tpu.memory_space<vmem>>, %arg6: memref<1x8xf32, #tpu.memory_space<vmem>>, %arg7: memref<3x30x64xf32, #tpu.memory_space<vmem>>, %arg8: memref<3x256x120xf32, #tpu.memory_space<vmem>>, %arg9: memref<3x30x30xf32, #tpu.memory_space<vmem>>, %arg10: memref<3x120x240xf32, #tpu.memory_space<vmem>>, %arg11: memref<240x16xf32, #tpu.memory_space<vmem>>, %arg12: memref<16x240xf32, #tpu.memory_space<vmem>>, %arg13: memref<1x16xf32, #tpu.memory_space<vmem>>, %arg14: memref<1x16xf32, #tpu.memory_space<vmem>>, %arg15: memref<3x14x30xf32, #tpu.memory_space<vmem>>, %arg16: memref<3x240x112xf32, #tpu.memory_space<vmem>>, %arg17: memref<3x14x14xf32, #tpu.memory_space<vmem>>, %arg18: memref<3x112x224xf32, #tpu.memory_space<vmem>>, %arg19: memref<224x32xf32, #tpu.memory_space<vmem>>, %arg20: memref<32x224xf32, #tpu.memory_space<vmem>>, %arg21: memref<1x32xf32, #tpu.memory_space<vmem>>, %arg22: memref<1x32xf32, #tpu.memory_space<vmem>>, %arg23: memref<6x14xf32, #tpu.memory_space<vmem>>, %arg24: memref<224x96xf32, #tpu.memory_space<vmem>>, %arg25: memref<3x2x6xf32, #tpu.memory_space<vmem>>, %arg26: memref<3x96x10xf32, #tpu.memory_space<vmem>>, %arg27: memref<1x10xf32, #tpu.memory_space<vmem>>, %arg28: memref<2x10xf32, #tpu.memory_space<vmem>>) attributes {dimension_semantics = [], scalar_prefetch = 0 : i64, scratch_operands = 0 : i64, tpu.core_type = #tpu.core_type<tc>} {
    %c0 = arith.constant 0 : index
    %c0_0 = arith.constant 0 : index
    %0 = vector.load %arg0[%c0, %c0_0] : memref<64x96xf32, #tpu.memory_space<vmem>>, vector<64x96xf32>
    %c1 = arith.constant 1 : index
    %c0_1 = arith.constant 0 : index
    %c0_2 = arith.constant 0 : index
    %1 = vector.load %arg2[%c1, %c0_1, %c0_2] : memref<3x96x256xf32, #tpu.memory_space<vmem>>, vector<1x96x256xf32>
    %2 = vector.shape_cast %1 : vector<1x96x256xf32> to vector<96x256xf32>
    %cst = arith.constant dense<0.000000e+00> : vector<64x256xf32>
    %3 = tpu.matmul %0, %2, %cst {dimension_numbers = #tpu.dot_dimension_numbers<[1], [0], [0], [1], [0, 0, 1, 1], [], []>} : vector<64x96xf32>, vector<96x256xf32>, vector<64x256xf32> -> vector<64x256xf32>
    %c0_3 = arith.constant 0 : index
    %c0_4 = arith.constant 0 : index
    %c0_5 = arith.constant 0 : index
    %4 = vector.load %arg1[%c0_3, %c0_4, %c0_5] : memref<3x64x64xf32, #tpu.memory_space<vmem>>, vector<1x64x64xf32>
    %5 = vector.shape_cast %4 : vector<1x64x64xf32> to vector<64x64xf32>
    %cst_6 = arith.constant dense<0.000000e+00> : vector<64x96xf32>
    %6 = tpu.matmul %5, %0, %cst_6 {dimension_numbers = #tpu.dot_dimension_numbers<[1], [0], [0], [1], [0, 0, 1, 1], [], []>} : vector<64x64xf32>, vector<64x96xf32>, vector<64x96xf32> -> vector<64x96xf32>
    %c0_7 = arith.constant 0 : index
    %c0_8 = arith.constant 0 : index
    %c0_9 = arith.constant 0 : index
    %7 = vector.load %arg2[%c0_7, %c0_8, %c0_9] : memref<3x96x256xf32, #tpu.memory_space<vmem>>, vector<1x96x256xf32>
    %8 = vector.shape_cast %7 : vector<1x96x256xf32> to vector<96x256xf32>
    %cst_10 = arith.constant dense<0.000000e+00> : vector<64x256xf32>
    %9 = tpu.matmul %6, %8, %cst_10 {dimension_numbers = #tpu.dot_dimension_numbers<[1], [0], [0], [1], [0, 0, 1, 1], [], []>} : vector<64x96xf32>, vector<96x256xf32>, vector<64x256xf32> -> vector<64x256xf32>
    %10 = arith.addf %3, %9 : vector<64x256xf32>
    %c2 = arith.constant 2 : index
    %c0_11 = arith.constant 0 : index
    %c0_12 = arith.constant 0 : index
    %11 = vector.load %arg1[%c2, %c0_11, %c0_12] : memref<3x64x64xf32, #tpu.memory_space<vmem>>, vector<1x64x64xf32>
    %12 = vector.shape_cast %11 : vector<1x64x64xf32> to vector<64x64xf32>
    %cst_13 = arith.constant dense<0.000000e+00> : vector<64x96xf32>
    %13 = tpu.matmul %12, %0, %cst_13 {dimension_numbers = #tpu.dot_dimension_numbers<[1], [0], [0], [1], [0, 0, 1, 1], [], []>} : vector<64x64xf32>, vector<64x96xf32>, vector<64x96xf32> -> vector<64x96xf32>
    %c2_14 = arith.constant 2 : index
    %c0_15 = arith.constant 0 : index
    %c0_16 = arith.constant 0 : index
    %14 = vector.load %arg2[%c2_14, %c0_15, %c0_16] : memref<3x96x256xf32, #tpu.memory_space<vmem>>, vector<1x96x256xf32>
    %15 = vector.shape_cast %14 : vector<1x96x256xf32> to vector<96x256xf32>
    %cst_17 = arith.constant dense<0.000000e+00> : vector<64x256xf32>
    %16 = tpu.matmul %13, %15, %cst_17 {dimension_numbers = #tpu.dot_dimension_numbers<[1], [0], [0], [1], [0, 0, 1, 1], [], []>} : vector<64x96xf32>, vector<96x256xf32>, vector<64x256xf32> -> vector<64x256xf32>
    %17 = arith.addf %10, %16 : vector<64x256xf32>
    %cst_18 = arith.constant dense<0.000000e+00> : vector<256xf32>
    %18 = vector.multi_reduction <add>, %17, %cst_18 [0] : vector<64x256xf32> to vector<256xf32>
    %19 = vector.shape_cast %18 : vector<256xf32> to vector<1x256xf32>
    %20 = arith.mulf %17, %17 : vector<64x256xf32>
    %cst_19 = arith.constant dense<0.000000e+00> : vector<256xf32>
    %21 = vector.multi_reduction <add>, %20, %cst_19 [0] : vector<64x256xf32> to vector<256xf32>
    %22 = vector.shape_cast %21 : vector<256xf32> to vector<1x256xf32>
    %c0_20 = arith.constant 0 : index
    %c0_21 = arith.constant 0 : index
    %23 = vector.load %arg3[%c0_20, %c0_21] : memref<256x8xf32, #tpu.memory_space<vmem>>, vector<256x8xf32>
    %cst_22 = arith.constant dense<0.000000e+00> : vector<1x8xf32>
    %24 = tpu.matmul %19, %23, %cst_22 {dimension_numbers = #tpu.dot_dimension_numbers<[1], [0], [0], [1], [0, 0, 1, 1], [], []>} : vector<1x256xf32>, vector<256x8xf32>, vector<1x8xf32> -> vector<1x8xf32>
    %c0_23 = arith.constant 0 : index
    %c0_24 = arith.constant 0 : index
    %25 = vector.load %arg3[%c0_23, %c0_24] : memref<256x8xf32, #tpu.memory_space<vmem>>, vector<256x8xf32>
    %cst_25 = arith.constant dense<0.000000e+00> : vector<1x8xf32>
    %26 = tpu.matmul %22, %25, %cst_25 {dimension_numbers = #tpu.dot_dimension_numbers<[1], [0], [0], [1], [0, 0, 1, 1], [], []>} : vector<1x256xf32>, vector<256x8xf32>, vector<1x8xf32> -> vector<1x8xf32>
    %cst_26 = arith.constant 4.8828125E-4 : f32
    %27 = vector.broadcast %cst_26 : f32 to vector<1x8xf32>
    %28 = arith.mulf %24, %27 : vector<1x8xf32>
    %cst_27 = arith.constant 4.8828125E-4 : f32
    %29 = vector.broadcast %cst_27 : f32 to vector<1x8xf32>
    %30 = arith.mulf %26, %29 : vector<1x8xf32>
    %31 = arith.mulf %28, %28 : vector<1x8xf32>
    %32 = arith.subf %30, %31 : vector<1x8xf32>
    %c0_28 = arith.constant 0 : index
    %c0_29 = arith.constant 0 : index
    %33 = vector.load %arg5[%c0_28, %c0_29] : memref<1x8xf32, #tpu.memory_space<vmem>>, vector<1x8xf32>
    %cst_30 = arith.constant 9.99999974E-6 : f32
    %34 = vector.broadcast %cst_30 : f32 to vector<1x8xf32>
    %35 = arith.addf %32, %34 : vector<1x8xf32>
    %36 = math.rsqrt %35 : vector<1x8xf32>
    %37 = arith.mulf %33, %36 : vector<1x8xf32>
    %c0_31 = arith.constant 0 : index
    %c0_32 = arith.constant 0 : index
    %38 = vector.load %arg6[%c0_31, %c0_32] : memref<1x8xf32, #tpu.memory_space<vmem>>, vector<1x8xf32>
    %39 = arith.mulf %28, %37 : vector<1x8xf32>
    %40 = arith.subf %38, %39 : vector<1x8xf32>
    %c0_33 = arith.constant 0 : index
    %c0_34 = arith.constant 0 : index
    %41 = vector.load %arg4[%c0_33, %c0_34] : memref<8x256xf32, #tpu.memory_space<vmem>>, vector<8x256xf32>
    %cst_35 = arith.constant dense<0.000000e+00> : vector<1x256xf32>
    %42 = tpu.matmul %37, %41, %cst_35 {dimension_numbers = #tpu.dot_dimension_numbers<[1], [0], [0], [1], [0, 0, 1, 1], [], []>} : vector<1x8xf32>, vector<8x256xf32>, vector<1x256xf32> -> vector<1x256xf32>
    %c0_36 = arith.constant 0 : index
    %c0_37 = arith.constant 0 : index
    %43 = vector.load %arg4[%c0_36, %c0_37] : memref<8x256xf32, #tpu.memory_space<vmem>>, vector<8x256xf32>
    %cst_38 = arith.constant dense<0.000000e+00> : vector<1x256xf32>
    %44 = tpu.matmul %40, %43, %cst_38 {dimension_numbers = #tpu.dot_dimension_numbers<[1], [0], [0], [1], [0, 0, 1, 1], [], []>} : vector<1x8xf32>, vector<8x256xf32>, vector<1x256xf32> -> vector<1x256xf32>
    %45 = vector.broadcast %42 : vector<1x256xf32> to vector<64x256xf32>
    %46 = arith.mulf %17, %45 : vector<64x256xf32>
    %47 = vector.broadcast %44 : vector<1x256xf32> to vector<64x256xf32>
    %48 = arith.addf %46, %47 : vector<64x256xf32>
    %cst_39 = arith.constant 0.000000e+00 : f32
    %49 = vector.broadcast %cst_39 : f32 to vector<64x256xf32>
    %50 = arith.maximumf %48, %49 : vector<64x256xf32>
    %c0_40 = arith.constant 0 : index
    %c0_41 = arith.constant 0 : index
    %c0_42 = arith.constant 0 : index
    %51 = vector.load %arg7[%c0_40, %c0_41, %c0_42] : memref<3x30x64xf32, #tpu.memory_space<vmem>>, vector<1x30x64xf32>
    %52 = vector.shape_cast %51 : vector<1x30x64xf32> to vector<30x64xf32>
    %cst_43 = arith.constant dense<0.000000e+00> : vector<30x256xf32>
    %53 = tpu.matmul %52, %50, %cst_43 {dimension_numbers = #tpu.dot_dimension_numbers<[1], [0], [0], [1], [0, 0, 1, 1], [], []>} : vector<30x64xf32>, vector<64x256xf32>, vector<30x256xf32> -> vector<30x256xf32>
    %c0_44 = arith.constant 0 : index
    %c0_45 = arith.constant 0 : index
    %c0_46 = arith.constant 0 : index
    %54 = vector.load %arg8[%c0_44, %c0_45, %c0_46] : memref<3x256x120xf32, #tpu.memory_space<vmem>>, vector<1x256x120xf32>
    %55 = vector.shape_cast %54 : vector<1x256x120xf32> to vector<256x120xf32>
    %cst_47 = arith.constant dense<0.000000e+00> : vector<30x120xf32>
    %56 = tpu.matmul %53, %55, %cst_47 {dimension_numbers = #tpu.dot_dimension_numbers<[1], [0], [0], [1], [0, 0, 1, 1], [], []>} : vector<30x256xf32>, vector<256x120xf32>, vector<30x120xf32> -> vector<30x120xf32>
    %c1_48 = arith.constant 1 : index
    %c0_49 = arith.constant 0 : index
    %c0_50 = arith.constant 0 : index
    %57 = vector.load %arg8[%c1_48, %c0_49, %c0_50] : memref<3x256x120xf32, #tpu.memory_space<vmem>>, vector<1x256x120xf32>
    %58 = vector.shape_cast %57 : vector<1x256x120xf32> to vector<256x120xf32>
    %cst_51 = arith.constant dense<0.000000e+00> : vector<30x120xf32>
    %59 = tpu.matmul %53, %58, %cst_51 {dimension_numbers = #tpu.dot_dimension_numbers<[1], [0], [0], [1], [0, 0, 1, 1], [], []>} : vector<30x256xf32>, vector<256x120xf32>, vector<30x120xf32> -> vector<30x120xf32>
    %60 = arith.maximumf %56, %59 : vector<30x120xf32>
    %c2_52 = arith.constant 2 : index
    %c0_53 = arith.constant 0 : index
    %c0_54 = arith.constant 0 : index
    %61 = vector.load %arg8[%c2_52, %c0_53, %c0_54] : memref<3x256x120xf32, #tpu.memory_space<vmem>>, vector<1x256x120xf32>
    %62 = vector.shape_cast %61 : vector<1x256x120xf32> to vector<256x120xf32>
    %cst_55 = arith.constant dense<0.000000e+00> : vector<30x120xf32>
    %63 = tpu.matmul %53, %62, %cst_55 {dimension_numbers = #tpu.dot_dimension_numbers<[1], [0], [0], [1], [0, 0, 1, 1], [], []>} : vector<30x256xf32>, vector<256x120xf32>, vector<30x120xf32> -> vector<30x120xf32>
    %64 = arith.maximumf %60, %63 : vector<30x120xf32>
    %c1_56 = arith.constant 1 : index
    %c0_57 = arith.constant 0 : index
    %c0_58 = arith.constant 0 : index
    %65 = vector.load %arg7[%c1_56, %c0_57, %c0_58] : memref<3x30x64xf32, #tpu.memory_space<vmem>>, vector<1x30x64xf32>
    %66 = vector.shape_cast %65 : vector<1x30x64xf32> to vector<30x64xf32>
    %cst_59 = arith.constant dense<0.000000e+00> : vector<30x256xf32>
    %67 = tpu.matmul %66, %50, %cst_59 {dimension_numbers = #tpu.dot_dimension_numbers<[1], [0], [0], [1], [0, 0, 1, 1], [], []>} : vector<30x64xf32>, vector<64x256xf32>, vector<30x256xf32> -> vector<30x256xf32>
    %c0_60 = arith.constant 0 : index
    %c0_61 = arith.constant 0 : index
    %c0_62 = arith.constant 0 : index
    %68 = vector.load %arg8[%c0_60, %c0_61, %c0_62] : memref<3x256x120xf32, #tpu.memory_space<vmem>>, vector<1x256x120xf32>
    %69 = vector.shape_cast %68 : vector<1x256x120xf32> to vector<256x120xf32>
    %cst_63 = arith.constant dense<0.000000e+00> : vector<30x120xf32>
    %70 = tpu.matmul %67, %69, %cst_63 {dimension_numbers = #tpu.dot_dimension_numbers<[1], [0], [0], [1], [0, 0, 1, 1], [], []>} : vector<30x256xf32>, vector<256x120xf32>, vector<30x120xf32> -> vector<30x120xf32>
    %71 = arith.maximumf %64, %70 : vector<30x120xf32>
    %c1_64 = arith.constant 1 : index
    %c0_65 = arith.constant 0 : index
    %c0_66 = arith.constant 0 : index
    %72 = vector.load %arg8[%c1_64, %c0_65, %c0_66] : memref<3x256x120xf32, #tpu.memory_space<vmem>>, vector<1x256x120xf32>
    %73 = vector.shape_cast %72 : vector<1x256x120xf32> to vector<256x120xf32>
    %cst_67 = arith.constant dense<0.000000e+00> : vector<30x120xf32>
    %74 = tpu.matmul %67, %73, %cst_67 {dimension_numbers = #tpu.dot_dimension_numbers<[1], [0], [0], [1], [0, 0, 1, 1], [], []>} : vector<30x256xf32>, vector<256x120xf32>, vector<30x120xf32> -> vector<30x120xf32>
    %75 = arith.maximumf %71, %74 : vector<30x120xf32>
    %c2_68 = arith.constant 2 : index
    %c0_69 = arith.constant 0 : index
    %c0_70 = arith.constant 0 : index
    %76 = vector.load %arg8[%c2_68, %c0_69, %c0_70] : memref<3x256x120xf32, #tpu.memory_space<vmem>>, vector<1x256x120xf32>
    %77 = vector.shape_cast %76 : vector<1x256x120xf32> to vector<256x120xf32>
    %cst_71 = arith.constant dense<0.000000e+00> : vector<30x120xf32>
    %78 = tpu.matmul %67, %77, %cst_71 {dimension_numbers = #tpu.dot_dimension_numbers<[1], [0], [0], [1], [0, 0, 1, 1], [], []>} : vector<30x256xf32>, vector<256x120xf32>, vector<30x120xf32> -> vector<30x120xf32>
    %79 = arith.maximumf %75, %78 : vector<30x120xf32>
    %c2_72 = arith.constant 2 : index
    %c0_73 = arith.constant 0 : index
    %c0_74 = arith.constant 0 : index
    %80 = vector.load %arg7[%c2_72, %c0_73, %c0_74] : memref<3x30x64xf32, #tpu.memory_space<vmem>>, vector<1x30x64xf32>
    %81 = vector.shape_cast %80 : vector<1x30x64xf32> to vector<30x64xf32>
    %cst_75 = arith.constant dense<0.000000e+00> : vector<30x256xf32>
    %82 = tpu.matmul %81, %50, %cst_75 {dimension_numbers = #tpu.dot_dimension_numbers<[1], [0], [0], [1], [0, 0, 1, 1], [], []>} : vector<30x64xf32>, vector<64x256xf32>, vector<30x256xf32> -> vector<30x256xf32>
    %c0_76 = arith.constant 0 : index
    %c0_77 = arith.constant 0 : index
    %c0_78 = arith.constant 0 : index
    %83 = vector.load %arg8[%c0_76, %c0_77, %c0_78] : memref<3x256x120xf32, #tpu.memory_space<vmem>>, vector<1x256x120xf32>
    %84 = vector.shape_cast %83 : vector<1x256x120xf32> to vector<256x120xf32>
    %cst_79 = arith.constant dense<0.000000e+00> : vector<30x120xf32>
    %85 = tpu.matmul %82, %84, %cst_79 {dimension_numbers = #tpu.dot_dimension_numbers<[1], [0], [0], [1], [0, 0, 1, 1], [], []>} : vector<30x256xf32>, vector<256x120xf32>, vector<30x120xf32> -> vector<30x120xf32>
    %86 = arith.maximumf %79, %85 : vector<30x120xf32>
    %c1_80 = arith.constant 1 : index
    %c0_81 = arith.constant 0 : index
    %c0_82 = arith.constant 0 : index
    %87 = vector.load %arg8[%c1_80, %c0_81, %c0_82] : memref<3x256x120xf32, #tpu.memory_space<vmem>>, vector<1x256x120xf32>
    %88 = vector.shape_cast %87 : vector<1x256x120xf32> to vector<256x120xf32>
    %cst_83 = arith.constant dense<0.000000e+00> : vector<30x120xf32>
    %89 = tpu.matmul %82, %88, %cst_83 {dimension_numbers = #tpu.dot_dimension_numbers<[1], [0], [0], [1], [0, 0, 1, 1], [], []>} : vector<30x256xf32>, vector<256x120xf32>, vector<30x120xf32> -> vector<30x120xf32>
    %90 = arith.maximumf %86, %89 : vector<30x120xf32>
    %c2_84 = arith.constant 2 : index
    %c0_85 = arith.constant 0 : index
    %c0_86 = arith.constant 0 : index
    %91 = vector.load %arg8[%c2_84, %c0_85, %c0_86] : memref<3x256x120xf32, #tpu.memory_space<vmem>>, vector<1x256x120xf32>
    %92 = vector.shape_cast %91 : vector<1x256x120xf32> to vector<256x120xf32>
    %cst_87 = arith.constant dense<0.000000e+00> : vector<30x120xf32>
    %93 = tpu.matmul %82, %92, %cst_87 {dimension_numbers = #tpu.dot_dimension_numbers<[1], [0], [0], [1], [0, 0, 1, 1], [], []>} : vector<30x256xf32>, vector<256x120xf32>, vector<30x120xf32> -> vector<30x120xf32>
    %94 = arith.maximumf %90, %93 : vector<30x120xf32>
    %c1_88 = arith.constant 1 : index
    %c0_89 = arith.constant 0 : index
    %c0_90 = arith.constant 0 : index
    %95 = vector.load %arg10[%c1_88, %c0_89, %c0_90] : memref<3x120x240xf32, #tpu.memory_space<vmem>>, vector<1x120x240xf32>
    %96 = vector.shape_cast %95 : vector<1x120x240xf32> to vector<120x240xf32>
    %cst_91 = arith.constant dense<0.000000e+00> : vector<30x240xf32>
    %97 = tpu.matmul %94, %96, %cst_91 {dimension_numbers = #tpu.dot_dimension_numbers<[1], [0], [0], [1], [0, 0, 1, 1], [], []>} : vector<30x120xf32>, vector<120x240xf32>, vector<30x240xf32> -> vector<30x240xf32>
    %c0_92 = arith.constant 0 : index
    %c0_93 = arith.constant 0 : index
    %c0_94 = arith.constant 0 : index
    %98 = vector.load %arg9[%c0_92, %c0_93, %c0_94] : memref<3x30x30xf32, #tpu.memory_space<vmem>>, vector<1x30x30xf32>
    %99 = vector.shape_cast %98 : vector<1x30x30xf32> to vector<30x30xf32>
    %cst_95 = arith.constant dense<0.000000e+00> : vector<30x120xf32>
    %100 = tpu.matmul %99, %94, %cst_95 {dimension_numbers = #tpu.dot_dimension_numbers<[1], [0], [0], [1], [0, 0, 1, 1], [], []>} : vector<30x30xf32>, vector<30x120xf32>, vector<30x120xf32> -> vector<30x120xf32>
    %c0_96 = arith.constant 0 : index
    %c0_97 = arith.constant 0 : index
    %c0_98 = arith.constant 0 : index
    %101 = vector.load %arg10[%c0_96, %c0_97, %c0_98] : memref<3x120x240xf32, #tpu.memory_space<vmem>>, vector<1x120x240xf32>
    %102 = vector.shape_cast %101 : vector<1x120x240xf32> to vector<120x240xf32>
    %cst_99 = arith.constant dense<0.000000e+00> : vector<30x240xf32>
    %103 = tpu.matmul %100, %102, %cst_99 {dimension_numbers = #tpu.dot_dimension_numbers<[1], [0], [0], [1], [0, 0, 1, 1], [], []>} : vector<30x120xf32>, vector<120x240xf32>, vector<30x240xf32> -> vector<30x240xf32>
    %104 = arith.addf %97, %103 : vector<30x240xf32>
    %c2_100 = arith.constant 2 : index
    %c0_101 = arith.constant 0 : index
    %c0_102 = arith.constant 0 : index
    %105 = vector.load %arg9[%c2_100, %c0_101, %c0_102] : memref<3x30x30xf32, #tpu.memory_space<vmem>>, vector<1x30x30xf32>
    %106 = vector.shape_cast %105 : vector<1x30x30xf32> to vector<30x30xf32>
    %cst_103 = arith.constant dense<0.000000e+00> : vector<30x120xf32>
    %107 = tpu.matmul %106, %94, %cst_103 {dimension_numbers = #tpu.dot_dimension_numbers<[1], [0], [0], [1], [0, 0, 1, 1], [], []>} : vector<30x30xf32>, vector<30x120xf32>, vector<30x120xf32> -> vector<30x120xf32>
    %c2_104 = arith.constant 2 : index
    %c0_105 = arith.constant 0 : index
    %c0_106 = arith.constant 0 : index
    %108 = vector.load %arg10[%c2_104, %c0_105, %c0_106] : memref<3x120x240xf32, #tpu.memory_space<vmem>>, vector<1x120x240xf32>
    %109 = vector.shape_cast %108 : vector<1x120x240xf32> to vector<120x240xf32>
    %cst_107 = arith.constant dense<0.000000e+00> : vector<30x240xf32>
    %110 = tpu.matmul %107, %109, %cst_107 {dimension_numbers = #tpu.dot_dimension_numbers<[1], [0], [0], [1], [0, 0, 1, 1], [], []>} : vector<30x120xf32>, vector<120x240xf32>, vector<30x240xf32> -> vector<30x240xf32>
    %111 = arith.addf %104, %110 : vector<30x240xf32>
    %cst_108 = arith.constant dense<0.000000e+00> : vector<240xf32>
    %112 = vector.multi_reduction <add>, %111, %cst_108 [0] : vector<30x240xf32> to vector<240xf32>
    %113 = vector.shape_cast %112 : vector<240xf32> to vector<1x240xf32>
    %114 = arith.mulf %111, %111 : vector<30x240xf32>
    %cst_109 = arith.constant dense<0.000000e+00> : vector<240xf32>
    %115 = vector.multi_reduction <add>, %114, %cst_109 [0] : vector<30x240xf32> to vector<240xf32>
    %116 = vector.shape_cast %115 : vector<240xf32> to vector<1x240xf32>
    %c0_110 = arith.constant 0 : index
    %c0_111 = arith.constant 0 : index
    %117 = vector.load %arg11[%c0_110, %c0_111] : memref<240x16xf32, #tpu.memory_space<vmem>>, vector<240x16xf32>
    %cst_112 = arith.constant dense<0.000000e+00> : vector<1x16xf32>
    %118 = tpu.matmul %113, %117, %cst_112 {dimension_numbers = #tpu.dot_dimension_numbers<[1], [0], [0], [1], [0, 0, 1, 1], [], []>} : vector<1x240xf32>, vector<240x16xf32>, vector<1x16xf32> -> vector<1x16xf32>
    %c0_113 = arith.constant 0 : index
    %c0_114 = arith.constant 0 : index
    %119 = vector.load %arg11[%c0_113, %c0_114] : memref<240x16xf32, #tpu.memory_space<vmem>>, vector<240x16xf32>
    %cst_115 = arith.constant dense<0.000000e+00> : vector<1x16xf32>
    %120 = tpu.matmul %116, %119, %cst_115 {dimension_numbers = #tpu.dot_dimension_numbers<[1], [0], [0], [1], [0, 0, 1, 1], [], []>} : vector<1x240xf32>, vector<240x16xf32>, vector<1x16xf32> -> vector<1x16xf32>
    %cst_116 = arith.constant 0.00222222228 : f32
    %121 = vector.broadcast %cst_116 : f32 to vector<1x16xf32>
    %122 = arith.mulf %118, %121 : vector<1x16xf32>
    %cst_117 = arith.constant 0.00222222228 : f32
    %123 = vector.broadcast %cst_117 : f32 to vector<1x16xf32>
    %124 = arith.mulf %120, %123 : vector<1x16xf32>
    %125 = arith.mulf %122, %122 : vector<1x16xf32>
    %126 = arith.subf %124, %125 : vector<1x16xf32>
    %c0_118 = arith.constant 0 : index
    %c0_119 = arith.constant 0 : index
    %127 = vector.load %arg13[%c0_118, %c0_119] : memref<1x16xf32, #tpu.memory_space<vmem>>, vector<1x16xf32>
    %cst_120 = arith.constant 9.99999974E-6 : f32
    %128 = vector.broadcast %cst_120 : f32 to vector<1x16xf32>
    %129 = arith.addf %126, %128 : vector<1x16xf32>
    %130 = math.rsqrt %129 : vector<1x16xf32>
    %131 = arith.mulf %127, %130 : vector<1x16xf32>
    %c0_121 = arith.constant 0 : index
    %c0_122 = arith.constant 0 : index
    %132 = vector.load %arg14[%c0_121, %c0_122] : memref<1x16xf32, #tpu.memory_space<vmem>>, vector<1x16xf32>
    %133 = arith.mulf %122, %131 : vector<1x16xf32>
    %134 = arith.subf %132, %133 : vector<1x16xf32>
    %c0_123 = arith.constant 0 : index
    %c0_124 = arith.constant 0 : index
    %135 = vector.load %arg12[%c0_123, %c0_124] : memref<16x240xf32, #tpu.memory_space<vmem>>, vector<16x240xf32>
    %cst_125 = arith.constant dense<0.000000e+00> : vector<1x240xf32>
    %136 = tpu.matmul %131, %135, %cst_125 {dimension_numbers = #tpu.dot_dimension_numbers<[1], [0], [0], [1], [0, 0, 1, 1], [], []>} : vector<1x16xf32>, vector<16x240xf32>, vector<1x240xf32> -> vector<1x240xf32>
    %c0_126 = arith.constant 0 : index
    %c0_127 = arith.constant 0 : index
    %137 = vector.load %arg12[%c0_126, %c0_127] : memref<16x240xf32, #tpu.memory_space<vmem>>, vector<16x240xf32>
    %cst_128 = arith.constant dense<0.000000e+00> : vector<1x240xf32>
    %138 = tpu.matmul %134, %137, %cst_128 {dimension_numbers = #tpu.dot_dimension_numbers<[1], [0], [0], [1], [0, 0, 1, 1], [], []>} : vector<1x16xf32>, vector<16x240xf32>, vector<1x240xf32> -> vector<1x240xf32>
    %139 = vector.broadcast %136 : vector<1x240xf32> to vector<30x240xf32>
    %140 = arith.mulf %111, %139 : vector<30x240xf32>
    %141 = vector.broadcast %138 : vector<1x240xf32> to vector<30x240xf32>
    %142 = arith.addf %140, %141 : vector<30x240xf32>
    %cst_129 = arith.constant 0.000000e+00 : f32
    %143 = vector.broadcast %cst_129 : f32 to vector<30x240xf32>
    %144 = arith.maximumf %142, %143 : vector<30x240xf32>
    %c0_130 = arith.constant 0 : index
    %c0_131 = arith.constant 0 : index
    %c0_132 = arith.constant 0 : index
    %145 = vector.load %arg15[%c0_130, %c0_131, %c0_132] : memref<3x14x30xf32, #tpu.memory_space<vmem>>, vector<1x14x30xf32>
    %146 = vector.shape_cast %145 : vector<1x14x30xf32> to vector<14x30xf32>
    %cst_133 = arith.constant dense<0.000000e+00> : vector<14x240xf32>
    %147 = tpu.matmul %146, %144, %cst_133 {dimension_numbers = #tpu.dot_dimension_numbers<[1], [0], [0], [1], [0, 0, 1, 1], [], []>} : vector<14x30xf32>, vector<30x240xf32>, vector<14x240xf32> -> vector<14x240xf32>
    %c0_134 = arith.constant 0 : index
    %c0_135 = arith.constant 0 : index
    %c0_136 = arith.constant 0 : index
    %148 = vector.load %arg16[%c0_134, %c0_135, %c0_136] : memref<3x240x112xf32, #tpu.memory_space<vmem>>, vector<1x240x112xf32>
    %149 = vector.shape_cast %148 : vector<1x240x112xf32> to vector<240x112xf32>
    %cst_137 = arith.constant dense<0.000000e+00> : vector<14x112xf32>
    %150 = tpu.matmul %147, %149, %cst_137 {dimension_numbers = #tpu.dot_dimension_numbers<[1], [0], [0], [1], [0, 0, 1, 1], [], []>} : vector<14x240xf32>, vector<240x112xf32>, vector<14x112xf32> -> vector<14x112xf32>
    %c1_138 = arith.constant 1 : index
    %c0_139 = arith.constant 0 : index
    %c0_140 = arith.constant 0 : index
    %151 = vector.load %arg16[%c1_138, %c0_139, %c0_140] : memref<3x240x112xf32, #tpu.memory_space<vmem>>, vector<1x240x112xf32>
    %152 = vector.shape_cast %151 : vector<1x240x112xf32> to vector<240x112xf32>
    %cst_141 = arith.constant dense<0.000000e+00> : vector<14x112xf32>
    %153 = tpu.matmul %147, %152, %cst_141 {dimension_numbers = #tpu.dot_dimension_numbers<[1], [0], [0], [1], [0, 0, 1, 1], [], []>} : vector<14x240xf32>, vector<240x112xf32>, vector<14x112xf32> -> vector<14x112xf32>
    %154 = arith.maximumf %150, %153 : vector<14x112xf32>
    %c2_142 = arith.constant 2 : index
    %c0_143 = arith.constant 0 : index
    %c0_144 = arith.constant 0 : index
    %155 = vector.load %arg16[%c2_142, %c0_143, %c0_144] : memref<3x240x112xf32, #tpu.memory_space<vmem>>, vector<1x240x112xf32>
    %156 = vector.shape_cast %155 : vector<1x240x112xf32> to vector<240x112xf32>
    %cst_145 = arith.constant dense<0.000000e+00> : vector<14x112xf32>
    %157 = tpu.matmul %147, %156, %cst_145 {dimension_numbers = #tpu.dot_dimension_numbers<[1], [0], [0], [1], [0, 0, 1, 1], [], []>} : vector<14x240xf32>, vector<240x112xf32>, vector<14x112xf32> -> vector<14x112xf32>
    %158 = arith.maximumf %154, %157 : vector<14x112xf32>
    %c1_146 = arith.constant 1 : index
    %c0_147 = arith.constant 0 : index
    %c0_148 = arith.constant 0 : index
    %159 = vector.load %arg15[%c1_146, %c0_147, %c0_148] : memref<3x14x30xf32, #tpu.memory_space<vmem>>, vector<1x14x30xf32>
    %160 = vector.shape_cast %159 : vector<1x14x30xf32> to vector<14x30xf32>
    %cst_149 = arith.constant dense<0.000000e+00> : vector<14x240xf32>
    %161 = tpu.matmul %160, %144, %cst_149 {dimension_numbers = #tpu.dot_dimension_numbers<[1], [0], [0], [1], [0, 0, 1, 1], [], []>} : vector<14x30xf32>, vector<30x240xf32>, vector<14x240xf32> -> vector<14x240xf32>
    %c0_150 = arith.constant 0 : index
    %c0_151 = arith.constant 0 : index
    %c0_152 = arith.constant 0 : index
    %162 = vector.load %arg16[%c0_150, %c0_151, %c0_152] : memref<3x240x112xf32, #tpu.memory_space<vmem>>, vector<1x240x112xf32>
    %163 = vector.shape_cast %162 : vector<1x240x112xf32> to vector<240x112xf32>
    %cst_153 = arith.constant dense<0.000000e+00> : vector<14x112xf32>
    %164 = tpu.matmul %161, %163, %cst_153 {dimension_numbers = #tpu.dot_dimension_numbers<[1], [0], [0], [1], [0, 0, 1, 1], [], []>} : vector<14x240xf32>, vector<240x112xf32>, vector<14x112xf32> -> vector<14x112xf32>
    %165 = arith.maximumf %158, %164 : vector<14x112xf32>
    %c1_154 = arith.constant 1 : index
    %c0_155 = arith.constant 0 : index
    %c0_156 = arith.constant 0 : index
    %166 = vector.load %arg16[%c1_154, %c0_155, %c0_156] : memref<3x240x112xf32, #tpu.memory_space<vmem>>, vector<1x240x112xf32>
    %167 = vector.shape_cast %166 : vector<1x240x112xf32> to vector<240x112xf32>
    %cst_157 = arith.constant dense<0.000000e+00> : vector<14x112xf32>
    %168 = tpu.matmul %161, %167, %cst_157 {dimension_numbers = #tpu.dot_dimension_numbers<[1], [0], [0], [1], [0, 0, 1, 1], [], []>} : vector<14x240xf32>, vector<240x112xf32>, vector<14x112xf32> -> vector<14x112xf32>
    %169 = arith.maximumf %165, %168 : vector<14x112xf32>
    %c2_158 = arith.constant 2 : index
    %c0_159 = arith.constant 0 : index
    %c0_160 = arith.constant 0 : index
    %170 = vector.load %arg16[%c2_158, %c0_159, %c0_160] : memref<3x240x112xf32, #tpu.memory_space<vmem>>, vector<1x240x112xf32>
    %171 = vector.shape_cast %170 : vector<1x240x112xf32> to vector<240x112xf32>
    %cst_161 = arith.constant dense<0.000000e+00> : vector<14x112xf32>
    %172 = tpu.matmul %161, %171, %cst_161 {dimension_numbers = #tpu.dot_dimension_numbers<[1], [0], [0], [1], [0, 0, 1, 1], [], []>} : vector<14x240xf32>, vector<240x112xf32>, vector<14x112xf32> -> vector<14x112xf32>
    %173 = arith.maximumf %169, %172 : vector<14x112xf32>
    %c2_162 = arith.constant 2 : index
    %c0_163 = arith.constant 0 : index
    %c0_164 = arith.constant 0 : index
    %174 = vector.load %arg15[%c2_162, %c0_163, %c0_164] : memref<3x14x30xf32, #tpu.memory_space<vmem>>, vector<1x14x30xf32>
    %175 = vector.shape_cast %174 : vector<1x14x30xf32> to vector<14x30xf32>
    %cst_165 = arith.constant dense<0.000000e+00> : vector<14x240xf32>
    %176 = tpu.matmul %175, %144, %cst_165 {dimension_numbers = #tpu.dot_dimension_numbers<[1], [0], [0], [1], [0, 0, 1, 1], [], []>} : vector<14x30xf32>, vector<30x240xf32>, vector<14x240xf32> -> vector<14x240xf32>
    %c0_166 = arith.constant 0 : index
    %c0_167 = arith.constant 0 : index
    %c0_168 = arith.constant 0 : index
    %177 = vector.load %arg16[%c0_166, %c0_167, %c0_168] : memref<3x240x112xf32, #tpu.memory_space<vmem>>, vector<1x240x112xf32>
    %178 = vector.shape_cast %177 : vector<1x240x112xf32> to vector<240x112xf32>
    %cst_169 = arith.constant dense<0.000000e+00> : vector<14x112xf32>
    %179 = tpu.matmul %176, %178, %cst_169 {dimension_numbers = #tpu.dot_dimension_numbers<[1], [0], [0], [1], [0, 0, 1, 1], [], []>} : vector<14x240xf32>, vector<240x112xf32>, vector<14x112xf32> -> vector<14x112xf32>
    %180 = arith.maximumf %173, %179 : vector<14x112xf32>
    %c1_170 = arith.constant 1 : index
    %c0_171 = arith.constant 0 : index
    %c0_172 = arith.constant 0 : index
    %181 = vector.load %arg16[%c1_170, %c0_171, %c0_172] : memref<3x240x112xf32, #tpu.memory_space<vmem>>, vector<1x240x112xf32>
    %182 = vector.shape_cast %181 : vector<1x240x112xf32> to vector<240x112xf32>
    %cst_173 = arith.constant dense<0.000000e+00> : vector<14x112xf32>
    %183 = tpu.matmul %176, %182, %cst_173 {dimension_numbers = #tpu.dot_dimension_numbers<[1], [0], [0], [1], [0, 0, 1, 1], [], []>} : vector<14x240xf32>, vector<240x112xf32>, vector<14x112xf32> -> vector<14x112xf32>
    %184 = arith.maximumf %180, %183 : vector<14x112xf32>
    %c2_174 = arith.constant 2 : index
    %c0_175 = arith.constant 0 : index
    %c0_176 = arith.constant 0 : index
    %185 = vector.load %arg16[%c2_174, %c0_175, %c0_176] : memref<3x240x112xf32, #tpu.memory_space<vmem>>, vector<1x240x112xf32>
    %186 = vector.shape_cast %185 : vector<1x240x112xf32> to vector<240x112xf32>
    %cst_177 = arith.constant dense<0.000000e+00> : vector<14x112xf32>
    %187 = tpu.matmul %176, %186, %cst_177 {dimension_numbers = #tpu.dot_dimension_numbers<[1], [0], [0], [1], [0, 0, 1, 1], [], []>} : vector<14x240xf32>, vector<240x112xf32>, vector<14x112xf32> -> vector<14x112xf32>
    %188 = arith.maximumf %184, %187 : vector<14x112xf32>
    %c1_178 = arith.constant 1 : index
    %c0_179 = arith.constant 0 : index
    %c0_180 = arith.constant 0 : index
    %189 = vector.load %arg18[%c1_178, %c0_179, %c0_180] : memref<3x112x224xf32, #tpu.memory_space<vmem>>, vector<1x112x224xf32>
    %190 = vector.shape_cast %189 : vector<1x112x224xf32> to vector<112x224xf32>
    %cst_181 = arith.constant dense<0.000000e+00> : vector<14x224xf32>
    %191 = tpu.matmul %188, %190, %cst_181 {dimension_numbers = #tpu.dot_dimension_numbers<[1], [0], [0], [1], [0, 0, 1, 1], [], []>} : vector<14x112xf32>, vector<112x224xf32>, vector<14x224xf32> -> vector<14x224xf32>
    %c0_182 = arith.constant 0 : index
    %c0_183 = arith.constant 0 : index
    %c0_184 = arith.constant 0 : index
    %192 = vector.load %arg17[%c0_182, %c0_183, %c0_184] : memref<3x14x14xf32, #tpu.memory_space<vmem>>, vector<1x14x14xf32>
    %193 = vector.shape_cast %192 : vector<1x14x14xf32> to vector<14x14xf32>
    %cst_185 = arith.constant dense<0.000000e+00> : vector<14x112xf32>
    %194 = tpu.matmul %193, %188, %cst_185 {dimension_numbers = #tpu.dot_dimension_numbers<[1], [0], [0], [1], [0, 0, 1, 1], [], []>} : vector<14x14xf32>, vector<14x112xf32>, vector<14x112xf32> -> vector<14x112xf32>
    %c0_186 = arith.constant 0 : index
    %c0_187 = arith.constant 0 : index
    %c0_188 = arith.constant 0 : index
    %195 = vector.load %arg18[%c0_186, %c0_187, %c0_188] : memref<3x112x224xf32, #tpu.memory_space<vmem>>, vector<1x112x224xf32>
    %196 = vector.shape_cast %195 : vector<1x112x224xf32> to vector<112x224xf32>
    %cst_189 = arith.constant dense<0.000000e+00> : vector<14x224xf32>
    %197 = tpu.matmul %194, %196, %cst_189 {dimension_numbers = #tpu.dot_dimension_numbers<[1], [0], [0], [1], [0, 0, 1, 1], [], []>} : vector<14x112xf32>, vector<112x224xf32>, vector<14x224xf32> -> vector<14x224xf32>
    %198 = arith.addf %191, %197 : vector<14x224xf32>
    %c2_190 = arith.constant 2 : index
    %c0_191 = arith.constant 0 : index
    %c0_192 = arith.constant 0 : index
    %199 = vector.load %arg17[%c2_190, %c0_191, %c0_192] : memref<3x14x14xf32, #tpu.memory_space<vmem>>, vector<1x14x14xf32>
    %200 = vector.shape_cast %199 : vector<1x14x14xf32> to vector<14x14xf32>
    %cst_193 = arith.constant dense<0.000000e+00> : vector<14x112xf32>
    %201 = tpu.matmul %200, %188, %cst_193 {dimension_numbers = #tpu.dot_dimension_numbers<[1], [0], [0], [1], [0, 0, 1, 1], [], []>} : vector<14x14xf32>, vector<14x112xf32>, vector<14x112xf32> -> vector<14x112xf32>
    %c2_194 = arith.constant 2 : index
    %c0_195 = arith.constant 0 : index
    %c0_196 = arith.constant 0 : index
    %202 = vector.load %arg18[%c2_194, %c0_195, %c0_196] : memref<3x112x224xf32, #tpu.memory_space<vmem>>, vector<1x112x224xf32>
    %203 = vector.shape_cast %202 : vector<1x112x224xf32> to vector<112x224xf32>
    %cst_197 = arith.constant dense<0.000000e+00> : vector<14x224xf32>
    %204 = tpu.matmul %201, %203, %cst_197 {dimension_numbers = #tpu.dot_dimension_numbers<[1], [0], [0], [1], [0, 0, 1, 1], [], []>} : vector<14x112xf32>, vector<112x224xf32>, vector<14x224xf32> -> vector<14x224xf32>
    %205 = arith.addf %198, %204 : vector<14x224xf32>
    %cst_198 = arith.constant dense<0.000000e+00> : vector<224xf32>
    %206 = vector.multi_reduction <add>, %205, %cst_198 [0] : vector<14x224xf32> to vector<224xf32>
    %207 = vector.shape_cast %206 : vector<224xf32> to vector<1x224xf32>
    %208 = arith.mulf %205, %205 : vector<14x224xf32>
    %cst_199 = arith.constant dense<0.000000e+00> : vector<224xf32>
    %209 = vector.multi_reduction <add>, %208, %cst_199 [0] : vector<14x224xf32> to vector<224xf32>
    %210 = vector.shape_cast %209 : vector<224xf32> to vector<1x224xf32>
    %c0_200 = arith.constant 0 : index
    %c0_201 = arith.constant 0 : index
    %211 = vector.load %arg19[%c0_200, %c0_201] : memref<224x32xf32, #tpu.memory_space<vmem>>, vector<224x32xf32>
    %cst_202 = arith.constant dense<0.000000e+00> : vector<1x32xf32>
    %212 = tpu.matmul %207, %211, %cst_202 {dimension_numbers = #tpu.dot_dimension_numbers<[1], [0], [0], [1], [0, 0, 1, 1], [], []>} : vector<1x224xf32>, vector<224x32xf32>, vector<1x32xf32> -> vector<1x32xf32>
    %c0_203 = arith.constant 0 : index
    %c0_204 = arith.constant 0 : index
    %213 = vector.load %arg19[%c0_203, %c0_204] : memref<224x32xf32, #tpu.memory_space<vmem>>, vector<224x32xf32>
    %cst_205 = arith.constant dense<0.000000e+00> : vector<1x32xf32>
    %214 = tpu.matmul %210, %213, %cst_205 {dimension_numbers = #tpu.dot_dimension_numbers<[1], [0], [0], [1], [0, 0, 1, 1], [], []>} : vector<1x224xf32>, vector<224x32xf32>, vector<1x32xf32> -> vector<1x32xf32>
    %cst_206 = arith.constant 0.0102040814 : f32
    %215 = vector.broadcast %cst_206 : f32 to vector<1x32xf32>
    %216 = arith.mulf %212, %215 : vector<1x32xf32>
    %cst_207 = arith.constant 0.0102040814 : f32
    %217 = vector.broadcast %cst_207 : f32 to vector<1x32xf32>
    %218 = arith.mulf %214, %217 : vector<1x32xf32>
    %219 = arith.mulf %216, %216 : vector<1x32xf32>
    %220 = arith.subf %218, %219 : vector<1x32xf32>
    %c0_208 = arith.constant 0 : index
    %c0_209 = arith.constant 0 : index
    %221 = vector.load %arg21[%c0_208, %c0_209] : memref<1x32xf32, #tpu.memory_space<vmem>>, vector<1x32xf32>
    %cst_210 = arith.constant 9.99999974E-6 : f32
    %222 = vector.broadcast %cst_210 : f32 to vector<1x32xf32>
    %223 = arith.addf %220, %222 : vector<1x32xf32>
    %224 = math.rsqrt %223 : vector<1x32xf32>
    %225 = arith.mulf %221, %224 : vector<1x32xf32>
    %c0_211 = arith.constant 0 : index
    %c0_212 = arith.constant 0 : index
    %226 = vector.load %arg22[%c0_211, %c0_212] : memref<1x32xf32, #tpu.memory_space<vmem>>, vector<1x32xf32>
    %227 = arith.mulf %216, %225 : vector<1x32xf32>
    %228 = arith.subf %226, %227 : vector<1x32xf32>
    %c0_213 = arith.constant 0 : index
    %c0_214 = arith.constant 0 : index
    %229 = vector.load %arg20[%c0_213, %c0_214] : memref<32x224xf32, #tpu.memory_space<vmem>>, vector<32x224xf32>
    %cst_215 = arith.constant dense<0.000000e+00> : vector<1x224xf32>
    %230 = tpu.matmul %225, %229, %cst_215 {dimension_numbers = #tpu.dot_dimension_numbers<[1], [0], [0], [1], [0, 0, 1, 1], [], []>} : vector<1x32xf32>, vector<32x224xf32>, vector<1x224xf32> -> vector<1x224xf32>
    %c0_216 = arith.constant 0 : index
    %c0_217 = arith.constant 0 : index
    %231 = vector.load %arg20[%c0_216, %c0_217] : memref<32x224xf32, #tpu.memory_space<vmem>>, vector<32x224xf32>
    %cst_218 = arith.constant dense<0.000000e+00> : vector<1x224xf32>
    %232 = tpu.matmul %228, %231, %cst_218 {dimension_numbers = #tpu.dot_dimension_numbers<[1], [0], [0], [1], [0, 0, 1, 1], [], []>} : vector<1x32xf32>, vector<32x224xf32>, vector<1x224xf32> -> vector<1x224xf32>
    %233 = vector.broadcast %230 : vector<1x224xf32> to vector<14x224xf32>
    %234 = arith.mulf %205, %233 : vector<14x224xf32>
    %235 = vector.broadcast %232 : vector<1x224xf32> to vector<14x224xf32>
    %236 = arith.addf %234, %235 : vector<14x224xf32>
    %cst_219 = arith.constant 0.000000e+00 : f32
    %237 = vector.broadcast %cst_219 : f32 to vector<14x224xf32>
    %238 = arith.maximumf %236, %237 : vector<14x224xf32>
    %c0_220 = arith.constant 0 : index
    %c0_221 = arith.constant 0 : index
    %239 = vector.load %arg23[%c0_220, %c0_221] : memref<6x14xf32, #tpu.memory_space<vmem>>, vector<6x14xf32>
    %cst_222 = arith.constant dense<0.000000e+00> : vector<6x224xf32>
    %240 = tpu.matmul %239, %238, %cst_222 {dimension_numbers = #tpu.dot_dimension_numbers<[1], [0], [0], [1], [0, 0, 1, 1], [], []>} : vector<6x14xf32>, vector<14x224xf32>, vector<6x224xf32> -> vector<6x224xf32>
    %c0_223 = arith.constant 0 : index
    %c0_224 = arith.constant 0 : index
    %241 = vector.load %arg24[%c0_223, %c0_224] : memref<224x96xf32, #tpu.memory_space<vmem>>, vector<224x96xf32>
    %cst_225 = arith.constant dense<0.000000e+00> : vector<6x96xf32>
    %242 = tpu.matmul %240, %241, %cst_225 {dimension_numbers = #tpu.dot_dimension_numbers<[1], [0], [0], [1], [0, 0, 1, 1], [], []>} : vector<6x224xf32>, vector<224x96xf32>, vector<6x96xf32> -> vector<6x96xf32>
    %cst_226 = arith.constant 4.000000e-02 : f32
    %243 = vector.broadcast %cst_226 : f32 to vector<6x96xf32>
    %244 = arith.mulf %242, %243 : vector<6x96xf32>
    %c0_227 = arith.constant 0 : index
    %c0_228 = arith.constant 0 : index
    %245 = vector.load %arg27[%c0_227, %c0_228] : memref<1x10xf32, #tpu.memory_space<vmem>>, vector<1x10xf32>
    %c0_229 = arith.constant 0 : index
    %c0_230 = arith.constant 0 : index
    %c0_231 = arith.constant 0 : index
    %246 = vector.load %arg25[%c0_229, %c0_230, %c0_231] : memref<3x2x6xf32, #tpu.memory_space<vmem>>, vector<1x2x6xf32>
    %247 = vector.shape_cast %246 : vector<1x2x6xf32> to vector<2x6xf32>
    %cst_232 = arith.constant dense<0.000000e+00> : vector<2x96xf32>
    %248 = tpu.matmul %247, %244, %cst_232 {dimension_numbers = #tpu.dot_dimension_numbers<[1], [0], [0], [1], [0, 0, 1, 1], [], []>} : vector<2x6xf32>, vector<6x96xf32>, vector<2x96xf32> -> vector<2x96xf32>
    %c0_233 = arith.constant 0 : index
    %c0_234 = arith.constant 0 : index
    %c0_235 = arith.constant 0 : index
    %249 = vector.load %arg26[%c0_233, %c0_234, %c0_235] : memref<3x96x10xf32, #tpu.memory_space<vmem>>, vector<1x96x10xf32>
    %250 = vector.shape_cast %249 : vector<1x96x10xf32> to vector<96x10xf32>
    %cst_236 = arith.constant dense<0.000000e+00> : vector<2x10xf32>
    %251 = tpu.matmul %248, %250, %cst_236 {dimension_numbers = #tpu.dot_dimension_numbers<[1], [0], [0], [1], [0, 0, 1, 1], [], []>} : vector<2x96xf32>, vector<96x10xf32>, vector<2x10xf32> -> vector<2x10xf32>
    %252 = vector.broadcast %245 : vector<1x10xf32> to vector<2x10xf32>
    %253 = arith.addf %252, %251 : vector<2x10xf32>
    %c1_237 = arith.constant 1 : index
    %c0_238 = arith.constant 0 : index
    %c0_239 = arith.constant 0 : index
    %254 = vector.load %arg25[%c1_237, %c0_238, %c0_239] : memref<3x2x6xf32, #tpu.memory_space<vmem>>, vector<1x2x6xf32>
    %255 = vector.shape_cast %254 : vector<1x2x6xf32> to vector<2x6xf32>
    %cst_240 = arith.constant dense<0.000000e+00> : vector<2x96xf32>
    %256 = tpu.matmul %255, %244, %cst_240 {dimension_numbers = #tpu.dot_dimension_numbers<[1], [0], [0], [1], [0, 0, 1, 1], [], []>} : vector<2x6xf32>, vector<6x96xf32>, vector<2x96xf32> -> vector<2x96xf32>
    %c1_241 = arith.constant 1 : index
    %c0_242 = arith.constant 0 : index
    %c0_243 = arith.constant 0 : index
    %257 = vector.load %arg26[%c1_241, %c0_242, %c0_243] : memref<3x96x10xf32, #tpu.memory_space<vmem>>, vector<1x96x10xf32>
    %258 = vector.shape_cast %257 : vector<1x96x10xf32> to vector<96x10xf32>
    %cst_244 = arith.constant dense<0.000000e+00> : vector<2x10xf32>
    %259 = tpu.matmul %256, %258, %cst_244 {dimension_numbers = #tpu.dot_dimension_numbers<[1], [0], [0], [1], [0, 0, 1, 1], [], []>} : vector<2x96xf32>, vector<96x10xf32>, vector<2x10xf32> -> vector<2x10xf32>
    %260 = arith.addf %253, %259 : vector<2x10xf32>
    %c2_245 = arith.constant 2 : index
    %c0_246 = arith.constant 0 : index
    %c0_247 = arith.constant 0 : index
    %261 = vector.load %arg25[%c2_245, %c0_246, %c0_247] : memref<3x2x6xf32, #tpu.memory_space<vmem>>, vector<1x2x6xf32>
    %262 = vector.shape_cast %261 : vector<1x2x6xf32> to vector<2x6xf32>
    %cst_248 = arith.constant dense<0.000000e+00> : vector<2x96xf32>
    %263 = tpu.matmul %262, %244, %cst_248 {dimension_numbers = #tpu.dot_dimension_numbers<[1], [0], [0], [1], [0, 0, 1, 1], [], []>} : vector<2x6xf32>, vector<6x96xf32>, vector<2x96xf32> -> vector<2x96xf32>
    %c2_249 = arith.constant 2 : index
    %c0_250 = arith.constant 0 : index
    %c0_251 = arith.constant 0 : index
    %264 = vector.load %arg26[%c2_249, %c0_250, %c0_251] : memref<3x96x10xf32, #tpu.memory_space<vmem>>, vector<1x96x10xf32>
    %265 = vector.shape_cast %264 : vector<1x96x10xf32> to vector<96x10xf32>
    %cst_252 = arith.constant dense<0.000000e+00> : vector<2x10xf32>
    %266 = tpu.matmul %263, %265, %cst_252 {dimension_numbers = #tpu.dot_dimension_numbers<[1], [0], [0], [1], [0, 0, 1, 1], [], []>} : vector<2x96xf32>, vector<96x10xf32>, vector<2x10xf32> -> vector<2x10xf32>
    %267 = arith.addf %260, %266 : vector<2x10xf32>
    %cst_253 = arith.constant dense<0xFF800000> : vector<2xf32>
    %268 = vector.multi_reduction <maximumf>, %267, %cst_253 [1] : vector<2x10xf32> to vector<2xf32>
    %269 = vector.shape_cast %268 : vector<2xf32> to vector<2x1xf32>
    %270 = vector.broadcast %269 : vector<2x1xf32> to vector<2x10xf32>
    %271 = arith.subf %267, %270 : vector<2x10xf32>
    %272 = math.exp %271 : vector<2x10xf32>
    %cst_254 = arith.constant dense<0.000000e+00> : vector<2xf32>
    %273 = vector.multi_reduction <add>, %272, %cst_254 [1] : vector<2x10xf32> to vector<2xf32>
    %274 = vector.shape_cast %273 : vector<2xf32> to vector<2x1xf32>
    %275 = math.log %274 : vector<2x1xf32>
    %276 = vector.broadcast %275 : vector<2x1xf32> to vector<2x10xf32>
    %277 = arith.subf %271, %276 : vector<2x10xf32>
    %c0_255 = arith.constant 0 : index
    %c0_256 = arith.constant 0 : index
    %278 = vector.load %arg28[%c0_255, %c0_256] : memref<2x10xf32, #tpu.memory_space<vmem>>, vector<2x10xf32>
    tpu.vector_store %arg28[%c0_255, %c0_256], %277 {strides = array<i32>} : memref<2x10xf32, #tpu.memory_space<vmem>>, vector<2x10xf32>,
    return
  }
}

</mosaic_0001>

<bundles_post_ra>
// kernel: net_forward.1
= control target key start
LH: loop header
LB: loop body
LE: loop exit
PB: predicated region body
PF: predicated region fallthrough
CT: control target
= control target key end

     0   :  { %s8881_s0 = inlined_call_operand.vmem [shape: f32[64,96], index: 0, kind: input, shape index: {}]   ;;  %s8882_s1 = inlined_call_operand.vmem [shape: f32[3,64,64], index: 1, kind: input, shape index: {}]   ;;  %s8883_s2 = inlined_call_operand.vmem [shape: f32[3,96,256], index: 2, kind: input, shape index: {}]   ;;  %s8884_s3 = inlined_call_operand.vmem [shape: f32[256,8], index: 3, kind: input, shape index: {}]   ;;  %s8885_s4 = inlined_call_operand.vmem [shape: f32[8,256], index: 4, kind: input, shape index: {}]   ;;  %s8886_s5 = inlined_call_operand.vmem [shape: f32[1,8], index: 5, kind: input, shape index: {}]   ;;  %s8887_s6 = inlined_call_operand.vmem [shape: f32[1,8], index: 6, kind: input, shape index: {}]   ;;  %s8888_s7 = inlined_call_operand.vmem [shape: f32[3,30,64], index: 7, kind: input, shape index: {}]   ;;  %s8889_s8 = inlined_call_operand.vmem [shape: f32[3,256,120], index: 8, kind: input, shape index: {}]   ;;  %s8890_s9 = inlined_call_operand.vmem [shape: f32[3,30,30], index: 9, kind: input, shape index: {}]   ;;  %s8891_s10 = inlined_call_operand.vmem [shape: f32[3,120,240], index: 10, kind: input, shape index: {}]   ;;  %s8892_s11 = inlined_call_operand.vmem [shape: f32[240,16], index: 11, kind: input, shape index: {}]   ;;  %s8893_s12 = inlined_call_operand.vmem [shape: f32[16,240], index: 12, kind: input, shape index: {}]   ;;  %s8894_s13 = inlined_call_operand.vmem [shape: f32[1,16], index: 13, kind: input, shape index: {}]   ;;  %s8895_s14 = inlined_call_operand.vmem [shape: f32[1,16], index: 14, kind: input, shape index: {}]   ;;  %s8896_s15 = inlined_call_operand.vmem [shape: f32[3,14,30], index: 15, kind: input, shape index: {}]   ;;  %s8897_s16 = inlined_call_operand.vmem [shape: f32[3,240,112], index: 16, kind: input, shape index: {}]   ;;  %s8898_s17 = inlined_call_operand.vmem [shape: f32[3,14,14], index: 17, kind: input, shape index: {}]   ;;  %s8899_s18 = inlined_call_operand.vmem [shape: f32[3,112,224], index: 18, kind: input, shape index: {}]   ;;  %s8900_s19 = inlined_call_operand.vmem [shape: f32[224,32], index: 19, kind: input, shape index: {}]   ;;  %s8901_s20 = inlined_call_operand.vmem [shape: f32[32,224], index: 20, kind: input, shape index: {}]   ;;  %s8902_s21 = inlined_call_operand.vmem [shape: f32[1,32], index: 21, kind: input, shape index: {}]   ;;  %s8903_s22 = inlined_call_operand.vmem [shape: f32[1,32], index: 22, kind: input, shape index: {}]   ;;  %s8904_s23 = inlined_call_operand.vmem [shape: f32[6,14], index: 23, kind: input, shape index: {}]   ;;  %s8905_s24 = inlined_call_operand.vmem [shape: f32[224,96], index: 24, kind: input, shape index: {}]   ;;  %s8906_s25 = inlined_call_operand.vmem [shape: f32[3,2,6], index: 25, kind: input, shape index: {}]   ;;  %s8907_s26 = inlined_call_operand.vmem [shape: f32[3,96,10], index: 26, kind: input, shape index: {}]   ;;  %s8908_s27 = inlined_call_operand.vmem [shape: f32[1,10], index: 27, kind: input, shape index: {}]   ;;  %s8909_s28 = inlined_call_operand.hbm [shape: f32[2,10], index: 28, kind: output, shape index: {}]  }
   0x1   :  { %9106 = sst [smem:[#allocation69_spill]] %s8881_s0 }
   0x2   :  { %9107 = sst [smem:[#allocation70_spill]] %s8882_s1 }
   0x3   :  { %9108 = sst [smem:[#allocation71_spill]] %s8883_s2 }
   0x4   :  { %9109 = sst [smem:[#allocation72_spill]] %s8884_s3 }
   0x5   :  { %9110 = sst [smem:[#allocation73_spill]] %s8885_s4 }
   0x6   :  { %9111 = sst [smem:[#allocation74_spill]] %s8886_s5 }
   0x7   :  { %9112 = sst [smem:[#allocation75_spill]] %s8887_s6 }
   0x8   :  { %9113 = sst [smem:[#allocation76_spill]] %s8888_s7 }
   0x9   :  { %9114 = sst [smem:[#allocation77_spill]] %s8889_s8 }
   0xa   :  { %9115 = sst [smem:[#allocation78_spill]] %s8890_s9 }
   0xb   :  { %9116 = sst [smem:[#allocation79_spill]] %s8891_s10 }
   0xc   :  { %9117 = sst [smem:[#allocation80_spill]] %s8892_s11 }
   0xd   :  { %9118 = sst [smem:[#allocation81_spill]] %s8893_s12 }
   0xe   :  { %s9119_s9 = sld [smem:[#allocation69_spill]] }
  0x14   :  { %v4972_v0 = vld [vmem:[%s9119_s9 + $0x38] sm:$0xff]  ;;  %v4977_v1 = vld [vmem:[%s9119_s9 + $0x30] sm:$0xff]  ;;  %v4983_v2 = vld [vmem:[%s9119_s9 + $0x28] sm:$0xff] }
  0x15   :  { %164 = vmatpush.msra.mxu0 %v4972_v0  ;;  %v4989_v3 = vld [vmem:[%s9119_s9 + $0x20] sm:$0xff] }
  0x17   :  { %165 = vmatpush.msra.mxu0 %v4977_v1 }
  0x18   :  { %33 = vsyncpa [#allocation3], 0  ;;  %v4995_v4 = vld [vmem:[%s9119_s9 + $0x18] sm:$0xff]  ;;  %v5001_v5 = vld [vmem:[%s9119_s9 + $0x10] sm:$0xff]  ;;  %s9120_s6 = sld [smem:[#allocation70_spill]]  ;;  %vm131_vm0 = vcmask 523264  }
  0x19   :  { %166 = vmatpush.msra.mxu0 %v4983_v2  ;;  %v5007_v6 = vld [vmem:[%s9119_s9 + $0x8] sm:$0xff]  ;;  %v5013_v7 = vld [vmem:[%s9119_s9] sm:$0xff]  ;;  %s9121_s1 = sld [smem:[#allocation71_spill]]  ;;  %vm221_vm1 = vcmask 785408   ;;  %vm857_vm5 = vcmask 64512   ;;  %vm1983_vm6 = vcmask 982016  }
  0x1a   :  { %s9123_s5 = sld [smem:[#allocation73_spill]]  ;;  %vm1920_vm7 = vcmask 1045504   ;;  %vm1907_vm8 = vcmask 244736   ;;  %vm2288_vm9 = vcmask 916480   ;;  %vm2294_vm10 = vcmask 914432  }
  0x1b   :  { %167 = vmatpush.msra.mxu0 %v4989_v3  ;;  %s9125_s29 = sld [smem:[#allocation75_spill]]  ;;  %vm2474_vm14 = vcmask 130048   ;;  %vm3330_vm15 = vcmask 113664  }
  0x1c   :  { %s9137_s12 = sld [smem:[#allocation76_spill]] }
  0x1d   :  { %168 = vmatpush.msra.mxu0 %v4995_v4  ;;  %s9138_s8 = sld [smem:[#allocation77_spill]] }
  0x1e   :  { %v123_v8 = vld [vmem:[%s9120_s6] sm:$0xff]  ;;  %v124_v9 = vld [vmem:[%s9120_s6 + $0x8] sm:$0xff]  ;;  %v125_v10 = vld [vmem:[%s9120_s6 + $0x10] sm:$0xff]  ;;  %s9285_s10 = sld [smem:[#allocation79_spill]] }
  0x1f   :  { %169 = vmatpush.msra.mxu0 %v5001_v5  ;;  %v126_v11 = vld [vmem:[%s9120_s6 + $0x18] sm:$0xff]  ;;  %v4261_v12 = vld [vmem:[%s9121_s1 + $0x170] sm:$0xff]  ;;  %v4259_v13 = vld [vmem:[%s9121_s1 + $0x160] sm:$0xff]  ;;  %s9289_s7 = sld [smem:[#allocation80_spill]] }
  0x20   :  { %356 = vmatpush.msra.mxu3 %v4261_v12  ;;  %v219_v14 = vld [vmem:[%s9121_s1 + $0xb0] sm:$0xff]  ;;  %v220_v15 = vld [vmem:[%s9121_s1 + $0xb8] sm:$0xff]  ;;  %v217_v17 = vld [vmem:[%s9121_s1 + $0xa0] sm:$0xff] }
  0x21   :  { %170 = vmatpush.msra.mxu0 %v5007_v6  ;;  %v4257_v16 = vld [vmem:[%s9121_s1 + $0x150] sm:$0xff]  ;;  %250 = vmatpush.msra.mxu1 %v219_v14  ;;  %v218_v18 = vld [vmem:[%s9121_s1 + $0xa8] sm:$0xff]  ;;  %v216_v20 = vld [vmem:[%s9121_s1 + $0x98] sm:$0xff] }
  0x22   :  { %291 = vmatpush.msra.mxu2 %v220_v15  ;;  %357 = vmatpush.msra.mxu3 %v4259_v13  ;;  %v215_v19 = vld [vmem:[%s9121_s1 + $0x90] sm:$0xff]  ;;  %v4255_v21 = vld [vmem:[%s9121_s1 + $0x140] sm:$0xff]  ;;  %v4262_v24 = vld [vmem:[%s9121_s1 + $0x178] sm:$0xff] }
  0x23   :  { %171 = vmatpush.msra.mxu0 %v5013_v7  ;;  %251 = vmatpush.msra.mxu1 %v217_v17  ;;  %v127_v22 = vld [vmem:[%s9120_s6 + $0x20] sm:$0xff]  ;;  %v4253_v25 = vld [vmem:[%s9121_s1 + $0x130] sm:$0xff]  ;;  %v214_v26 = vld [vmem:[%s9121_s1 + $0x88] sm:$0xff] }
  0x24   :  { %4263 = vmatmul.msk.f32.vlgmr.msra.gmra.mxu0 %vm131_vm0, %v123_v8  ;;  %292 = vmatpush.msra.mxu2 %v218_v18  ;;  %v213_v23 = vld [vmem:[%s9121_s1 + $0x80] sm:$0xff]  ;;  %v211_v27 = vld [vmem:[%s9121_s1 + $0x70] sm:$0xff]  ;;  %v4260_v28 = vld [vmem:[%s9121_s1 + $0x168] sm:$0xff] }
  0x25   :  { %358 = vmatpush.msra.mxu3 %v4257_v16  ;;  %252 = vmatpush.msra.mxu1 %v215_v19  ;;  %v4251_v29 = vld [vmem:[%s9121_s1 + $0x120] sm:$0xff]  ;;  %v212_v30 = vld [vmem:[%s9121_s1 + $0x78] sm:$0xff]  ;;  %v4249_v33 = vld [vmem:[%s9121_s1 + $0x110] sm:$0xff] }
  0x26   :  { %293 = vmatpush.msra.mxu2 %v216_v20  ;;  %397 = vmatpush.msrb.mxu0 %v4262_v24  ;;  %v209_v31 = vld [vmem:[%s9121_s1 + $0x60] sm:$0xff]  ;;  %v4258_v32 = vld [vmem:[%s9121_s1 + $0x158] sm:$0xff]  ;;  %v210_v34 = vld [vmem:[%s9121_s1 + $0x68] sm:$0xff] }
  0x27   :  { %359 = vmatpush.msra.mxu3 %v4255_v21  ;;  %253 = vmatpush.msra.mxu1 %v213_v23  ;;  %v207_v35 = vld [vmem:[%s9121_s1 + $0x50] sm:$0xff]  ;;  %v4256_v36 = vld [vmem:[%s9121_s1 + $0x148] sm:$0xff]  ;;  %v4247_v37 = vld [vmem:[%s9121_s1 + $0x100] sm:$0xff] }
  0x28   :  { %294 = vmatpush.msra.mxu2 %v214_v26  ;;  %398 = vmatpush.msrb.mxu0 %v4260_v28  ;;  %v208_v38 = vld [vmem:[%s9121_s1 + $0x58] sm:$0xff]  ;;  %v128_v39 = vld [vmem:[%s9120_s6 + $0x28] sm:$0xff]  ;;  %v205_v40 = vld [vmem:[%s9121_s1 + $0x40] sm:$0xff] }
  0x29   :  { %360 = vmatpush.msra.mxu3 %v4253_v25  ;;  %254 = vmatpush.msra.mxu1 %v211_v27  ;;  %v4245_v41 = vld [vmem:[%s9121_s1 + $0xf0] sm:$0xff]  ;;  %v206_v42 = vld [vmem:[%s9121_s1 + $0x48] sm:$0xff]  ;;  %v4254_v43 = vld [vmem:[%s9121_s1 + $0x138] sm:$0xff] }
  0x2a   :  { %295 = vmatpush.msra.mxu2 %v212_v30  ;;  %399 = vmatpush.msrb.mxu0 %v4258_v32  ;;  %v203_v44 = vld [vmem:[%s9121_s1 + $0x30] sm:$0xff]  ;;  %v4243_v45 = vld [vmem:[%s9121_s1 + $0xe0] sm:$0xff]  ;;  %v204_v46 = vld [vmem:[%s9121_s1 + $0x38] sm:$0xff] }
  0x2b   :  { %361 = vmatpush.msra.mxu3 %v4251_v29  ;;  %255 = vmatpush.msra.mxu1 %v209_v31  ;;  %v4252_v47 = vld [vmem:[%s9121_s1 + $0x128] sm:$0xff]  ;;  %v201_v48 = vld [vmem:[%s9121_s1 + $0x20] sm:$0xff]  ;;  %v4241_v49 = vld [vmem:[%s9121_s1 + $0xd0] sm:$0xff] }
  0x2c   :  { %4264 = vmatmul.msk.f32.gmra.mxu0 %vm131_vm0, %v124_v9  ;;  %296 = vmatpush.msra.mxu2 %v210_v34  ;;  %v202_v50 = vld [vmem:[%s9121_s1 + $0x28] sm:$0xff]  ;;  %v4250_v51 = vld [vmem:[%s9121_s1 + $0x118] sm:$0xff]  ;;  %v199_v52 = vld [vmem:[%s9121_s1 + $0x10] sm:$0xff] }
  0x2d   :  { %362 = vmatpush.msra.mxu3 %v4249_v33  ;;  %256 = vmatpush.msra.mxu1 %v207_v35  ;;  %v4239_v53 = vld [vmem:[%s9121_s1 + $0xc0] sm:$0xff]  ;;  %v200_v54 = vld [vmem:[%s9121_s1 + $0x18] sm:$0xff]  ;;  %v129_v55 = vld [vmem:[%s9120_s6 + $0x30] sm:$0xff] }
  0x2e   :  { %400 = vmatpush.msrb.mxu0 %v4256_v36  ;;  %297 = vmatpush.msra.mxu2 %v208_v38  ;;  %v4248_v56 = vld [vmem:[%s9121_s1 + $0x108] sm:$0xff]  ;;  %v130_v57 = vld [vmem:[%s9120_s6 + $0x38] sm:$0xff]  ;;  %v197_v58 = vld [vmem:[%s9121_s1] sm:$0xff] }
  0x2f   :  { %363 = vmatpush.msra.mxu3 %v4247_v37  ;;  %257 = vmatpush.msra.mxu1 %v205_v40  ;;  %v198_v59 = vld [vmem:[%s9121_s1 + $0x8] sm:$0xff]  ;;  %v4246_v60 = vld [vmem:[%s9121_s1 + $0xf8] sm:$0xff]  ;;  %v4307_v12 = vld [vmem:[%s9120_s6 + $0xa0] sm:$0xff] }
  0x30   :  { %298 = vmatpush.msra.mxu2 %v206_v42  ;;  %401 = vmatpush.msrb.mxu0 %v4254_v43  ;;  %v4244_v61 = vld [vmem:[%s9121_s1 + $0xe8] sm:$0xff]  ;;  %v4242_v62 = vld [vmem:[%s9121_s1 + $0xd8] sm:$0xff]  ;;  %v4309_v14 = vld [vmem:[%s9120_s6 + $0xb0] sm:$0xff] }
  0x31   :  { %364 = vmatpush.msra.mxu3 %v4245_v41  ;;  %258 = vmatpush.msra.mxu1 %v203_v44  ;;  %v4240_v63 = vld [vmem:[%s9121_s1 + $0xc8] sm:$0xff]  ;;  %v4310_v15 = vld [vmem:[%s9120_s6 + $0xb8] sm:$0xff]  ;;  %v4341_v16 = vld [vmem:[%s9121_s1 + $0x230] sm:$0xff] }
  0x32   :  { %299 = vmatpush.msra.mxu2 %v204_v46  ;;  %402 = vmatpush.msrb.mxu0 %v4252_v47  ;;  %v4308_v13 = vld [vmem:[%s9120_s6 + $0xa8] sm:$0xff]  ;;  %v4342_v17 = vld [vmem:[%s9121_s1 + $0x238] sm:$0xff]  ;;  %v4339_v19 = vld [vmem:[%s9121_s1 + $0x220] sm:$0xff] }
  0x33   :  { %365 = vmatpush.msra.mxu3 %v4243_v45  ;;  %259 = vmatpush.msra.mxu1 %v201_v48  ;;  %v4340_v20 = vld [vmem:[%s9121_s1 + $0x228] sm:$0xff]  ;;  %v4337_v21 = vld [vmem:[%s9121_s1 + $0x210] sm:$0xff]  ;;  %v4335_v24 = vld [vmem:[%s9121_s1 + $0x200] sm:$0xff] }
  0x34   :  { %4265 = vmatmul.msk.f32.gmra.mxu0 %vm131_vm0, %v125_v10  ;;  %300 = vmatpush.msra.mxu2 %v202_v50  ;;  %v4305_v10 = vld [vmem:[%s9120_s6 + $0x90] sm:$0xff]  ;;  %v4336_v25 = vld [vmem:[%s9121_s1 + $0x208] sm:$0xff]  ;;  %v4334_v28 = vld [vmem:[%s9121_s1 + $0x1f8] sm:$0xff] }
  0x35   :  { %366 = vmatpush.msra.mxu3 %v4241_v49  ;;  %403 = vmatpush.msrb.mxu0 %v4250_v51  ;;  %v4333_v27 = vld [vmem:[%s9121_s1 + $0x1f0] sm:$0xff]  ;;  %v4331_v29 = vld [vmem:[%s9121_s1 + $0x1e0] sm:$0xff]  ;;  %v4332_v30 = vld [vmem:[%s9121_s1 + $0x1e8] sm:$0xff] }
  0x36   :  { %260 = vmatpush.msra.mxu1 %v199_v52  ;;  %301 = vmatpush.msra.mxu2 %v200_v54  ;;  %v4329_v31 = vld [vmem:[%s9121_s1 + $0x1d0] sm:$0xff]  ;;  %v4330_v32 = vld [vmem:[%s9121_s1 + $0x1d8] sm:$0xff]  ;;  %v4327_v33 = vld [vmem:[%s9121_s1 + $0x1c0] sm:$0xff] }
  0x37   :  { %367 = vmatpush.msra.mxu3 %v4239_v53  ;;  %404 = vmatpush.msrb.mxu0 %v4248_v56  ;;  %v4328_v34 = vld [vmem:[%s9121_s1 + $0x1c8] sm:$0xff]  ;;  %v4325_v36 = vld [vmem:[%s9121_s1 + $0x1b0] sm:$0xff]  ;;  %v4326_v37 = vld [vmem:[%s9121_s1 + $0x1b8] sm:$0xff] }
  0x38   :  { %4287 = vmatmul.msk.f32.vlgmr.msra.gmra.mxu3 %vm221_vm1, %v5013_v7  ;;  %261 = vmatpush.msra.mxu1 %v197_v58  ;;  %v4323_v38 = vld [vmem:[%s9121_s1 + $0x1a0] sm:$0xff]  ;;  %v4321_v40 = vld [vmem:[%s9121_s1 + $0x190] sm:$0xff]  ;;  %v4322_v41 = vld [vmem:[%s9121_s1 + $0x198] sm:$0xff] }
  0x39   :  { %302 = vmatpush.msra.mxu2 %v198_v59  ;;  %405 = vmatpush.msrb.mxu0 %v4246_v60  ;;  %v4319_v42 = vld [vmem:[%s9121_s1 + $0x180] sm:$0xff]  ;;  %v4320_v43 = vld [vmem:[%s9121_s1 + $0x188] sm:$0xff] }
  0x3a   :  { %475 = vmatpush.msrb.mxu1 %v4972_v0  ;;  %602 = vmatpush.msrb.mxu3 %v4342_v17 }
  0x3b   :  { %406 = vmatpush.msrb.mxu0 %v4244_v61  ;;  %561 = vmatpush.msrb.mxu2 %v4341_v16 }
  0x3c   :  { %4266 = vmatmul.msk.f32.gmra.mxu0 %vm131_vm0, %v126_v11  ;;  %476 = vmatpush.msrb.mxu1 %v4977_v1  ;;  %v4306_v11 = vld [vmem:[%s9120_s6 + $0x98] sm:$0xff] }
  0x3d   :  { %407 = vmatpush.msrb.mxu0 %v4242_v62  ;;  %562 = vmatpush.msrb.mxu2 %v4339_v19 }
  0x3e   :  { %477 = vmatpush.msrb.mxu1 %v4983_v2  ;;  %603 = vmatpush.msrb.mxu3 %v4340_v20 }
  0x3f   :  { %408 = vmatpush.msrb.mxu0 %v4240_v63  ;;  %563 = vmatpush.msrb.mxu2 %v4337_v21 }
  0x40   :  { %4288 = vmatmul.msk.f32.gmra.mxu3 %vm221_vm1, %v5007_v6  ;;  %478 = vmatpush.msrb.mxu1 %v4989_v3 }
  0x41   :  { %564 = vmatpush.msrb.mxu2 %v4335_v24 }
  0x42   :  { %479 = vmatpush.msrb.mxu1 %v4995_v4 }
  0x43   :  { %565 = vmatpush.msrb.mxu2 %v4333_v27 }
  0x44   :  { %4267 = vmatmul.msk.f32.gmra.mxu0 %vm131_vm0, %v127_v22  ;;  %480 = vmatpush.msrb.mxu1 %v5001_v5  ;;  %v4338_v22 = vld [vmem:[%s9121_s1 + $0x218] sm:$0xff] }
  0x45   :  { %604 = vmatpush.msrb.mxu3 %v4338_v22  ;;  %566 = vmatpush.msrb.mxu2 %v4331_v29 }
  0x46   :  { %481 = vmatpush.msrb.mxu1 %v5007_v6 }
  0x47   :  { %605 = vmatpush.msrb.mxu3 %v4336_v25  ;;  %567 = vmatpush.msrb.mxu2 %v4329_v31 }
  0x48   :  { %4289 = vmatmul.msk.f32.gmra.mxu3 %vm221_vm1, %v5001_v5  ;;  %482 = vmatpush.msrb.mxu1 %v5013_v7 }
  0x49   :  { %606 = vmatpush.msrb.mxu3 %v4334_v28  ;;  %568 = vmatpush.msrb.mxu2 %v4327_v33 }
  0x4b   :  { %607 = vmatpush.msrb.mxu3 %v4332_v30  ;;  %569 = vmatpush.msrb.mxu2 %v4325_v36 }
  0x4c   :  { %4268 = vmatmul.msk.f32.gmra.mxu0 %vm131_vm0, %v128_v39  ;;  %v4324_v39 = vld [vmem:[%s9121_s1 + $0x1a8] sm:$0xff]  ;;  %s9124_s1 = sld [smem:[#allocation74_spill]] }
  0x4d   :  { %608 = vmatpush.msrb.mxu3 %v4330_v32  ;;  %570 = vmatpush.msrb.mxu2 %v4323_v38 }
  0x4f   :  { %609 = vmatpush.msrb.mxu3 %v4328_v34  ;;  %571 = vmatpush.msrb.mxu2 %v4321_v40 }
  0x50   :  { %4290 = vmatmul.msk.f32.gmra.mxu3 %vm221_vm1, %v4995_v4 }
  0x51   :  { %610 = vmatpush.msrb.mxu3 %v4326_v37  ;;  %572 = vmatpush.msrb.mxu2 %v4319_v42 }
  0x53   :  { %611 = vmatpush.msrb.mxu3 %v4324_v39 }
  0x54   :  { %4269 = vmatmul.msk.f32.gmra.mxu0 %vm131_vm0, %v129_v55 }
  0x55   :  { %612 = vmatpush.msrb.mxu3 %v4322_v41 }
  0x57   :  { %613 = vmatpush.msrb.mxu3 %v4320_v43 }
  0x58   :  { %4291 = vmatmul.msk.f32.gmra.mxu3 %vm221_vm1, %v4989_v3 }
  0x5c   :  { %4270 = vmatmul.msk.f32.gmra.mxu0 %vm131_vm0, %v130_v57 }
  0x60   :  { %4292 = vmatmul.msk.f32.gmra.mxu3 %vm221_vm1, %v4983_v2 }
  0x64   :  { %4295 = vmatmul.msk.f32.vlgmr.msrb.gmra.mxu0 %vm221_vm1, %v5013_v7  ;;  %v4304_v7 = vld [vmem:[%s9120_s6 + $0x88] sm:$0xff] }
  0x68   :  { %4293 = vmatmul.msk.f32.gmra.mxu3 %vm221_vm1, %v4977_v1 }
  0x6c   :  { %4296 = vmatmul.msk.f32.gmra.mxu0 %vm221_vm1, %v5007_v6 }
  0x70   :  { %4294 = vmatmul.msk.f32.gmra.mxu3 %vm221_vm1, %v4972_v0 }
  0x74   :  { %4297 = vmatmul.msk.f32.gmra.mxu0 %vm221_vm1, %v5001_v5 }
  0x7c   :  { %4298 = vmatmul.msk.f32.gmra.mxu0 %vm221_vm1, %v4995_v4 }
  0x84   :  { %4299 = vmatmul.msk.f32.gmra.mxu0 %vm221_vm1, %v4989_v3 }
  0x8c   :  { %4300 = vmatmul.msk.f32.gmra.mxu0 %vm221_vm1, %v4983_v2 }
  0x94   :  { %4301 = vmatmul.msk.f32.gmra.mxu0 %vm221_vm1, %v4977_v1 }
  0x9c   :  { %4302 = vmatmul.msk.f32.gmra.mxu0 %vm221_vm1, %v4972_v0  ;;  %v4303_v0 = vld [vmem:[%s9120_s6 + $0x80] sm:$0xff]  ;;  %s9122_s6 = sld [smem:[#allocation72_spill]] }
  0xa1   :  { %v173_v8 = vpop.f32.mrf.mxu0 }
  0xa2   :  { %4271 = vmatmul.msk.f32.vlgmr.msra.gmra.mxu1 %vm221_vm1, %v173_v8  ;;  %4279 = vmatmul.msk.f32.vlgmr.msra.gmra.mxu2 %vm221_vm1, %v173_v8  ;;  %v737_v19 = vld [vmem:[%s9122_s6 + $0x70] sm:$0xff]  ;;  %v736_v21 = vld [vmem:[%s9122_s6 + $0x68] sm:$0xff]  ;;  %v735_v24 = vld [vmem:[%s9122_s6 + $0x60] sm:$0xff] }
  0xa3   :  { %v753_v20 = vld [vmem:[%s9122_s6 + $0xf0] sm:$0xff]  ;;  %v752_v22 = vld [vmem:[%s9122_s6 + $0xe8] sm:$0xff]  ;;  %v751_v25 = vld [vmem:[%s9122_s6 + $0xe0] sm:$0xff] }
  0xa4   :  { %v734_v29 = vld [vmem:[%s9122_s6 + $0x58] sm:$0xff]  ;;  %v733_v31 = vld [vmem:[%s9122_s6 + $0x50] sm:$0xff]  ;;  %v732_v34 = vld [vmem:[%s9122_s6 + $0x48] sm:$0xff] }
  0xa5   :  { %v750_v30 = vld [vmem:[%s9122_s6 + $0xd8] sm:$0xff]  ;;  %v749_v32 = vld [vmem:[%s9122_s6 + $0xd0] sm:$0xff]  ;;  %v748_v36 = vld [vmem:[%s9122_s6 + $0xc8] sm:$0xff] }
  0xa6   :  { %v731_v37 = vld [vmem:[%s9122_s6 + $0x40] sm:$0xff]  ;;  %v730_v41 = vld [vmem:[%s9122_s6 + $0x38] sm:$0xff]  ;;  %v729_v43 = vld [vmem:[%s9122_s6 + $0x30] sm:$0xff] }
  0xa7   :  { %v747_v38 = vld [vmem:[%s9122_s6 + $0xc0] sm:$0xff]  ;;  %v746_v42 = vld [vmem:[%s9122_s6 + $0xb8] sm:$0xff] }
  0xa9   :  { %v176_v9 = vpop.f32.mrf.mxu0 }
  0xaa   :  { %4272 = vmatmul.msk.f32.gmra.mxu1 %vm221_vm1, %v176_v9  ;;  %4280 = vmatmul.msk.f32.gmra.mxu2 %vm221_vm1, %v176_v9 }
  0xb1   :  { %v179_v6 = vpop.f32.mrf.mxu0 }
  0xb2   :  { %4273 = vmatmul.msk.f32.gmra.mxu1 %vm221_vm1, %v179_v6  ;;  %4281 = vmatmul.msk.f32.gmra.mxu2 %vm221_vm1, %v179_v6 }
  0xb9   :  { %v182_v4 = vpop.f32.mrf.mxu0 }
  0xba   :  { %4274 = vmatmul.msk.f32.gmra.mxu1 %vm221_vm1, %v182_v4  ;;  %4282 = vmatmul.msk.f32.gmra.mxu2 %vm221_vm1, %v182_v4 }
  0xbb   :  { %v5383_v55 = vpop.f32.mrf.mxu3 }
  0xc1   :  { %v185_v3 = vpop.f32.mrf.mxu0 }
  0xc2   :  { %4275 = vmatmul.msk.f32.gmra.mxu1 %vm221_vm1, %v185_v3  ;;  %4283 = vmatmul.msk.f32.gmra.mxu2 %vm221_vm1, %v185_v3 }
  0xc3   :  { %v5389_v58 = vpop.f32.mrf.mxu3 }
  0xc9   :  { %v188_v2 = vpop.f32.mrf.mxu0 }
  0xca   :  { %4276 = vmatmul.msk.f32.gmra.mxu1 %vm221_vm1, %v188_v2  ;;  %4284 = vmatmul.msk.f32.gmra.mxu2 %vm221_vm1, %v188_v2 }
  0xcb   :  { %v5393_v60 = vpop.f32.mrf.mxu3 }
  0xd1   :  { %v191_v5 = vpop.f32.mrf.mxu0 }
  0xd2   :  { %4277 = vmatmul.msk.f32.gmra.mxu1 %vm221_vm1, %v191_v5  ;;  %4285 = vmatmul.msk.f32.gmra.mxu2 %vm221_vm1, %v191_v5 }
  0xd3   :  { %v5397_v62 = vpop.f32.mrf.mxu3 }
  0xd9   :  { %v194_v1 = vpop.f32.mrf.mxu0 }
  0xda   :  { %4278 = vmatmul.msk.f32.gmra.mxu1 %vm221_vm1, %v194_v1  ;;  %4286 = vmatmul.msk.f32.gmra.mxu2 %vm221_vm1, %v194_v1 }
  0xdb   :  { %v5401_v8 = vpop.f32.mrf.mxu3 }
  0xe1   :  { %v5409_v3 = vpop.f32.mrf.mxu0 }
  0xe2   :  { %4311 = vmatmul.msk.f32.vlgmr.msrb.gmra.mxu1 %vm131_vm0, %v4303_v0 }
  0xe3   :  { %v5405_v6 = vpop.f32.mrf.mxu3 }
  0xe9   :  { %v5415_v1 = vpop.f32.mrf.mxu0 }
  0xea   :  { %4312 = vmatmul.msk.f32.gmra.mxu1 %vm131_vm0, %v4304_v7 }
  0xeb   :  { %v5411_v2 = vpop.f32.mrf.mxu3 }
  0xf2   :  { %4313 = vmatmul.msk.f32.gmra.mxu1 %vm131_vm0, %v4305_v10 }
  0xf3   :  { %v5417_v0 = vpop.f32.mrf.mxu3 }
  0xfa   :  { %4314 = vmatmul.msk.f32.gmra.mxu1 %vm131_vm0, %v4306_v11 }
 0x102   :  { %4315 = vmatmul.msk.f32.gmra.mxu1 %vm131_vm0, %v4307_v12  ;;  %v5425_v12 = vpop.f32.mrf.mxu0 }
 0x10a   :  { %4316 = vmatmul.msk.f32.gmra.mxu1 %vm131_vm0, %v4308_v13  ;;  %v738_v13 = vld [vmem:[%s9122_s6 + $0x78] sm:$0xff]  ;;  %v5437_v17 = vpop.f32.mrf.mxu0 }
 0x10b   :  { %795 = vmatpush.msra.mxu2 %v738_v13  ;;  %755 = vmatpush.msra.mxu0 %v738_v13  ;;  %v726_v13 = vld [vmem:[%s9122_s6 + $0x18] sm:$0xff] }
 0x10d   :  { %796 = vmatpush.msra.mxu2 %v737_v19  ;;  %756 = vmatpush.msra.mxu0 %v737_v19  ;;  %v725_v19 = vld [vmem:[%s9122_s6 + $0x10] sm:$0xff] }
 0x10f   :  { %797 = vmatpush.msra.mxu2 %v736_v21  ;;  %757 = vmatpush.msra.mxu0 %v736_v21  ;;  %v724_v21 = vld [vmem:[%s9122_s6 + $0x8] sm:$0xff] }
 0x111   :  { %798 = vmatpush.msra.mxu2 %v735_v24  ;;  %758 = vmatpush.msra.mxu0 %v735_v24 }
 0x112   :  { %4317 = vmatmul.msk.f32.gmra.mxu1 %vm131_vm0, %v4309_v14  ;;  %v754_v14 = vld [vmem:[%s9122_s6 + $0xf8] sm:$0xff]  ;;  %v5473_v33 = vpop.f32.mrf.mxu0 }
 0x113   :  { %815 = vmatpush.msra.mxu3 %v754_v14  ;;  %775 = vmatpush.msra.mxu1 %v754_v14  ;;  %v742_v14 = vld [vmem:[%s9122_s6 + $0x98] sm:$0xff] }
 0x114   :  { %799 = vmatpush.msra.mxu2 %v734_v29  ;;  %759 = vmatpush.msra.mxu0 %v734_v29 }
 0x115   :  { %816 = vmatpush.msra.mxu3 %v753_v20  ;;  %776 = vmatpush.msra.mxu1 %v753_v20  ;;  %v741_v20 = vld [vmem:[%s9122_s6 + $0x90] sm:$0xff] }
 0x116   :  { %800 = vmatpush.msra.mxu2 %v733_v31  ;;  %760 = vmatpush.msra.mxu0 %v733_v31 }
 0x117   :  { %817 = vmatpush.msra.mxu3 %v752_v22  ;;  %777 = vmatpush.msra.mxu1 %v752_v22 }
 0x118   :  { %801 = vmatpush.msra.mxu2 %v732_v34  ;;  %761 = vmatpush.msra.mxu0 %v732_v34 }
 0x119   :  { %818 = vmatpush.msra.mxu3 %v751_v25  ;;  %778 = vmatpush.msra.mxu1 %v751_v25  ;;  %v740_v25 = vld [vmem:[%s9122_s6 + $0x88] sm:$0xff] }
 0x11a   :  { %4318 = vmatmul.msk.f32.gmra.mxu1 %vm131_vm0, %v4310_v15  ;;  %802 = vmatpush.msra.mxu2 %v731_v37 }
 0x11b   :  { %819 = vmatpush.msra.mxu3 %v750_v30  ;;  %779 = vmatpush.msra.mxu1 %v750_v30 }
 0x11c   :  { %762 = vmatpush.msra.mxu0 %v731_v37  ;;  %803 = vmatpush.msra.mxu2 %v730_v41 }
 0x11d   :  { %820 = vmatpush.msra.mxu3 %v749_v32  ;;  %780 = vmatpush.msra.mxu1 %v749_v32 }
 0x11e   :  { %763 = vmatpush.msra.mxu0 %v730_v41  ;;  %804 = vmatpush.msra.mxu2 %v729_v43 }
 0x11f   :  { %v5287_v18 = vpop.f32.mrf.mxu1  ;;  %821 = vmatpush.msra.mxu3 %v748_v36  ;;  %781 = vmatpush.msra.mxu1 %v748_v36 }
 0x120   :  { %764 = vmatpush.msra.mxu0 %v729_v43  ;;  %v370_v29 = vadd.f32 %v5383_v55, %v5287_v18 }
 0x121   :  { %822 = vmatpush.msra.mxu3 %v747_v38  ;;  %782 = vmatpush.msra.mxu1 %v747_v38 }
 0x123   :  { %783 = vmatpush.msra.mxu1 %v746_v42  ;;  %823 = vmatpush.msra.mxu3 %v746_v42 }
 0x125   :  { %v5385_v56 = vpop.f32.mrf.mxu2 }
 0x126   :  { %v411_v30 = vadd.f32 %v5409_v3, %v5385_v56 }
 0x127   :  { %v5301_v23 = vpop.f32.mrf.mxu1 }
 0x128   :  { %v373_v22 = vadd.f32 %v5389_v58, %v5301_v23  ;;  %v723_v23 = vld [vmem:[%s9122_s6] sm:$0xff] }
 0x12d   :  { %v5391_v59 = vpop.f32.mrf.mxu2 }
 0x12e   :  { %v414_v24 = vadd.f32 %v5415_v1, %v5391_v59 }
 0x12f   :  { %v5309_v26 = vpop.f32.mrf.mxu1 }
 0x130   :  { %v376_v31 = vadd.f32 %v5393_v60, %v5309_v26  ;;  %v739_v26 = vld [vmem:[%s9122_s6 + $0x80] sm:$0xff] }
 0x135   :  { %v5395_v61 = vpop.f32.mrf.mxu2 }
 0x136   :  { %v417_v58 = vadd.f32 %v5425_v12, %v5395_v61 }
 0x137   :  { %v5335_v35 = vpop.f32.mrf.mxu1 }
 0x138   :  { %v379_v12 = vadd.f32 %v5397_v62, %v5335_v35 }
 0x13d   :  { %v5399_v63 = vpop.f32.mrf.mxu2 }
 0x13f   :  { %v5361_v44 = vpop.f32.mrf.mxu1 }
 0x145   :  { %v5403_v9 = vpop.f32.mrf.mxu2 }
 0x147   :  { %v5363_v45 = vpop.f32.mrf.mxu1 }
 0x148   :  { %v385_v35 = vadd.f32 %v5405_v6, %v5363_v45 }
 0x14d   :  { %v5407_v4 = vpop.f32.mrf.mxu2 }
 0x14f   :  { %v5365_v46 = vpop.f32.mrf.mxu1 }
 0x150   :  { %v388_v6 = vadd.f32 %v5411_v2, %v5365_v46 }
 0x155   :  { %v5413_v5 = vpop.f32.mrf.mxu2 }
 0x157   :  { %v5367_v47 = vpop.f32.mrf.mxu1 }
 0x15d   :  { %v5419_v7 = vpop.f32.mrf.mxu2 }
 0x15f   :  { %v484_v48 = vpop.f32.mrf.mxu1 }
 0x160   :  { %4343 = vmatmul.msk.f32.vlgmr.msrb.gmra.mxu2 %vm221_vm1, %v484_v48  ;;  %4351 = vmatmul.msk.f32.vlgmr.msrb.gmra.mxu3 %vm221_vm1, %v484_v48  ;;  %v745_v48 = vld [vmem:[%s9122_s6 + $0xb0] sm:$0xff] }
 0x161   :  { %784 = vmatpush.msra.mxu1 %v745_v48  ;;  %824 = vmatpush.msra.mxu3 %v745_v48 }
 0x167   :  { %v487_v49 = vpop.f32.mrf.mxu1 }
 0x168   :  { %4344 = vmatmul.msk.f32.gmra.mxu2 %vm221_vm1, %v487_v49  ;;  %4352 = vmatmul.msk.f32.gmra.mxu3 %vm221_vm1, %v487_v49  ;;  %v728_v49 = vld [vmem:[%s9122_s6 + $0x28] sm:$0xff] }
 0x169   :  { %765 = vmatpush.msra.mxu0 %v728_v49  ;;  %805 = vmatpush.msra.mxu2 %v728_v49 }
 0x16f   :  { %v490_v50 = vpop.f32.mrf.mxu1 }
 0x170   :  { %4345 = vmatmul.msk.f32.gmra.mxu2 %vm221_vm1, %v490_v50  ;;  %4353 = vmatmul.msk.f32.gmra.mxu3 %vm221_vm1, %v490_v50  ;;  %v744_v50 = vld [vmem:[%s9122_s6 + $0xa8] sm:$0xff] }
 0x171   :  { %785 = vmatpush.msra.mxu1 %v744_v50  ;;  %825 = vmatpush.msra.mxu3 %v744_v50 }
 0x177   :  { %v493_v51 = vpop.f32.mrf.mxu1 }
 0x178   :  { %4346 = vmatmul.msk.f32.gmra.mxu2 %vm221_vm1, %v493_v51  ;;  %4354 = vmatmul.msk.f32.gmra.mxu3 %vm221_vm1, %v493_v51  ;;  %v425_v51 = vpop.f32.mrf.mxu0 }
 0x179   :  { %v426_v62 = vadd.f32 %v425_v51, %v5407_v4 }
 0x17f   :  { %v496_v52 = vpop.f32.mrf.mxu1 }
 0x180   :  { %4347 = vmatmul.msk.f32.gmra.mxu2 %vm221_vm1, %v496_v52  ;;  %4355 = vmatmul.msk.f32.gmra.mxu3 %vm221_vm1, %v496_v52  ;;  %v727_v52 = vld [vmem:[%s9122_s6 + $0x20] sm:$0xff] }
 0x181   :  { %766 = vmatpush.msra.mxu0 %v727_v52  ;;  %806 = vmatpush.msra.mxu2 %v727_v52 }
 0x183   :  { %767 = vmatpush.msra.mxu0 %v726_v13  ;;  %807 = vmatpush.msra.mxu2 %v726_v13 }
 0x185   :  { %768 = vmatpush.msra.mxu0 %v725_v19  ;;  %808 = vmatpush.msra.mxu2 %v725_v19 }
 0x187   :  { %v499_v53 = vpop.f32.mrf.mxu1  ;;  %769 = vmatpush.msra.mxu0 %v724_v21  ;;  %809 = vmatpush.msra.mxu2 %v724_v21 }
 0x188   :  { %4348 = vmatmul.msk.f32.gmra.mxu2 %vm221_vm1, %v499_v53  ;;  %4356 = vmatmul.msk.f32.gmra.mxu3 %vm221_vm1, %v499_v53  ;;  %v743_v53 = vld [vmem:[%s9122_s6 + $0xa0] sm:$0xff] }
 0x189   :  { %786 = vmatpush.msra.mxu1 %v743_v53  ;;  %826 = vmatpush.msra.mxu3 %v743_v53 }
 0x18a   :  { %770 = vmatpush.msra.mxu0 %v723_v23  ;;  %810 = vmatpush.msra.mxu2 %v723_v23  ;;  %v391_v23 = vadd.f32 %v5417_v0, %v5367_v47 }
 0x18b   :  { %787 = vmatpush.msra.mxu1 %v742_v14  ;;  %827 = vmatpush.msra.mxu3 %v742_v14 }
 0x18d   :  { %788 = vmatpush.msra.mxu1 %v741_v20  ;;  %828 = vmatpush.msra.mxu3 %v741_v20 }
 0x18f   :  { %v502_v54 = vpop.f32.mrf.mxu1  ;;  %789 = vmatpush.msra.mxu1 %v740_v25  ;;  %829 = vmatpush.msra.mxu3 %v740_v25 }
 0x190   :  { %4349 = vmatmul.msk.f32.gmra.mxu2 %vm221_vm1, %v502_v54  ;;  %4357 = vmatmul.msk.f32.gmra.mxu3 %vm221_vm1, %v502_v54 }
 0x191   :  { %790 = vmatpush.msra.mxu1 %v739_v26  ;;  %830 = vmatpush.msra.mxu3 %v739_v26 }
 0x197   :  { %v505_v57 = vpop.f32.mrf.mxu1 }
 0x198   :  { %4350 = vmatmul.msk.f32.gmra.mxu2 %vm221_vm1, %v505_v57  ;;  %4358 = vmatmul.msk.f32.gmra.mxu3 %vm221_vm1, %v505_v57 }
 0x1e3   :  { %v5421_v10 = vpop.f32.mrf.mxu2  ;;  %v5423_v11 = vpop.f32.mrf.mxu3 }
 0x1e4   :  { %v5562_v55 = vadd.f32 %v5421_v10, %v370_v29  ;;  %v5565_v61 = vadd.f32 %v5423_v11, %v411_v30  ;;  %v420_v10 = vadd.f32 %v5437_v17, %v5399_v63  ;;  %v382_v11 = vadd.f32 %v5401_v8, %v5361_v44 }
 0x1e6   :  { %v681_v8 = vmul.f32 %v5562_v55, %v5562_v55 }
 0x1eb   :  { %v5433_v15 = vpop.f32.mrf.mxu2  ;;  %v5435_v16 = vpop.f32.mrf.mxu3 }
 0x1ec   :  { %v5553_v59 = vadd.f32 %v5433_v15, %v373_v22  ;;  %v5556_v18 = vadd.f32 %v5435_v16, %v414_v24  ;;  %v428_v15 = vpop.f32.mrf.mxu0  ;;  %v423_v16 = vadd.f32 %v5473_v33, %v5403_v9  ;;  %v682_v9 = vmul.f32 %v5565_v61, %v5565_v61 }
 0x1ed   :  { %v429_v4 = vadd.f32 %v428_v15, %v5413_v5 }
 0x1ee   :  { %v655_v34 = vadd.f32 %v5553_v59, %v5562_v55  ;;  %v668_v37 = vadd.f32 %v5556_v18, %v5565_v61 }
 0x1f3   :  { %v5457_v27 = vpop.f32.mrf.mxu2  ;;  %v5459_v28 = vpop.f32.mrf.mxu3 }
 0x1f4   :  { %v5568_v3 = vadd.f32 %v5457_v27, %v376_v31  ;;  %v5571_v1 = vadd.f32 %v5459_v28, %v417_v58  ;;  %v683_v27 = vmul.f32 %v5553_v59, %v5553_v59  ;;  %v684_v28 = vmul.f32 %v5556_v18, %v5556_v18  ;;  %v431_v13 = vpop.f32.mrf.mxu0 }
 0x1f5   :  { %v432_v58 = vadd.f32 %v431_v13, %v5419_v7 }
 0x1f6   :  { %v685_v17 = vmul.f32 %v5568_v3, %v5568_v3  ;;  %v686_v45 = vmul.f32 %v5571_v1, %v5571_v1  ;;  %v697_v36 = vadd.f32 %v683_v27, %v681_v8  ;;  %v710_v38 = vadd.f32 %v684_v28, %v682_v9 }
 0x1f7   :  { %v656_v42 = vadd.f32 %v655_v34, %v5568_v3  ;;  %v669_v48 = vadd.f32 %v668_v37, %v5571_v1 }
 0x1f8   :  { %v698_v43 = vadd.f32 %v697_v36, %v685_v17  ;;  %v711_v49 = vadd.f32 %v710_v38, %v686_v45 }
 0x1fb   :  { %v5487_v39 = vpop.f32.mrf.mxu2  ;;  %v5489_v40 = vpop.f32.mrf.mxu3 }
 0x1fc   :  { %v5589_v63 = vadd.f32 %v5487_v39, %v379_v12  ;;  %v5592_v44 = vadd.f32 %v5489_v40, %v420_v10 }
 0x1fe   :  { %v687_v39 = vmul.f32 %v5589_v63, %v5589_v63  ;;  %v688_v46 = vmul.f32 %v5592_v44, %v5592_v44 }
 0x200   :  { %v699_v14 = vadd.f32 %v698_v43, %v687_v39  ;;  %v712_v19 = vadd.f32 %v711_v49, %v688_v46 }
 0x203   :  { %v5515_v54 = vpop.f32.mrf.mxu2  ;;  %v5517_v57 = vpop.f32.mrf.mxu3 }
 0x204   :  { %v5606_v32 = vadd.f32 %v5515_v54, %v382_v11  ;;  %v5609_v33 = vadd.f32 %v5517_v57, %v423_v16  ;;  %v657_v54 = vadd.f32 %v656_v42, %v5589_v63  ;;  %v670_v57 = vadd.f32 %v669_v48, %v5592_v44 }
 0x206   :  { %v689_v50 = vmul.f32 %v5606_v32, %v5606_v32  ;;  %v690_v51 = vmul.f32 %v5609_v33, %v5609_v33  ;;  %v658_v22 = vadd.f32 %v657_v54, %v5606_v32  ;;  %v671_v24 = vadd.f32 %v670_v57, %v5609_v33 }
 0x208   :  { %v700_v25 = vadd.f32 %v699_v14, %v689_v50  ;;  %v713_v29 = vadd.f32 %v712_v19, %v690_v51 }
 0x20b   :  { %v589_v56 = vpop.f32.mrf.mxu2  ;;  %v630_v60 = vpop.f32.mrf.mxu3 }
 0x20c   :  { %v5619_v2 = vadd.f32 %v589_v56, %v385_v35  ;;  %v5621_v5 = vadd.f32 %v630_v60, %v426_v62 }
 0x20e   :  { %v691_v20 = vmul.f32 %v5619_v2, %v5619_v2  ;;  %v692_v21 = vmul.f32 %v5621_v5, %v5621_v5  ;;  %v659_v26 = vadd.f32 %v658_v22, %v5619_v2  ;;  %v672_v56 = vadd.f32 %v671_v24, %v5621_v5 }
 0x210   :  { %v701_v60 = vadd.f32 %v700_v25, %v691_v20  ;;  %v714_v12 = vadd.f32 %v713_v29, %v692_v21  ;;  %v855_v25 = vld [vmem:[%s9123_s5] sm:$0xff] }
 0x211   :  { %876 = vmatpush.msrb.mxu0 %v855_v25  ;;  %919 = vmatpush.msrb.mxu1 %v855_v25 }
 0x213   :  { %v592_v40 = vpop.f32.mrf.mxu2  ;;  %v633_v41 = vpop.f32.mrf.mxu3 }
 0x214   :  { %v5629_v52 = vadd.f32 %v592_v40, %v388_v6  ;;  %v5631_v53 = vadd.f32 %v633_v41, %v429_v4 }
 0x216   :  { %v693_v30 = vmul.f32 %v5629_v52, %v5629_v52  ;;  %v694_v31 = vmul.f32 %v5631_v53, %v5631_v53  ;;  %v660_v11 = vadd.f32 %v659_v26, %v5629_v52  ;;  %v673_v16 = vadd.f32 %v672_v56, %v5631_v53 }
 0x218   :  { %v702_v35 = vadd.f32 %v701_v60, %v693_v30  ;;  %v715_v47 = vadd.f32 %v714_v12, %v694_v31  ;;  %v856_v30 = vld [vmem:[%s9123_s5 + $0x8] sm:$0xff]  ;;  %s9290_s5 = sld [smem:[#allocation81_spill]] }
 0x219   :  { %939 = vmatpush.msrb.mxu2 %v856_v30 }
 0x21b   :  { %v595_v10 = vpop.f32.mrf.mxu2  ;;  %v636_v15 = vpop.f32.mrf.mxu3 }
 0x21c   :  { %v5652_v27 = vadd.f32 %v595_v10, %v391_v23  ;;  %v5654_v28 = vadd.f32 %v636_v15, %v432_v58 }
 0x21e   :  { %v661_v0 = vadd.f32 %v660_v11, %v5652_v27  ;;  %v695_v7 = vmul.f32 %v5652_v27, %v5652_v27  ;;  %v674_v62 = vadd.f32 %v673_v16, %v5654_v28  ;;  %v696_v8 = vmul.f32 %v5654_v28, %v5654_v28 }
 0x220   :  { %v662_v9 = vrot.slane %v661_v0, 4  ;;  %v703_v17 = vadd.f32 %v702_v35, %v695_v7  ;;  %v675_v45 = vrot.slane %v674_v62, 4  ;;  %v716_v6 = vadd.f32 %v715_v47, %v696_v8  ;;  %v839_v7 = vld [vmem:[%s9124_s1] sm:$0x1] }
 0x222   :  { %v663_v4 = vadd.f32 %v662_v9, %v661_v0  ;;  %v704_v34 = vrot.slane %v703_v17, 4  ;;  %v676_v36 = vadd.f32 %v675_v45, %v674_v62  ;;  %v717_v37 = vrot.slane %v716_v6, 4  ;;  %v852_v9 = vld [vmem:[%s9125_s29] sm:$0x1]  ;;  %s9288_s29 = sld [smem:[#allocation78_spill]] }
 0x224   :  { %v664_v38 = vrot.slane %v663_v4, 2  ;;  %v705_v39 = vadd.f32 %v704_v34, %v703_v17  ;;  %v677_v46 = vrot.slane %v676_v36, 2  ;;  %v718_v40 = vadd.f32 %v717_v37, %v716_v6 }
 0x226   :  { %v665_v41 = vadd.f32 %v664_v38, %v663_v4  ;;  %v678_v42 = vadd.f32 %v677_v46, %v676_v36  ;;  %v706_v43 = vrot.slane %v705_v39, 2  ;;  %v719_v48 = vrot.slane %v718_v40, 2 }
 0x228   :  { %v666_v49 = vrot.slane %v665_v41, 1  ;;  %v679_v50 = vrot.slane %v678_v42, 1  ;;  %v707_v51 = vadd.f32 %v706_v43, %v705_v39  ;;  %v720_v54 = vadd.f32 %v719_v48, %v718_v40 }
 0x22a   :  { %v667_v57 = vadd.f32 %v666_v49, %v665_v41  ;;  %v680_v13 = vadd.f32 %v679_v50, %v678_v42  ;;  %v708_v14 = vrot.slane %v707_v51, 1  ;;  %v721_v19 = vrot.slane %v720_v54, 1 }
 0x22c   :  { %771 = vmatmul.f32.vlgmr.msra.gmra.mxu0 %v667_v57  ;;  %791 = vmatmul.f32.vlgmr.msra.gmra.mxu1 %v680_v13  ;;  %v709_v20 = vadd.f32 %v708_v14, %v707_v51  ;;  %v722_v21 = vadd.f32 %v721_v19, %v720_v54 }
 0x22d   :  { %896 = vmatpush.msra.mxu0 %v856_v30 }
 0x22e   :  { %811 = vmatmul.f32.vlgmr.msra.gmra.mxu2 %v709_v20  ;;  %831 = vmatmul.f32.vlgmr.msra.gmra.mxu3 %v722_v21 }
 0x2a9   :  { %v772_v22 = vpop.f32.mrf.mxu0  ;;  %v792_v24 = vpop.f32.mrf.mxu1 }
 0x2aa   :  { %v793_v29 = vadd.f32 %v792_v24, %v772_v22 }
 0x2ac   :  { %v835_v31 = vmul.f32 0.00048828125, %v793_v29 }
 0x2ae   :  { %v837_v56 = vmul.f32 %v835_v31, %v835_v31 }
 0x2b1   :  { %v812_v23 = vpop.f32.mrf.mxu2  ;;  %v832_v58 = vpop.f32.mrf.mxu3 }
 0x2b2   :  { %v833_v26 = vadd.f32 %v832_v58, %v812_v23 }
 0x2b4   :  { %v836_v60 = vmul.f32 0.00048828125, %v833_v26 }
 0x2b6   :  { %v838_v12 = vsub.f32 %v836_v60, %v837_v56 }
 0x2b8   :  { %v840_v10 = vadd.f32 1e-05, %v838_v12 }
 0x2ba   :  { %4787 = vrsqrt.f32 %v840_v10  ;;  %vm847_vm3 = vweird.f32 %v840_v10 }
 0x2c0   :  { %v4788_v15 = vpop.eup %4787 }
 0x2c1   :  { %v842_v11 = vmul.f32 %v4788_v15, %v840_v10  ;;  %vm848_vm2 = vweird.f32 %v4788_v15 }
 0x2c2   :  { %vm849_vm4 = vmor %vm847_vm3, %vm848_vm2 }
 0x2c3   :  { %v843_v16 = vmul.f32 %v4788_v15, %v842_v11 }
 0x2c5   :  { %v844_v35 = vmul.f32 0.5, %v843_v16  ;;  %v5733_v16 = vld [vmem:[%s9138_s8 + $0x178] sm:$0xff] }
 0x2c6   :  { %9139 = vst [vmem:[#allocation16_spill] sm:$0xff] %v5733_v16 }
 0x2c7   :  { %v845_v47 = vsub.f32 1.5, %v844_v35 }
 0x2c9   :  { %v846_v0 = vmul.f32 %v4788_v15, %v845_v47  ;;  %v5743_v47 = vld [vmem:[%s9138_s8 + $0x170] sm:$0xff] }
 0x2cb   :  { %v850_v62 = vsel %vm849_vm4, %v4788_v15, %v846_v0 }
 0x2cc   :  { %v851_v8 = vmul.f32 %v850_v62, %v839_v7  ;;  %v5752_v7 = vld [vmem:[%s9138_s8 + $0x168] sm:$0xff] }
 0x2ce   :  { %4359 = vmatmul.msk.f32.vlgmr.msrb.gmra.mxu0 %vm857_vm5, %v851_v8  ;;  %v853_v17 = vmul.f32 %v851_v8, %v835_v31 }
 0x2d0   :  { %v854_v45 = vsub.f32 %v852_v9, %v853_v17  ;;  %v5766_v9 = vld [vmem:[%s9138_s8 + $0x1f8] sm:$0xff]  ;;  %v997_v17 = vld [vmem:[%s9137_s12 + $0x8] sm:$0xff] }
 0x2d1   :  { %9144 = vst [vmem:[#allocation21_spill] sm:$0xff] %v5766_v9 }
 0x2d2   :  { %4361 = vmatmul.msk.f32.vlgmr.msrb.gmra.mxu1 %vm857_vm5, %v854_v45  ;;  %4362 = vmatmul.msk.f32.vlgmr.msrb.gmra.mxu2 %vm857_vm5, %v854_v45  ;;  %v5777_v45 = vld [vmem:[%s9138_s8 + $0x158] sm:$0xff] }
 0x2d3   :  { %9145 = vst [vmem:[#allocation22_spill] sm:$0xff] %v5777_v45 }
 0x2d6   :  { %4360 = vmatmul.msk.f32.vlgmr.msra.gmra.mxu0 %vm857_vm5, %v851_v8  ;;  %v5761_v8 = vld [vmem:[%s9138_s8 + $0x160] sm:$0xff]  ;;  %vm3792_vm5 = vcmask 261120  }
 0x2d7   :  { %9143 = vst [vmem:[#allocation20_spill] sm:$0xff] %v5761_v8 }
 0x34b   :  { %v878_v6 = vpop.f32.mrf.mxu0 }
 0x34c   :  { %v944_v4 = vperm.slane %v878_v6, 0  ;;  %v5782_v6 = vld [vmem:[%s9138_s8 + $0x1f0] sm:$0xff] }
 0x34e   :  { %v960_v37 = vmul.f32 %v944_v4, %v5652_v27  ;;  %v958_v38 = vmul.f32 %v944_v4, %v5629_v52  ;;  %v956_v40 = vmul.f32 %v944_v4, %v5619_v2  ;;  %v954_v42 = vmul.f32 %v944_v4, %v5606_v32 }
 0x34f   :  { %v921_v34 = vpop.f32.mrf.mxu1  ;;  %v952_v57 = vmul.f32 %v944_v4, %v5589_v63  ;;  %v950_v14 = vmul.f32 %v944_v4, %v5568_v3  ;;  %v948_v24 = vmul.f32 %v944_v4, %v5553_v59  ;;  %v946_v29 = vmul.f32 %v944_v4, %v5562_v55  ;;  %v5790_v4 = vld [vmem:[%s9138_s8 + $0x150] sm:$0xff] }
 0x350   :  { %v962_v36 = vperm.slane %v921_v34, 0  ;;  %v5795_v34 = vld [vmem:[%s9138_s8 + $0x1e8] sm:$0xff] }
 0x352   :  { %v978_v39 = vadd.f32 %v962_v36, %v960_v37  ;;  %v976_v46 = vadd.f32 %v962_v36, %v958_v38  ;;  %v974_v49 = vadd.f32 %v962_v36, %v956_v40  ;;  %v972_v54 = vadd.f32 %v962_v36, %v954_v42  ;;  %v5807_v37 = vld [vmem:[%s9138_s8 + $0x1e0] sm:$0xff]  ;;  %v5830_v40 = vld [vmem:[%s9138_s8 + $0x138] sm:$0xff]  ;;  %v5843_v42 = vld [vmem:[%s9138_s8 + $0x130] sm:$0xff] }
 0x353   :  { %v898_v41 = vpop.f32.mrf.mxu0  ;;  %v970_v32 = vadd.f32 %v962_v36, %v952_v57  ;;  %v968_v22 = vadd.f32 %v962_v36, %v950_v14  ;;  %v966_v25 = vadd.f32 %v962_v36, %v948_v24  ;;  %v964_v23 = vadd.f32 %v962_v36, %v946_v29  ;;  %v5802_v36 = vld [vmem:[%s9138_s8 + $0x148] sm:$0xff]  ;;  %v5814_v38 = vld [vmem:[%s9138_s8 + $0x140] sm:$0xff]  ;;  %9147 = vst [vmem:[#allocation24_spill] sm:$0xff] %v5830_v40  ;;  %v5872_v57 = vld [vmem:[%s9138_s8 + $0x1b8] sm:$0xff] }
 0x354   :  { %v945_v43 = vperm.slane %v898_v41, 0  ;;  %v5678_v48 = vmax.f32 %v978_v39, 0.0  ;;  %v5680_v51 = vmax.f32 %v976_v46, 0.0  ;;  %v5689_v19 = vmax.f32 %v974_v49, 0.0  ;;  %9146 = vst [vmem:[#allocation23_spill] sm:$0xff] %v5814_v38  ;;  %v5819_v39 = vld [vmem:[%s9138_s8 + $0x1d8] sm:$0xff] }
 0x355   :  { %v941_v50 = vpop.f32.mrf.mxu2  ;;  %v5716_v56 = vmax.f32 %v966_v25, 0.0  ;;  %v5723_v10 = vmax.f32 %v964_v23, 0.0  ;;  %v998_v46 = vld [vmem:[%s9137_s12 + $0x10] sm:$0xff]  ;;  %v5855_v49 = vld [vmem:[%s9138_s8 + $0x128] sm:$0xff]  ;;  %v5954_v25 = vld [vmem:[%s9138_s8 + $0x60] sm:$0xff] }
 0x356   :  { %9126 = vst [vmem:[#allocation5_spill] sm:$0xff] %v5680_v51  ;;  %v963_v27 = vperm.slane %v941_v50, 0  ;;  %1020 = vmatpush.msrb.mxu3 %v5678_v48  ;;  %v961_v52 = vmul.f32 %v945_v43, %v5654_v28  ;;  %v959_v2 = vmul.f32 %v945_v43, %v5631_v53  ;;  %v957_v13 = vmul.f32 %v945_v43, %v5621_v5  ;;  %v5835_v41 = vld [vmem:[%s9138_s8 + $0x1d0] sm:$0xff]  ;;  %v5860_v50 = vld [vmem:[%s9138_s8 + $0x1c0] sm:$0xff]  ;;  %v5935_v24 = vld [vmem:[%s9138_s8 + $0xe8] sm:$0xff] }
 0x357   :  { %9127 = vst [vmem:[#allocation6_spill] sm:$0xff] %v5689_v19  ;;  %v955_v63 = vmul.f32 %v945_v43, %v5609_v33  ;;  %v5694_v28 = vmax.f32 %v972_v54, 0.0  ;;  %v953_v3 = vmul.f32 %v945_v43, %v5592_v44  ;;  %v5702_v33 = vmax.f32 %v970_v32, 0.0  ;;  %v5867_v54 = vld [vmem:[%s9138_s8 + $0x120] sm:$0xff]  ;;  %v5898_v32 = vld [vmem:[%s9138_s8 + $0x1b0] sm:$0xff] }
 0x358   :  { %1021 = vmatpush.msrb.mxu3 %v5680_v51  ;;  %v979_v20 = vadd.f32 %v963_v27, %v961_v52  ;;  %v977_v21 = vadd.f32 %v963_v27, %v959_v2  ;;  %v975_v5 = vadd.f32 %v963_v27, %v957_v13  ;;  %v951_v31 = vmul.f32 %v945_v43, %v5571_v1  ;;  %v999_v52 = vld [vmem:[%s9137_s12 + $0x18] sm:$0x3f]  ;;  %v5906_v14 = vld [vmem:[%s9138_s8 + $0x70] sm:$0xff]  ;;  %v5959_v29 = vld [vmem:[%s9138_s8 + $0x100] sm:$0xff] }
 0x359   :  { %9128 = vst [vmem:[#allocation7_spill] sm:$0xff] %v5694_v28  ;;  %v973_v59 = vadd.f32 %v963_v27, %v955_v63  ;;  %v5709_v44 = vmax.f32 %v968_v22, 0.0  ;;  %v971_v55 = vadd.f32 %v963_v27, %v953_v3  ;;  %v949_v26 = vmul.f32 %v945_v43, %v5556_v18  ;;  %v996_v18 = vld [vmem:[%s9137_s12] sm:$0xff]  ;;  %v5887_v2 = vld [vmem:[%s9138_s8 + $0xf8] sm:$0xff]  ;;  %v5922_v63 = vld [vmem:[%s9138_s8 + $0x1a8] sm:$0xff] }
 0x35a   :  { %1022 = vmatpush.msrb.mxu3 %v5689_v19  ;;  %v5696_v53 = vmax.f32 %v979_v20, 0.0  ;;  %9129 = vst [vmem:[#allocation8_spill] sm:$0xff] %v5702_v33  ;;  %v5704_v30 = vmax.f32 %v977_v21, 0.0  ;;  %v5711_v58 = vmax.f32 %v975_v5, 0.0  ;;  %v969_v1 = vadd.f32 %v963_v27, %v951_v31  ;;  %v5893_v13 = vld [vmem:[%s9138_s8 + $0x118] sm:$0xff]  ;;  %v5911_v20 = vld [vmem:[%s9138_s8 + $0xf0] sm:$0xff]  ;;  %1131 = vmatpush.msra.mxu2 %v5887_v2 }
 0x35b   :  { %9131 = vst [vmem:[#allocation10_spill] sm:$0xff] %v5709_v44  ;;  %v5718_v60 = vmax.f32 %v973_v59, 0.0  ;;  %v947_v12 = vmul.f32 %v945_v43, %v5565_v61  ;;  %v5725_v15 = vmax.f32 %v971_v55, 0.0  ;;  %v967_v11 = vadd.f32 %v963_v27, %v949_v26  ;;  %v5848_v43 = vld [vmem:[%s9138_s8 + $0x1c8] sm:$0xff]  ;;  %v5917_v21 = vld [vmem:[%s9138_s8 + $0x110] sm:$0xff]  ;;  %v5945_v3 = vld [vmem:[%s9138_s8 + $0x1a0] sm:$0xff] }
 0x35c   :  { %1023 = vmatpush.msrb.mxu3 %v5694_v28  ;;  %1049 = vmatpush.msrb.mxu0 %v5696_v53  ;;  %9130 = vst [vmem:[#allocation9_spill] sm:$0xff] %v5704_v30  ;;  %v5737_v61 = vmax.f32 %v969_v1, 0.0  ;;  %v5930_v22 = vld [vmem:[%s9138_s8 + $0x68] sm:$0xff]  ;;  %v5964_v59 = vld [vmem:[%s9138_s8 + $0x198] sm:$0xff]  ;;  %v5973_v31 = vld [vmem:[%s9138_s8 + $0xe0] sm:$0xff] }
 0x35d   :  { %9132 = vst [vmem:[#allocation11_spill] sm:$0xff] %v5711_v58  ;;  %v965_v35 = vadd.f32 %v963_v27, %v947_v12  ;;  %v5747_v0 = vmax.f32 %v967_v11, 0.0  ;;  %v5877_v27 = vld [vmem:[%s9138_s8 + $0x78] sm:$0xff]  ;;  %v5940_v5 = vld [vmem:[%s9138_s8 + $0x108] sm:$0xff]  ;;  %1132 = vmatpush.msra.mxu2 %v5911_v20  ;;  %v5979_v23 = vld [vmem:[%s9138_s8 + $0x190] sm:$0xff] }
 0x35e   :  { %1024 = vmatpush.msrb.mxu3 %v5702_v33  ;;  %1050 = vmatpush.msrb.mxu0 %v5704_v30  ;;  %9133 = vst [vmem:[#allocation12_spill] sm:$0xff] %v5716_v56  ;;  %v5985_v55 = vld [vmem:[%s9138_s8 + $0x58] sm:$0xff]  ;;  %v5998_v1 = vld [vmem:[%s9138_s8 + $0x188] sm:$0xff]  ;;  %v6004_v12 = vld [vmem:[%s9138_s8 + $0x50] sm:$0xff] }
 0x35f   :  { %9134 = vst [vmem:[#allocation13_spill] sm:$0xff] %v5718_v60  ;;  %v5756_v62 = vmax.f32 %v965_v35, 0.0  ;;  %1102 = vmatpush.msra.mxu1 %v5877_v27  ;;  %1133 = vmatpush.msra.mxu2 %v5935_v24  ;;  %v5992_v26 = vld [vmem:[%s9138_s8 + $0xd8] sm:$0xff]  ;;  %v6017_v11 = vld [vmem:[%s9138_s8 + $0x180] sm:$0xff]  ;;  %v6023_v35 = vld [vmem:[%s9138_s8 + $0x48] sm:$0xff] }
 0x360   :  { %1025 = vmatpush.msrb.mxu3 %v5709_v44  ;;  %1051 = vmatpush.msrb.mxu0 %v5711_v58  ;;  %9135 = vst [vmem:[#allocation14_spill] sm:$0xff] %v5723_v10 }
 0x361   :  { %9136 = vst [vmem:[#allocation15_spill] sm:$0xff] %v5725_v15  ;;  %1103 = vmatpush.msra.mxu1 %v5906_v14  ;;  %1134 = vmatpush.msra.mxu2 %v5973_v31 }
 0x362   :  { %1026 = vmatpush.msrb.mxu3 %v5716_v56  ;;  %1052 = vmatpush.msrb.mxu0 %v5718_v60  ;;  %9140 = vst [vmem:[#allocation17_spill] sm:$0xff] %v5737_v61 }
 0x363   :  { %9141 = vst [vmem:[#allocation18_spill] sm:$0xff] %v5747_v0  ;;  %1104 = vmatpush.msra.mxu1 %v5930_v22  ;;  %1135 = vmatpush.msra.mxu2 %v5992_v26 }
 0x364   :  { %1027 = vmatpush.msrb.mxu3 %v5723_v10  ;;  %1053 = vmatpush.msrb.mxu0 %v5725_v15  ;;  %9142 = vst [vmem:[#allocation19_spill] sm:$0xff] %v5756_v62 }
 0x365   :  { %4363 = vmatmul.msk.f32.vlgmr.msrb.gmra.mxu3 %vm131_vm0, %v996_v18  ;;  %9148 = vst [vmem:[#allocation25_spill] sm:$0xff] %v5893_v13  ;;  %1105 = vmatpush.msra.mxu1 %v5954_v25 }
 0x366   :  { %1193 = vmatpush.msra.mxu3 %v5733_v16  ;;  %1054 = vmatpush.msrb.mxu0 %v5737_v61  ;;  %9149 = vst [vmem:[#allocation26_spill] sm:$0xff] %v5917_v21 }
 0x367   :  { %9150 = vst [vmem:[#allocation27_spill] sm:$0xff] %v5940_v5  ;;  %1106 = vmatpush.msra.mxu1 %v5985_v55 }
 0x368   :  { %1194 = vmatpush.msra.mxu3 %v5743_v47  ;;  %1055 = vmatpush.msrb.mxu0 %v5747_v0  ;;  %9151 = vst [vmem:[#allocation28_spill] sm:$0xff] %v5959_v29 }
 0x369   :  { %9152 = vst [vmem:[#allocation29_spill] sm:$0xff] %v5998_v1  ;;  %1107 = vmatpush.msra.mxu1 %v6004_v12 }
 0x36a   :  { %1195 = vmatpush.msra.mxu3 %v5752_v7  ;;  %1056 = vmatpush.msrb.mxu0 %v5756_v62  ;;  %9153 = vst [vmem:[#allocation30_spill] sm:$0xff] %v6017_v11 }
 0x36b   :  { %4367 = vmatmul.msk.f32.vlgmr.msrb.gmra.mxu0 %vm131_vm0, %v996_v18  ;;  %v6011_v18 = vld [vmem:[%s9138_s8 + $0xd0] sm:$0xff]  ;;  %1108 = vmatpush.msra.mxu1 %v6023_v35 }
 0x36c   :  { %1196 = vmatpush.msra.mxu3 %v5761_v8  ;;  %1222 = vmatpush.msra.mxu0 %v5766_v9 }
 0x36d   :  { %4364 = vmatmul.msk.f32.gmra.mxu3 %vm131_vm0, %v997_v17  ;;  %1136 = vmatpush.msra.mxu2 %v6011_v18 }
 0x36e   :  { %1197 = vmatpush.msra.mxu3 %v5777_v45  ;;  %1223 = vmatpush.msra.mxu0 %v5782_v6 }
 0x370   :  { %1198 = vmatpush.msra.mxu3 %v5790_v4  ;;  %1224 = vmatpush.msra.mxu0 %v5795_v34 }
 0x372   :  { %1199 = vmatpush.msra.mxu3 %v5802_v36  ;;  %1225 = vmatpush.msra.mxu0 %v5807_v37 }
 0x373   :  { %4368 = vmatmul.msk.f32.gmra.mxu0 %vm131_vm0, %v997_v17  ;;  %v6032_v17 = vld [vmem:[%s9138_s8 + $0xc8] sm:$0xff] }
 0x374   :  { %1200 = vmatpush.msra.mxu3 %v5814_v38  ;;  %1226 = vmatpush.msra.mxu0 %v5819_v39 }
 0x375   :  { %4365 = vmatmul.msk.f32.gmra.mxu3 %vm131_vm0, %v998_v46  ;;  %1137 = vmatpush.msra.mxu2 %v6032_v17 }
 0x376   :  { %1201 = vmatpush.msra.mxu3 %v5830_v40  ;;  %1227 = vmatpush.msra.mxu0 %v5835_v41 }
 0x378   :  { %1202 = vmatpush.msra.mxu3 %v5843_v42  ;;  %1228 = vmatpush.msra.mxu0 %v5848_v43 }
 0x37a   :  { %1203 = vmatpush.msra.mxu3 %v5855_v49  ;;  %1229 = vmatpush.msra.mxu0 %v5860_v50 }
 0x37b   :  { %4369 = vmatmul.msk.f32.gmra.mxu0 %vm131_vm0, %v998_v46  ;;  %v6037_v46 = vld [vmem:[%s9138_s8 + $0x40] sm:$0xff] }
 0x37c   :  { %1204 = vmatpush.msra.mxu3 %v5867_v54  ;;  %1230 = vmatpush.msra.mxu0 %v5872_v57 }
 0x37d   :  { %4366 = vmatmul.msk.f32.gmra.mxu3 %vm131_vm0, %v999_v52  ;;  %1109 = vmatpush.msra.mxu1 %v6037_v46 }
 0x37e   :  { %1205 = vmatpush.msra.mxu3 %v5893_v13  ;;  %1231 = vmatpush.msra.mxu0 %v5898_v32 }
 0x380   :  { %1206 = vmatpush.msra.mxu3 %v5917_v21  ;;  %1232 = vmatpush.msra.mxu0 %v5922_v63 }
 0x382   :  { %1207 = vmatpush.msra.mxu3 %v5940_v5  ;;  %1233 = vmatpush.msra.mxu0 %v5945_v3 }
 0x383   :  { %4370 = vmatmul.msk.f32.gmra.mxu0 %vm131_vm0, %v999_v52  ;;  %v6046_v52 = vld [vmem:[%s9138_s8 + $0xc0] sm:$0xff] }
 0x384   :  { %1208 = vmatpush.msra.mxu3 %v5959_v29  ;;  %1234 = vmatpush.msra.mxu0 %v5964_v59 }
 0x385   :  { %1138 = vmatpush.msra.mxu2 %v6046_v52 }
 0x386   :  { %1375 = vmatpush.msrb.mxu3 %v5678_v48  ;;  %1235 = vmatpush.msra.mxu0 %v5979_v23 }
 0x388   :  { %1376 = vmatpush.msrb.mxu3 %v5680_v51  ;;  %1236 = vmatpush.msra.mxu0 %v5998_v1  ;;  %v6065_v51 = vld [vmem:[%s9138_s8 + $0x30] sm:$0xff] }
 0x38a   :  { %1377 = vmatpush.msrb.mxu3 %v5689_v19  ;;  %1237 = vmatpush.msra.mxu0 %v6017_v11  ;;  %v6051_v19 = vld [vmem:[%s9138_s8 + $0x38] sm:$0xff] }
 0x38b   :  { %1110 = vmatpush.msra.mxu1 %v6051_v19 }
 0x38c   :  { %1378 = vmatpush.msrb.mxu3 %v5694_v28  ;;  %1404 = vmatpush.msrb.mxu0 %v5696_v53  ;;  %v6060_v28 = vld [vmem:[%s9138_s8 + $0xb8] sm:$0xff] }
 0x38d   :  { %1139 = vmatpush.msra.mxu2 %v6060_v28  ;;  %1111 = vmatpush.msra.mxu1 %v6065_v51 }
 0x38e   :  { %1379 = vmatpush.msrb.mxu3 %v5702_v33  ;;  %1405 = vmatpush.msrb.mxu0 %v5704_v30  ;;  %v6074_v33 = vld [vmem:[%s9138_s8 + $0xb0] sm:$0xff]  ;;  %v6079_v30 = vld [vmem:[%s9138_s8 + $0x28] sm:$0xff] }
 0x38f   :  { %1140 = vmatpush.msra.mxu2 %v6074_v33  ;;  %1112 = vmatpush.msra.mxu1 %v6079_v30 }
 0x390   :  { %1380 = vmatpush.msrb.mxu3 %v5709_v44  ;;  %1406 = vmatpush.msrb.mxu0 %v5711_v58  ;;  %v6088_v44 = vld [vmem:[%s9138_s8 + $0xa8] sm:$0xff]  ;;  %v6093_v58 = vld [vmem:[%s9138_s8 + $0x20] sm:$0xff] }
 0x391   :  { %9154 = vst [vmem:[#allocation31_spill] sm:$0xff] %v6093_v58  ;;  %1141 = vmatpush.msra.mxu2 %v6088_v44  ;;  %1113 = vmatpush.msra.mxu1 %v6093_v58  ;;  %v6133_v58 = vld [vmem:[%s9138_s8 + $0x8] sm:$0xff] }
 0x392   :  { %1381 = vmatpush.msrb.mxu3 %v5716_v56  ;;  %1407 = vmatpush.msrb.mxu0 %v5718_v60  ;;  %v6102_v56 = vld [vmem:[%s9138_s8 + $0xa0] sm:$0xff]  ;;  %v6107_v60 = vld [vmem:[%s9138_s8 + $0x18] sm:$0xff]  ;;  %9158 = vst [vmem:[#allocation35_spill] sm:$0xff] %v6133_v58 }
 0x393   :  { %9155 = vst [vmem:[#allocation32_spill] sm:$0xff] %v6107_v60  ;;  %1142 = vmatpush.msra.mxu2 %v6102_v56  ;;  %1114 = vmatpush.msra.mxu1 %v6107_v60  ;;  %v6149_v60 = vld [vmem:[%s9138_s8] sm:$0xff] }
 0x394   :  { %1382 = vmatpush.msrb.mxu3 %v5723_v10  ;;  %1408 = vmatpush.msrb.mxu0 %v5725_v15  ;;  %v6115_v10 = vld [vmem:[%s9138_s8 + $0x98] sm:$0xff]  ;;  %v6120_v15 = vld [vmem:[%s9138_s8 + $0x10] sm:$0xff]  ;;  %9160 = vst [vmem:[#allocation37_spill] sm:$0xff] %v6149_v60 }
 0x395   :  { %9156 = vst [vmem:[#allocation33_spill] sm:$0xff] %v6120_v15  ;;  %1143 = vmatpush.msra.mxu2 %v6115_v10  ;;  %1115 = vmatpush.msra.mxu1 %v6120_v15 }
 0x396   :  { %1409 = vmatpush.msrb.mxu0 %v5737_v61  ;;  %v6128_v61 = vld [vmem:[%s9138_s8 + $0x90] sm:$0xff] }
 0x397   :  { %9157 = vst [vmem:[#allocation34_spill] sm:$0xff] %v6128_v61  ;;  %1144 = vmatpush.msra.mxu2 %v6128_v61  ;;  %1116 = vmatpush.msra.mxu1 %v6133_v58  ;;  %v6161_v58 = vld [vmem:[%s9138_s8 + $0x278] sm:$0xff] }
 0x398   :  { %1410 = vmatpush.msrb.mxu0 %v5747_v0  ;;  %v6141_v0 = vld [vmem:[%s9138_s8 + $0x88] sm:$0xff]  ;;  %9162 = vst [vmem:[#allocation39_spill] sm:$0xff] %v6161_v58 }
 0x399   :  { %9159 = vst [vmem:[#allocation36_spill] sm:$0xff] %v6141_v0  ;;  %1145 = vmatpush.msra.mxu2 %v6141_v0  ;;  %1117 = vmatpush.msra.mxu1 %v6149_v60  ;;  %v6166_v0 = vld [vmem:[%s9138_s8 + $0x2f8] sm:$0xff]  ;;  %v6173_v60 = vld [vmem:[%s9138_s8 + $0x270] sm:$0xff] }
 0x39a   :  { %1411 = vmatpush.msrb.mxu0 %v5756_v62  ;;  %v6154_v62 = vld [vmem:[%s9138_s8 + $0x80] sm:$0xff]  ;;  %9163 = vst [vmem:[#allocation40_spill] sm:$0xff] %v6166_v0 }
 0x39b   :  { %9161 = vst [vmem:[#allocation38_spill] sm:$0xff] %v6154_v62  ;;  %1146 = vmatpush.msra.mxu2 %v6154_v62  ;;  %1288 = vmatpush.msrb.mxu1 %v6161_v58  ;;  %v6178_v62 = vld [vmem:[%s9138_s8 + $0x2f0] sm:$0xff]  ;;  %v6185_v58 = vld [vmem:[%s9138_s8 + $0x268] sm:$0xff] }
 0x39c   :  { %9164 = vst [vmem:[#allocation41_spill] sm:$0xff] %v6173_v60 }
 0x39d   :  { %1317 = vmatpush.msrb.mxu2 %v6166_v0  ;;  %9165 = vst [vmem:[#allocation42_spill] sm:$0xff] %v6178_v62  ;;  %1289 = vmatpush.msrb.mxu1 %v6173_v60  ;;  %v6190_v0 = vld [vmem:[%s9138_s8 + $0x2e8] sm:$0xff]  ;;  %v6197_v60 = vld [vmem:[%s9138_s8 + $0x260] sm:$0xff] }
 0x39e   :  { %9166 = vst [vmem:[#allocation43_spill] sm:$0xff] %v6185_v58 }
 0x39f   :  { %1318 = vmatpush.msrb.mxu2 %v6178_v62  ;;  %9167 = vst [vmem:[#allocation44_spill] sm:$0xff] %v6190_v0  ;;  %1290 = vmatpush.msrb.mxu1 %v6185_v58  ;;  %v6202_v62 = vld [vmem:[%s9138_s8 + $0x2e0] sm:$0xff]  ;;  %v6209_v58 = vld [vmem:[%s9138_s8 + $0x258] sm:$0xff] }
 0x3a0   :  { %9168 = vst [vmem:[#allocation45_spill] sm:$0xff] %v6197_v60 }
 0x3a1   :  { %1319 = vmatpush.msrb.mxu2 %v6190_v0  ;;  %9169 = vst [vmem:[#allocation46_spill] sm:$0xff] %v6202_v62  ;;  %1291 = vmatpush.msrb.mxu1 %v6197_v60  ;;  %v6214_v0 = vld [vmem:[%s9138_s8 + $0x2d8] sm:$0xff]  ;;  %v6221_v60 = vld [vmem:[%s9138_s8 + $0x250] sm:$0xff] }
 0x3a2   :  { %9170 = vst [vmem:[#allocation47_spill] sm:$0xff] %v6209_v58 }
 0x3a3   :  { %1320 = vmatpush.msrb.mxu2 %v6202_v62  ;;  %9171 = vst [vmem:[#allocation48_spill] sm:$0xff] %v6214_v0  ;;  %1292 = vmatpush.msrb.mxu1 %v6209_v58  ;;  %v6226_v62 = vld [vmem:[%s9138_s8 + $0x2d0] sm:$0xff]  ;;  %v6233_v58 = vld [vmem:[%s9138_s8 + $0x248] sm:$0xff] }
 0x3a4   :  { %9172 = vst [vmem:[#allocation49_spill] sm:$0xff] %v6221_v60 }
 0x3a5   :  { %1321 = vmatpush.msrb.mxu2 %v6214_v0  ;;  %9173 = vst [vmem:[#allocation50_spill] sm:$0xff] %v6226_v62  ;;  %1293 = vmatpush.msrb.mxu1 %v6221_v60  ;;  %v6238_v0 = vld [vmem:[%s9138_s8 + $0x2c8] sm:$0xff]  ;;  %v6245_v60 = vld [vmem:[%s9138_s8 + $0x240] sm:$0xff] }
 0x3a6   :  { %9174 = vst [vmem:[#allocation51_spill] sm:$0xff] %v6233_v58 }
 0x3a7   :  { %1322 = vmatpush.msrb.mxu2 %v6226_v62  ;;  %9175 = vst [vmem:[#allocation52_spill] sm:$0xff] %v6238_v0  ;;  %1294 = vmatpush.msrb.mxu1 %v6233_v58  ;;  %v6250_v62 = vld [vmem:[%s9138_s8 + $0x2c0] sm:$0xff]  ;;  %v6257_v58 = vld [vmem:[%s9138_s8 + $0x238] sm:$0xff] }
 0x3a8   :  { %9176 = vst [vmem:[#allocation53_spill] sm:$0xff] %v6245_v60 }
 0x3a9   :  { %1323 = vmatpush.msrb.mxu2 %v6238_v0  ;;  %9177 = vst [vmem:[#allocation54_spill] sm:$0xff] %v6250_v62  ;;  %1295 = vmatpush.msrb.mxu1 %v6245_v60  ;;  %v6262_v0 = vld [vmem:[%s9138_s8 + $0x2b8] sm:$0xff]  ;;  %v6269_v60 = vld [vmem:[%s9138_s8 + $0x230] sm:$0xff] }
 0x3aa   :  { %9178 = vst [vmem:[#allocation55_spill] sm:$0xff] %v6257_v58 }
 0x3ab   :  { %1324 = vmatpush.msrb.mxu2 %v6250_v62  ;;  %9179 = vst [vmem:[#allocation56_spill] sm:$0xff] %v6262_v0  ;;  %1296 = vmatpush.msrb.mxu1 %v6257_v58  ;;  %v6274_v62 = vld [vmem:[%s9138_s8 + $0x2b0] sm:$0xff]  ;;  %v6281_v58 = vld [vmem:[%s9138_s8 + $0x228] sm:$0xff] }
 0x3ac   :  { %9180 = vst [vmem:[#allocation57_spill] sm:$0xff] %v6269_v60 }
 0x3ad   :  { %1325 = vmatpush.msrb.mxu2 %v6262_v0  ;;  %9181 = vst [vmem:[#allocation58_spill] sm:$0xff] %v6274_v62  ;;  %1297 = vmatpush.msrb.mxu1 %v6269_v60  ;;  %v6286_v0 = vld [vmem:[%s9138_s8 + $0x2a8] sm:$0xff]  ;;  %v6293_v60 = vld [vmem:[%s9138_s8 + $0x220] sm:$0xff] }
 0x3ae   :  { %9182 = vst [vmem:[#allocation59_spill] sm:$0xff] %v6281_v58 }
 0x3af   :  { %1326 = vmatpush.msrb.mxu2 %v6274_v62  ;;  %9183 = vst [vmem:[#allocation60_spill] sm:$0xff] %v6286_v0  ;;  %1298 = vmatpush.msrb.mxu1 %v6281_v58  ;;  %v6298_v62 = vld [vmem:[%s9138_s8 + $0x2a0] sm:$0xff]  ;;  %v6305_v58 = vld [vmem:[%s9138_s8 + $0x218] sm:$0xff] }
 0x3b0   :  { %9184 = vst [vmem:[#allocation61_spill] sm:$0xff] %v6293_v60 }
 0x3b1   :  { %1327 = vmatpush.msrb.mxu2 %v6286_v0  ;;  %9185 = vst [vmem:[#allocation62_spill] sm:$0xff] %v6298_v62  ;;  %1299 = vmatpush.msrb.mxu1 %v6293_v60  ;;  %v6310_v0 = vld [vmem:[%s9138_s8 + $0x298] sm:$0xff]  ;;  %v6317_v60 = vld [vmem:[%s9138_s8 + $0x210] sm:$0xff] }
 0x3b2   :  { %9186 = vst [vmem:[#allocation63_spill] sm:$0xff] %v6305_v58 }
 0x3b3   :  { %1328 = vmatpush.msrb.mxu2 %v6298_v62  ;;  %9187 = vst [vmem:[#allocation64_spill] sm:$0xff] %v6310_v0  ;;  %1300 = vmatpush.msrb.mxu1 %v6305_v58  ;;  %v6322_v62 = vld [vmem:[%s9138_s8 + $0x290] sm:$0xff]  ;;  %v6335_v58 = vld [vmem:[%s9138_s8 + $0x208] sm:$0xff] }
 0x3b4   :  { %9188 = vst [vmem:[#allocation65_spill] sm:$0xff] %v6317_v60 }
 0x3b5   :  { %1329 = vmatpush.msrb.mxu2 %v6310_v0  ;;  %9189 = vst [vmem:[#allocation66_spill] sm:$0xff] %v6322_v62  ;;  %1301 = vmatpush.msrb.mxu1 %v6317_v60  ;;  %v6340_v0 = vld [vmem:[%s9138_s8 + $0x288] sm:$0xff]  ;;  %v6349_v60 = vld [vmem:[%s9138_s8 + $0x200] sm:$0xff] }
 0x3b6   :  { %9190 = vst [vmem:[#allocation67_spill] sm:$0xff] %v6335_v58 }
 0x3b7   :  { %1330 = vmatpush.msrb.mxu2 %v6322_v62  ;;  %9191 = vst [vmem:[#allocation68_spill] sm:$0xff] %v6340_v0  ;;  %v6354_v62 = vld [vmem:[%s9138_s8 + $0x280] sm:$0xff]  ;;  %1302 = vmatpush.msrb.mxu1 %v6335_v58 }
 0x3b9   :  { %1331 = vmatpush.msrb.mxu2 %v6340_v0  ;;  %1303 = vmatpush.msrb.mxu1 %v6349_v60 }
 0x3bb   :  { %1332 = vmatpush.msrb.mxu2 %v6354_v62 }
 0x3e8   :  { %v6324_v15 = vpop.f32.mrf.mxu3  ;;  %v6326_v61 = vpop.f32.mrf.mxu0 }
 0x3e9   :  { %1118 = vmatmul.f32.vlgmr.msra.gmra.mxu1 %v6324_v15  ;;  %1147 = vmatmul.f32.vlgmr.msra.gmra.mxu2 %v6326_v61 }
 0x3ea   :  { %1209 = vmatmul.f32.vlgmr.msra.gmra.mxu3 %v6324_v15  ;;  %1238 = vmatmul.f32.vlgmr.msra.gmra.mxu0 %v6326_v61 }
 0x3eb   :  { %1487 = vmatpush.msra.mxu3 %v5733_v16  ;;  %1516 = vmatpush.msra.mxu0 %v5766_v9 }
 0x3ec   :  { %1454 = vmatpush.msra.mxu2 %v5887_v2  ;;  %1425 = vmatpush.msra.mxu1 %v5877_v27 }
 0x3ed   :  { %1488 = vmatpush.msra.mxu3 %v5743_v47  ;;  %1517 = vmatpush.msra.mxu0 %v5782_v6 }
 0x3ee   :  { %1455 = vmatpush.msra.mxu2 %v5911_v20  ;;  %1426 = vmatpush.msra.mxu1 %v5906_v14 }
 0x3ef   :  { %1489 = vmatpush.msra.mxu3 %v5752_v7  ;;  %1518 = vmatpush.msra.mxu0 %v5795_v34 }
 0x3f0   :  { %v6364_v16 = vpop.f32.mrf.mxu3  ;;  %v6366_v9 = vpop.f32.mrf.mxu0  ;;  %1456 = vmatpush.msra.mxu2 %v5935_v24  ;;  %1427 = vmatpush.msra.mxu1 %v5930_v22 }
 0x3f1   :  { %1490 = vmatpush.msra.mxu3 %v5761_v8  ;;  %1519 = vmatpush.msra.mxu0 %v5807_v37 }
 0x3f2   :  { %1121 = vmatmul.f32.gmra.mxu1 %v6364_v16  ;;  %1150 = vmatmul.f32.gmra.mxu2 %v6366_v9 }
 0x3f3   :  { %1212 = vmatmul.f32.gmra.mxu3 %v6364_v16  ;;  %1241 = vmatmul.f32.gmra.mxu0 %v6366_v9 }
 0x3f4   :  { %1491 = vmatpush.msra.mxu3 %v5777_v45  ;;  %1520 = vmatpush.msra.mxu0 %v5819_v39 }
 0x3f5   :  { %1457 = vmatpush.msra.mxu2 %v5973_v31  ;;  %1428 = vmatpush.msra.mxu1 %v5954_v25 }
 0x3f6   :  { %1492 = vmatpush.msra.mxu3 %v5790_v4  ;;  %1521 = vmatpush.msra.mxu0 %v5835_v41 }
 0x3f7   :  { %1458 = vmatpush.msra.mxu2 %v5992_v26  ;;  %1429 = vmatpush.msra.mxu1 %v5985_v55 }
 0x3f8   :  { %1493 = vmatpush.msra.mxu3 %v5802_v36  ;;  %1522 = vmatpush.msra.mxu0 %v5848_v43  ;;  %v6386_v8 = vpop.f32.mrf.mxu3  ;;  %v6388_v45 = vpop.f32.mrf.mxu0 }
 0x3f9   :  { %1459 = vmatpush.msra.mxu2 %v6011_v18  ;;  %1430 = vmatpush.msra.mxu1 %v6004_v12 }
 0x3fa   :  { %1494 = vmatpush.msra.mxu3 %v5814_v38  ;;  %1523 = vmatpush.msra.mxu0 %v5860_v50 }
 0x3fb   :  { %1124 = vmatmul.f32.gmra.mxu1 %v6386_v8  ;;  %1153 = vmatmul.f32.gmra.mxu2 %v6388_v45 }
 0x3fc   :  { %1215 = vmatmul.f32.gmra.mxu3 %v6386_v8  ;;  %1244 = vmatmul.f32.gmra.mxu0 %v6388_v45 }
 0x3fd   :  { %1495 = vmatpush.msra.mxu3 %v5830_v40  ;;  %1524 = vmatpush.msra.mxu0 %v5872_v57 }
 0x3fe   :  { %1460 = vmatpush.msra.mxu2 %v6032_v17  ;;  %1431 = vmatpush.msra.mxu1 %v6023_v35 }
 0x3ff   :  { %1496 = vmatpush.msra.mxu3 %v5843_v42  ;;  %1525 = vmatpush.msra.mxu0 %v5898_v32 }
 0x400   :  { %v6408_v38 = vpop.f32.mrf.mxu3  ;;  %v6410_v40 = vpop.f32.mrf.mxu0  ;;  %1461 = vmatpush.msra.mxu2 %v6046_v52  ;;  %1432 = vmatpush.msra.mxu1 %v6037_v46 }
 0x401   :  { %1497 = vmatpush.msra.mxu3 %v5855_v49  ;;  %1526 = vmatpush.msra.mxu0 %v5922_v63 }
 0x402   :  { %1462 = vmatpush.msra.mxu2 %v6060_v28  ;;  %1433 = vmatpush.msra.mxu1 %v6051_v19 }
 0x403   :  { %1498 = vmatpush.msra.mxu3 %v5867_v54  ;;  %1527 = vmatpush.msra.mxu0 %v5945_v3 }
 0x404   :  { %1127 = vmatmul.f32.gmra.mxu1 %v6408_v38  ;;  %1156 = vmatmul.f32.gmra.mxu2 %v6410_v40 }
 0x405   :  { %1218 = vmatmul.f32.gmra.mxu3 %v6408_v38  ;;  %1247 = vmatmul.f32.gmra.mxu0 %v6410_v40 }
 0x406   :  { %1499 = vmatpush.msra.mxu3 %v5893_v13  ;;  %1528 = vmatpush.msra.mxu0 %v5964_v59  ;;  %v4435_v13 = vld [vmem:[%s9137_s12 + $0x20] sm:$0xff] }
 0x407   :  { %1463 = vmatpush.msra.mxu2 %v6074_v33  ;;  %1434 = vmatpush.msra.mxu1 %v6065_v51 }
 0x408   :  { %1500 = vmatpush.msra.mxu3 %v5917_v21  ;;  %1529 = vmatpush.msra.mxu0 %v5979_v23  ;;  %v9196_v21 = vld [vmem:[#allocation11_spill] sm:$0xff] }
 0x409   :  { %1464 = vmatpush.msra.mxu2 %v6088_v44  ;;  %1435 = vmatpush.msra.mxu1 %v6079_v30 }
 0x40a   :  { %1501 = vmatpush.msra.mxu3 %v5940_v5  ;;  %1530 = vmatpush.msra.mxu0 %v5998_v1  ;;  %v9192_v5 = vld [vmem:[#allocation5_spill] sm:$0xff]  ;;  %v9209_v1 = vld [vmem:[#allocation18_spill] sm:$0xff] }
 0x40b   :  { %1465 = vmatpush.msra.mxu2 %v6102_v56 }
 0x40c   :  { %1502 = vmatpush.msra.mxu3 %v5959_v29  ;;  %1531 = vmatpush.msra.mxu0 %v6017_v11  ;;  %v9193_v29 = vld [vmem:[#allocation9_spill] sm:$0xff] }
 0x40d   :  { %1304 = vmatmul.f32.vlgmr.msrb.gmra.mxu1 %v6324_v15  ;;  %1333 = vmatmul.f32.vlgmr.msrb.gmra.mxu2 %v6326_v61  ;;  %v9194_v15 = vld [vmem:[#allocation31_spill] sm:$0xff]  ;;  %v9195_v61 = vld [vmem:[#allocation6_spill] sm:$0xff]  ;;  %v9203_v11 = vld [vmem:[#allocation33_spill] sm:$0xff] }
 0x40e   :  { %4439 = vmatmul.msk.f32.vlgmr.msrb.gmra.mxu3 %vm131_vm0, %v4435_v13  ;;  %4443 = vmatmul.msk.f32.vlgmr.msrb.gmra.mxu0 %vm131_vm0, %v4435_v13  ;;  %v9198_v13 = vld [vmem:[#allocation7_spill] sm:$0xff] }
 0x40f   :  { %1636 = vmatpush.msrb.mxu3 %v5678_v48  ;;  %1665 = vmatpush.msrb.mxu0 %v5696_v53  ;;  %v4436_v48 = vld [vmem:[%s9137_s12 + $0x28] sm:$0xff]  ;;  %v9197_v53 = vld [vmem:[#allocation32_spill] sm:$0xff] }
 0x410   :  { %1436 = vmatpush.msra.mxu1 %v9194_v15  ;;  %1466 = vmatpush.msra.mxu2 %v6115_v10 }
 0x411   :  { %1637 = vmatpush.msrb.mxu3 %v9192_v5  ;;  %1666 = vmatpush.msrb.mxu0 %v9193_v29  ;;  %v9199_v5 = vld [vmem:[#allocation13_spill] sm:$0xff]  ;;  %v9201_v29 = vld [vmem:[#allocation15_spill] sm:$0xff] }
 0x412   :  { %1437 = vmatpush.msra.mxu1 %v9197_v53  ;;  %v9204_v53 = vld [vmem:[#allocation10_spill] sm:$0xff] }
 0x413   :  { %1638 = vmatpush.msrb.mxu3 %v9195_v61  ;;  %1667 = vmatpush.msrb.mxu0 %v9196_v21  ;;  %v9200_v21 = vld [vmem:[#allocation8_spill] sm:$0xff]  ;;  %v9202_v61 = vld [vmem:[#allocation34_spill] sm:$0xff] }
 0x414   :  { %1467 = vmatpush.msra.mxu2 %v9202_v61  ;;  %1438 = vmatpush.msra.mxu1 %v9203_v11  ;;  %v9212_v11 = vld [vmem:[#allocation14_spill] sm:$0xff] }
 0x415   :  { %1639 = vmatpush.msrb.mxu3 %v9198_v13  ;;  %1668 = vmatpush.msrb.mxu0 %v9199_v5  ;;  %v9205_v13 = vld [vmem:[#allocation17_spill] sm:$0xff]  ;;  %v9206_v5 = vld [vmem:[#allocation36_spill] sm:$0xff] }
 0x416   :  { %1307 = vmatmul.f32.gmra.mxu1 %v6364_v16  ;;  %1336 = vmatmul.f32.gmra.mxu2 %v6366_v9  ;;  %v9207_v16 = vld [vmem:[#allocation35_spill] sm:$0xff]  ;;  %v9208_v9 = vld [vmem:[#allocation12_spill] sm:$0xff] }
 0x417   :  { %4440 = vmatmul.msk.f32.gmra.mxu3 %vm131_vm0, %v4436_v48  ;;  %4444 = vmatmul.msk.f32.gmra.mxu0 %vm131_vm0, %v4436_v48  ;;  %v4437_v48 = vld [vmem:[%s9137_s12 + $0x30] sm:$0xff] }
 0x418   :  { %1640 = vmatpush.msrb.mxu3 %v9200_v21  ;;  %1669 = vmatpush.msrb.mxu0 %v9201_v29  ;;  %v9210_v21 = vld [vmem:[#allocation38_spill] sm:$0xff]  ;;  %v9211_v29 = vld [vmem:[#allocation37_spill] sm:$0xff] }
 0x419   :  { %1468 = vmatpush.msra.mxu2 %v9206_v5  ;;  %1439 = vmatpush.msra.mxu1 %v9207_v16  ;;  %v9217_v16 = vld [vmem:[#allocation41_spill] sm:$0xff] }
 0x41a   :  { %1641 = vmatpush.msrb.mxu3 %v9204_v53  ;;  %1670 = vmatpush.msrb.mxu0 %v9205_v13  ;;  %v9213_v53 = vld [vmem:[#allocation19_spill] sm:$0xff] }
 0x41b   :  { %1469 = vmatpush.msra.mxu2 %v9210_v21  ;;  %1440 = vmatpush.msra.mxu1 %v9211_v29  ;;  %v9215_v13 = vld [vmem:[#allocation39_spill] sm:$0xff]  ;;  %v9224_v29 = vld [vmem:[#allocation50_spill] sm:$0xff] }
 0x41c   :  { %1642 = vmatpush.msrb.mxu3 %v9208_v9  ;;  %1671 = vmatpush.msrb.mxu0 %v9209_v1  ;;  %v9214_v1 = vld [vmem:[#allocation40_spill] sm:$0xff]  ;;  %v9216_v9 = vld [vmem:[#allocation42_spill] sm:$0xff] }
 0x41d   :  { %1578 = vmatpush.msrb.mxu2 %v9214_v1  ;;  %1549 = vmatpush.msrb.mxu1 %v9215_v13  ;;  %v9223_v13 = vld [vmem:[#allocation47_spill] sm:$0xff] }
 0x41e   :  { %1643 = vmatpush.msrb.mxu3 %v9212_v11  ;;  %1672 = vmatpush.msrb.mxu0 %v9213_v53  ;;  %v4438_v11 = vld [vmem:[%s9137_s12 + $0x38] sm:$0x3f] }
 0x41f   :  { %1310 = vmatmul.f32.gmra.mxu1 %v6386_v8  ;;  %1339 = vmatmul.f32.gmra.mxu2 %v6388_v45  ;;  %v9218_v53 = vld [vmem:[#allocation44_spill] sm:$0xff]  ;;  %v9219_v8 = vld [vmem:[#allocation43_spill] sm:$0xff]  ;;  %v9220_v45 = vld [vmem:[#allocation46_spill] sm:$0xff] }
 0x420   :  { %4441 = vmatmul.msk.f32.gmra.mxu3 %vm131_vm0, %v4437_v48  ;;  %4445 = vmatmul.msk.f32.gmra.mxu0 %vm131_vm0, %v4437_v48  ;;  %v9221_v48 = vld [vmem:[#allocation45_spill] sm:$0xff] }
 0x421   :  { %1579 = vmatpush.msrb.mxu2 %v9216_v9  ;;  %1550 = vmatpush.msrb.mxu1 %v9217_v16  ;;  %v9222_v16 = vld [vmem:[#allocation48_spill] sm:$0xff]  ;;  %v9229_v9 = vld [vmem:[#allocation53_spill] sm:$0xff] }
 0x423   :  { %1580 = vmatpush.msrb.mxu2 %v9218_v53  ;;  %1551 = vmatpush.msrb.mxu1 %v9219_v8  ;;  %v9225_v53 = vld [vmem:[#allocation49_spill] sm:$0xff]  ;;  %v9226_v8 = vld [vmem:[#allocation52_spill] sm:$0xff] }
 0x425   :  { %1581 = vmatpush.msrb.mxu2 %v9220_v45  ;;  %1552 = vmatpush.msrb.mxu1 %v9221_v48  ;;  %v9231_v45 = vld [vmem:[#allocation55_spill] sm:$0xff]  ;;  %v9232_v48 = vld [vmem:[#allocation58_spill] sm:$0xff] }
 0x427   :  { %1313 = vmatmul.f32.gmra.mxu1 %v6408_v38  ;;  %1342 = vmatmul.f32.gmra.mxu2 %v6410_v40  ;;  %v9227_v38 = vld [vmem:[#allocation51_spill] sm:$0xff]  ;;  %v9228_v40 = vld [vmem:[#allocation54_spill] sm:$0xff] }
 0x428   :  { %4442 = vmatmul.msk.f32.gmra.mxu3 %vm131_vm0, %v4438_v11  ;;  %4446 = vmatmul.msk.f32.gmra.mxu0 %vm131_vm0, %v4438_v11  ;;  %v9230_v11 = vld [vmem:[#allocation56_spill] sm:$0xff] }
 0x429   :  { %1582 = vmatpush.msrb.mxu2 %v9222_v16  ;;  %1553 = vmatpush.msrb.mxu1 %v9223_v13  ;;  %v9233_v16 = vld [vmem:[#allocation57_spill] sm:$0xff]  ;;  %v9234_v13 = vld [vmem:[#allocation60_spill] sm:$0xff] }
 0x42b   :  { %1583 = vmatpush.msrb.mxu2 %v9224_v29  ;;  %1554 = vmatpush.msrb.mxu1 %v9225_v53  ;;  %v9235_v29 = vld [vmem:[#allocation59_spill] sm:$0xff]  ;;  %v9236_v53 = vld [vmem:[#allocation62_spill] sm:$0xff] }
 0x42d   :  { %1584 = vmatpush.msrb.mxu2 %v9226_v8  ;;  %1555 = vmatpush.msrb.mxu1 %v9227_v38  ;;  %v9237_v8 = vld [vmem:[#allocation61_spill] sm:$0xff]  ;;  %v9238_v38 = vld [vmem:[#allocation64_spill] sm:$0xff] }
 0x42f   :  { %1585 = vmatpush.msrb.mxu2 %v9228_v40  ;;  %1556 = vmatpush.msrb.mxu1 %v9229_v9  ;;  %v9239_v40 = vld [vmem:[#allocation63_spill] sm:$0xff]  ;;  %v9240_v9 = vld [vmem:[#allocation66_spill] sm:$0xff] }
 0x431   :  { %1586 = vmatpush.msrb.mxu2 %v9230_v11  ;;  %1557 = vmatpush.msrb.mxu1 %v9231_v45  ;;  %v9241_v11 = vld [vmem:[#allocation65_spill] sm:$0xff] }
 0x433   :  { %1587 = vmatpush.msrb.mxu2 %v9232_v48  ;;  %1558 = vmatpush.msrb.mxu1 %v9233_v16 }
 0x435   :  { %1588 = vmatpush.msrb.mxu2 %v9234_v13  ;;  %1559 = vmatpush.msrb.mxu1 %v9235_v29 }
 0x437   :  { %1589 = vmatpush.msrb.mxu2 %v9236_v53  ;;  %1560 = vmatpush.msrb.mxu1 %v9237_v8 }
 0x439   :  { %1590 = vmatpush.msrb.mxu2 %v9238_v38  ;;  %1561 = vmatpush.msrb.mxu1 %v9239_v40 }
 0x43b   :  { %1591 = vmatpush.msrb.mxu2 %v9240_v9  ;;  %1562 = vmatpush.msrb.mxu1 %v9241_v11 }
 0x43d   :  { %1592 = vmatpush.msrb.mxu2 %v6340_v0  ;;  %1563 = vmatpush.msrb.mxu1 %v6335_v58 }
 0x43f   :  { %1593 = vmatpush.msrb.mxu2 %v6354_v62  ;;  %1564 = vmatpush.msrb.mxu1 %v6349_v60 }
 0x467   :  { %v6522_v29 = vpop.f32.mrf.mxu0 }
 0x468   :  { %9242 = vst [vmem:[#allocation5_spill] sm:$0xff] %v6522_v29  ;;  %v9244_v29 = vld [vmem:[#allocation21_spill] sm:$0xff] }
 0x46d   :  { %v6524_v16 = vpop.f32.mrf.mxu3 }
 0x470   :  { %v6526_v8 = vpop.f32.mrf.mxu0 }
 0x476   :  { %v6528_v45 = vpop.f32.mrf.mxu3 }
 0x479   :  { %v6530_v40 = vpop.f32.mrf.mxu0 }
 0x47a   :  { %9243 = vst [vmem:[#allocation9_spill] sm:$0xff] %v6530_v40 }
 0x47f   :  { %v6532_v9 = vpop.f32.mrf.mxu3 }
 0x482   :  { %v6534_v11 = vpop.f32.mrf.mxu0 }
 0x488   :  { %v6536_v0 = vpop.f32.mrf.mxu3 }
 0x48b   :  { %v6538_v58 = vpop.f32.mrf.mxu0 }
 0x48c   :  { %1470 = vmatmul.f32.vlgmr.msra.gmra.mxu2 %v6538_v58  ;;  %1532 = vmatmul.f32.vlgmr.msra.gmra.mxu0 %v6538_v58 }
 0x48d   :  { %1715 = vmatpush.msra.mxu2 %v5887_v2  ;;  %1777 = vmatpush.msra.mxu0 %v9244_v29  ;;  %v9245_v29 = vld [vmem:[#allocation16_spill] sm:$0xff] }
 0x48f   :  { %1716 = vmatpush.msra.mxu2 %v5911_v20  ;;  %1778 = vmatpush.msra.mxu0 %v5782_v6  ;;  %v9265_v20 = vld [vmem:[#allocation39_spill] sm:$0xff] }
 0x491   :  { %v6546_v40 = vpop.f32.mrf.mxu3  ;;  %1717 = vmatpush.msra.mxu2 %v5935_v24  ;;  %1779 = vmatpush.msra.mxu0 %v5795_v34  ;;  %v9268_v24 = vld [vmem:[#allocation54_spill] sm:$0xff] }
 0x492   :  { %1441 = vmatmul.f32.vlgmr.msra.gmra.mxu1 %v6546_v40  ;;  %1503 = vmatmul.f32.vlgmr.msra.gmra.mxu3 %v6546_v40 }
 0x493   :  { %1718 = vmatpush.msra.mxu2 %v5973_v31  ;;  %1686 = vmatpush.msra.mxu1 %v5877_v27  ;;  %v9262_v27 = vld [vmem:[#allocation37_spill] sm:$0xff] }
 0x494   :  { %v6554_v2 = vpop.f32.mrf.mxu0  ;;  %1748 = vmatpush.msra.mxu3 %v9245_v29  ;;  %1780 = vmatpush.msra.mxu0 %v5807_v37  ;;  %v9271_v31 = vld [vmem:[#allocation45_spill] sm:$0xff] }
 0x495   :  { %1473 = vmatmul.f32.gmra.mxu2 %v6554_v2  ;;  %1535 = vmatmul.f32.gmra.mxu0 %v6554_v2 }
 0x496   :  { %1719 = vmatpush.msra.mxu2 %v5992_v26  ;;  %1687 = vmatpush.msra.mxu1 %v5906_v14  ;;  %v9264_v14 = vld [vmem:[#allocation50_spill] sm:$0xff]  ;;  %v9274_v26 = vld [vmem:[#allocation51_spill] sm:$0xff] }
 0x497   :  { %1749 = vmatpush.msra.mxu3 %v5743_v47  ;;  %1781 = vmatpush.msra.mxu0 %v5819_v39  ;;  %v9246_v47 = vld [vmem:[#allocation20_spill] sm:$0xff] }
 0x498   :  { %1720 = vmatpush.msra.mxu2 %v6011_v18  ;;  %1688 = vmatpush.msra.mxu1 %v5930_v22  ;;  %v9255_v39 = vld [vmem:[#allocation44_spill] sm:$0xff]  ;;  %v9267_v22 = vld [vmem:[#allocation41_spill] sm:$0xff]  ;;  %v9276_v18 = vld [vmem:[#allocation66_spill] sm:$0xff] }
 0x499   :  { %1750 = vmatpush.msra.mxu3 %v5752_v7  ;;  %1782 = vmatpush.msra.mxu0 %v5835_v41  ;;  %v9247_v7 = vld [vmem:[#allocation22_spill] sm:$0xff]  ;;  %v9256_v41 = vld [vmem:[#allocation33_spill] sm:$0xff] }
 0x49a   :  { %v6568_v6 = vpop.f32.mrf.mxu3  ;;  %1721 = vmatpush.msra.mxu2 %v6032_v17  ;;  %1689 = vmatpush.msra.mxu1 %v5954_v25  ;;  %v9269_v25 = vld [vmem:[#allocation43_spill] sm:$0xff]  ;;  %v9278_v17 = vld [vmem:[#allocation68_spill] sm:$0xff] }
 0x49b   :  { %1444 = vmatmul.f32.gmra.mxu1 %v6568_v6  ;;  %1506 = vmatmul.f32.gmra.mxu3 %v6568_v6 }
 0x49c   :  { %1722 = vmatpush.msra.mxu2 %v6046_v52  ;;  %1751 = vmatpush.msra.mxu3 %v9246_v47  ;;  %v9280_v52 = vld [vmem:[#allocation59_spill] sm:$0xff] }
 0x49d   :  { %v6576_v34 = vpop.f32.mrf.mxu0  ;;  %1783 = vmatpush.msra.mxu0 %v5848_v43  ;;  %1690 = vmatpush.msra.mxu1 %v5985_v55  ;;  %v9258_v43 = vld [vmem:[#allocation46_spill] sm:$0xff]  ;;  %v9273_v55 = vld [vmem:[#allocation49_spill] sm:$0xff] }
 0x49e   :  { %1476 = vmatmul.f32.gmra.mxu2 %v6576_v34  ;;  %1538 = vmatmul.f32.gmra.mxu0 %v6576_v34 }
 0x49f   :  { %1723 = vmatpush.msra.mxu2 %v6060_v28  ;;  %1752 = vmatpush.msra.mxu3 %v9247_v7 }
 0x4a0   :  { %1784 = vmatpush.msra.mxu0 %v5860_v50  ;;  %1691 = vmatpush.msra.mxu1 %v6004_v12  ;;  %v9260_v50 = vld [vmem:[#allocation27_spill] sm:$0xff]  ;;  %v9275_v12 = vld [vmem:[#allocation53_spill] sm:$0xff] }
 0x4a1   :  { %1724 = vmatpush.msra.mxu2 %v6074_v33  ;;  %1753 = vmatpush.msra.mxu3 %v5790_v4  ;;  %v9248_v33 = vld [vmem:[#allocation23_spill] sm:$0xff]  ;;  %v4447_v4 = vld [vmem:[%s9137_s12 + $0x40] sm:$0xff] }
 0x4a2   :  { %1785 = vmatpush.msra.mxu0 %v5872_v57  ;;  %1692 = vmatpush.msra.mxu1 %v6023_v35  ;;  %v9261_v57 = vld [vmem:[#allocation48_spill] sm:$0xff]  ;;  %v9277_v35 = vld [vmem:[#allocation55_spill] sm:$0xff] }
 0x4a3   :  { %v6590_v37 = vpop.f32.mrf.mxu3  ;;  %1725 = vmatpush.msra.mxu2 %v6088_v44  ;;  %1754 = vmatpush.msra.mxu3 %v5802_v36  ;;  %v9249_v44 = vld [vmem:[#allocation24_spill] sm:$0xff]  ;;  %v9254_v36 = vld [vmem:[#allocation30_spill] sm:$0xff] }
 0x4a4   :  { %1447 = vmatmul.f32.gmra.mxu1 %v6590_v37  ;;  %1509 = vmatmul.f32.gmra.mxu3 %v6590_v37 }
 0x4a5   :  { %v6596_v28 = vpop.f32.mrf.mxu0  ;;  %1726 = vmatpush.msra.mxu2 %v6102_v56  ;;  %1786 = vmatpush.msra.mxu0 %v5898_v32  ;;  %v9263_v32 = vld [vmem:[#allocation28_spill] sm:$0xff] }
 0x4a6   :  { %1479 = vmatmul.f32.gmra.mxu2 %v6596_v28  ;;  %1541 = vmatmul.f32.gmra.mxu0 %v6596_v28 }
 0x4a7   :  { %1727 = vmatpush.msra.mxu2 %v6115_v10  ;;  %1693 = vmatpush.msra.mxu1 %v6037_v46  ;;  %v9252_v10 = vld [vmem:[#allocation32_spill] sm:$0xff]  ;;  %v9279_v46 = vld [vmem:[#allocation57_spill] sm:$0xff] }
 0x4a8   :  { %1755 = vmatpush.msra.mxu3 %v9248_v33  ;;  %1787 = vmatpush.msra.mxu0 %v5922_v63  ;;  %v9266_v63 = vld [vmem:[#allocation52_spill] sm:$0xff] }
 0x4a9   :  { %1728 = vmatpush.msra.mxu2 %v9202_v61  ;;  %1694 = vmatpush.msra.mxu1 %v6051_v19  ;;  %v4448_v19 = vld [vmem:[%s9137_s12 + $0x48] sm:$0xff]  ;;  %v9282_v61 = vld [vmem:[#allocation63_spill] sm:$0xff] }
 0x4aa   :  { %1756 = vmatpush.msra.mxu3 %v9249_v44  ;;  %1788 = vmatpush.msra.mxu0 %v5945_v3  ;;  %v4450_v3 = vld [vmem:[%s9137_s12 + $0x58] sm:$0x3f] }
 0x4ab   :  { %v1393_v56 = vpop.f32.mrf.mxu3  ;;  %1729 = vmatpush.msra.mxu2 %v9206_v5  ;;  %1695 = vmatpush.msra.mxu1 %v6065_v51  ;;  %v9250_v51 = vld [vmem:[#allocation42_spill] sm:$0xff]  ;;  %v9283_v5 = vld [vmem:[#allocation65_spill] sm:$0xff] }
 0x4ac   :  { %1450 = vmatmul.f32.gmra.mxu1 %v1393_v56  ;;  %1512 = vmatmul.f32.gmra.mxu3 %v1393_v56 }
 0x4ad   :  { %1730 = vmatpush.msra.mxu2 %v9210_v21  ;;  %1757 = vmatpush.msra.mxu3 %v5843_v42  ;;  %v9257_v42 = vld [vmem:[#allocation26_spill] sm:$0xff]  ;;  %v9284_v21 = vld [vmem:[#allocation67_spill] sm:$0xff] }
 0x4ae   :  { %1594 = vmatmul.f32.vlgmr.msrb.gmra.mxu2 %v6538_v58  ;;  %4455 = vmatmul.msk.f32.vlgmr.msrb.gmra.mxu0 %vm131_vm0, %v4447_v4  ;;  %v9251_v58 = vld [vmem:[#allocation29_spill] sm:$0xff] }
 0x4af   :  { %1789 = vmatpush.msra.mxu0 %v5964_v59  ;;  %1696 = vmatpush.msra.mxu1 %v6079_v30  ;;  %v9253_v30 = vld [vmem:[#allocation25_spill] sm:$0xff]  ;;  %v9270_v59 = vld [vmem:[#allocation56_spill] sm:$0xff] }
 0x4b0   :  { %1758 = vmatpush.msra.mxu3 %v5855_v49  ;;  %1839 = vmatpush.msrb.mxu2 %v9214_v1  ;;  %v9259_v49 = vld [vmem:[#allocation35_spill] sm:$0xff] }
 0x4b1   :  { %1790 = vmatpush.msra.mxu0 %v5979_v23  ;;  %1697 = vmatpush.msra.mxu1 %v9194_v15  ;;  %v9272_v23 = vld [vmem:[#allocation47_spill] sm:$0xff]  ;;  %v9281_v15 = vld [vmem:[#allocation61_spill] sm:$0xff] }
 0x4b2   :  { %1759 = vmatpush.msra.mxu3 %v5867_v54  ;;  %1840 = vmatpush.msrb.mxu2 %v9250_v51  ;;  %v4449_v54 = vld [vmem:[%s9137_s12 + $0x50] sm:$0xff] }
 0x4b3   :  { %1791 = vmatpush.msra.mxu0 %v9251_v58  ;;  %1698 = vmatpush.msra.mxu1 %v9252_v10 }
 0x4b4   :  { %1565 = vmatmul.f32.vlgmr.msrb.gmra.mxu1 %v6546_v40  ;;  %4451 = vmatmul.msk.f32.vlgmr.msrb.gmra.mxu3 %vm131_vm0, %v4447_v4 }
 0x4b5   :  { %1760 = vmatpush.msra.mxu3 %v9253_v30  ;;  %1792 = vmatpush.msra.mxu0 %v9254_v36 }
 0x4b6   :  { %1597 = vmatmul.f32.gmra.mxu2 %v6554_v2  ;;  %4456 = vmatmul.msk.f32.gmra.mxu0 %vm131_vm0, %v4448_v19 }
 0x4b7   :  { %1841 = vmatpush.msrb.mxu2 %v9255_v39  ;;  %1699 = vmatpush.msra.mxu1 %v9256_v41 }
 0x4b8   :  { %1761 = vmatpush.msra.mxu3 %v9257_v42 }
 0x4b9   :  { %1842 = vmatpush.msrb.mxu2 %v9258_v43  ;;  %1700 = vmatpush.msra.mxu1 %v9259_v49 }
 0x4ba   :  { %1762 = vmatpush.msra.mxu3 %v9260_v50 }
 0x4bb   :  { %1843 = vmatpush.msrb.mxu2 %v9261_v57  ;;  %1701 = vmatpush.msra.mxu1 %v9262_v27 }
 0x4bc   :  { %1568 = vmatmul.f32.gmra.mxu1 %v6568_v6  ;;  %4452 = vmatmul.msk.f32.gmra.mxu3 %vm131_vm0, %v4448_v19 }
 0x4bd   :  { %1763 = vmatpush.msra.mxu3 %v9263_v32  ;;  %1844 = vmatpush.msrb.mxu2 %v9264_v14 }
 0x4be   :  { %1600 = vmatmul.f32.gmra.mxu2 %v6576_v34  ;;  %4457 = vmatmul.msk.f32.gmra.mxu0 %vm131_vm0, %v4449_v54 }
 0x4bf   :  { %1810 = vmatpush.msrb.mxu1 %v9265_v20  ;;  %1845 = vmatpush.msrb.mxu2 %v9266_v63 }
 0x4c1   :  { %1811 = vmatpush.msrb.mxu1 %v9267_v22  ;;  %1846 = vmatpush.msrb.mxu2 %v9268_v24 }
 0x4c3   :  { %1812 = vmatpush.msrb.mxu1 %v9269_v25  ;;  %1847 = vmatpush.msrb.mxu2 %v9270_v59 }
 0x4c4   :  { %1571 = vmatmul.f32.gmra.mxu1 %v6590_v37  ;;  %4453 = vmatmul.msk.f32.gmra.mxu3 %vm131_vm0, %v4449_v54 }
 0x4c5   :  { %1813 = vmatpush.msrb.mxu1 %v9271_v31  ;;  %1848 = vmatpush.msrb.mxu2 %v9232_v48  ;;  %v4487_v31 = vld [vmem:[%s9285_s10 + $0x1d0] sm:$0xff] }
 0x4c6   :  { %1603 = vmatmul.f32.gmra.mxu2 %v6596_v28  ;;  %4458 = vmatmul.msk.f32.gmra.mxu0 %vm131_vm0, %v4450_v3 }
 0x4c7   :  { %1814 = vmatpush.msrb.mxu1 %v9272_v23  ;;  %1849 = vmatpush.msrb.mxu2 %v9234_v13 }
 0x4c9   :  { %1815 = vmatpush.msrb.mxu1 %v9273_v55  ;;  %1850 = vmatpush.msrb.mxu2 %v9236_v53  ;;  %v6693_v53 = vpop.f32.mrf.mxu2  ;;  %v4485_v55 = vld [vmem:[%s9285_s10 + $0x1c0] sm:$0xff] }
 0x4cb   :  { %1816 = vmatpush.msrb.mxu1 %v9274_v26  ;;  %1851 = vmatpush.msrb.mxu2 %v9238_v38  ;;  %v4483_v26 = vld [vmem:[%s9285_s10 + $0x1b0] sm:$0xff] }
 0x4cc   :  { %1574 = vmatmul.f32.gmra.mxu1 %v1393_v56  ;;  %4454 = vmatmul.msk.f32.gmra.mxu3 %vm131_vm0, %v4450_v3  ;;  %vm3620_vm0 = vcmask 783360  }
 0x4cd   :  { %1817 = vmatpush.msrb.mxu1 %v9275_v12  ;;  %1852 = vmatpush.msrb.mxu2 %v9276_v18  ;;  %v4481_v12 = vld [vmem:[%s9285_s10 + $0x1a0] sm:$0xff] }
 0x4cf   :  { %1818 = vmatpush.msrb.mxu1 %v9277_v35  ;;  %1853 = vmatpush.msrb.mxu2 %v9278_v17  ;;  %v4479_v35 = vld [vmem:[%s9285_s10 + $0x190] sm:$0xff]  ;;  %v4477_v17 = vld [vmem:[%s9285_s10 + $0x180] sm:$0xff] }
 0x4d1   :  { %1819 = vmatpush.msrb.mxu1 %v9279_v46  ;;  %1854 = vmatpush.msrb.mxu2 %v6354_v62  ;;  %v6697_v62 = vpop.f32.mrf.mxu1  ;;  %v6701_v40 = vpop.f32.mrf.mxu2 }
 0x4d3   :  { %1820 = vmatpush.msrb.mxu1 %v9280_v52  ;;  %v4475_v52 = vld [vmem:[%s9285_s10 + $0x170] sm:$0xff] }
 0x4d5   :  { %1821 = vmatpush.msrb.mxu1 %v9281_v15  ;;  %v4473_v15 = vld [vmem:[%s9285_s10 + $0x160] sm:$0xff] }
 0x4d7   :  { %1822 = vmatpush.msrb.mxu1 %v9282_v61  ;;  %v4471_v61 = vld [vmem:[%s9285_s10 + $0x150] sm:$0xff] }
 0x4d9   :  { %1823 = vmatpush.msrb.mxu1 %v9283_v5  ;;  %v6705_v29 = vpop.f32.mrf.mxu1 }
 0x4db   :  { %1824 = vmatpush.msrb.mxu1 %v9284_v21  ;;  %v4469_v21 = vld [vmem:[%s9285_s10 + $0x140] sm:$0xff] }
 0x4dd   :  { %1825 = vmatpush.msrb.mxu1 %v6349_v60  ;;  %v6709_v60 = vpop.f32.mrf.mxu2 }
 0x4e1   :  { %v6713_v7 = vpop.f32.mrf.mxu1 }
 0x4e5   :  { %v6717_v28 = vpop.f32.mrf.mxu2 }
 0x4e9   :  { %v6719_v44 = vpop.f32.mrf.mxu1 }
 0x4ed   :  { %v6721_v4 = vpop.f32.mrf.mxu2 }
 0x4f1   :  { %v6723_v58 = vpop.f32.mrf.mxu1 }
 0x4f5   :  { %v6725_v30 = vpop.f32.mrf.mxu2 }
 0x4f9   :  { %v6727_v39 = vpop.f32.mrf.mxu1 }
 0x4fd   :  { %v6729_v41 = vpop.f32.mrf.mxu2 }
 0x501   :  { %v6731_v43 = vpop.f32.mrf.mxu1 }
 0x505   :  { %v6733_v49 = vpop.f32.mrf.mxu2 }
 0x509   :  { %v6689_v1 = vpop.f32.mrf.mxu0  ;;  %v6735_v50 = vpop.f32.mrf.mxu1 }
 0x50f   :  { %v6737_v54 = vpop.f32.mrf.mxu2 }
 0x511   :  { %v6739_v57 = vpop.f32.mrf.mxu1 }
 0x512   :  { %v6691_v13 = vpop.f32.mrf.mxu0 }
 0x515   :  { %v6695_v48 = vpop.f32.mrf.mxu3 }
 0x518   :  { %v6741_v27 = vpop.f32.mrf.mxu2 }
 0x519   :  { %v6743_v32 = vpop.f32.mrf.mxu1 }
 0x51b   :  { %v6699_v38 = vpop.f32.mrf.mxu0 }
 0x51e   :  { %v6703_v2 = vpop.f32.mrf.mxu3 }
 0x521   :  { %v6745_v14 = vpop.f32.mrf.mxu2  ;;  %v6747_v20 = vpop.f32.mrf.mxu1 }
 0x523   :  { %v6707_v6 = vpop.f32.mrf.mxu0 }
 0x527   :  { %v6711_v47 = vpop.f32.mrf.mxu3 }
 0x529   :  { %v6749_v63 = vpop.f32.mrf.mxu2  ;;  %v6751_v22 = vpop.f32.mrf.mxu1 }
 0x52b   :  { %v1674_v34 = vpop.f32.mrf.mxu0 }
 0x52c   :  { %1731 = vmatmul.f32.vlgmr.msra.gmra.mxu2 %v1674_v34  ;;  %1793 = vmatmul.f32.vlgmr.msra.gmra.mxu0 %v1674_v34 }
 0x52d   :  { %2066 = vmatpush.msra.mxu2 %v4487_v31 }
 0x52f   :  { %v6715_v37 = vpop.f32.mrf.mxu3  ;;  %2067 = vmatpush.msra.mxu2 %v4485_v55  ;;  %v1977_v55 = vld [vmem:[%s9285_s10 + $0xc0] sm:$0xff] }
 0x531   :  { %v6753_v24 = vpop.f32.mrf.mxu2  ;;  %v6755_v3 = vpop.f32.mrf.mxu1  ;;  %2068 = vmatpush.msra.mxu2 %v4483_v26  ;;  %v4459_v26 = vld [vmem:[%s9285_s10 + $0xf0] sm:$0xff] }
 0x533   :  { %v1677_v33 = vpop.f32.mrf.mxu0  ;;  %2069 = vmatpush.msra.mxu2 %v4481_v12  ;;  %v1975_v12 = vld [vmem:[%s9285_s10 + $0xb0] sm:$0xff] }
 0x534   :  { %1734 = vmatmul.f32.gmra.mxu2 %v1677_v33  ;;  %1796 = vmatmul.f32.gmra.mxu0 %v1677_v33 }
 0x535   :  { %2070 = vmatpush.msra.mxu2 %v4479_v35  ;;  %v1973_v35 = vld [vmem:[%s9285_s10 + $0xa0] sm:$0xff] }
 0x537   :  { %v1645_v56 = vpop.f32.mrf.mxu3  ;;  %2071 = vmatpush.msra.mxu2 %v4477_v17 }
 0x538   :  { %1702 = vmatmul.f32.vlgmr.msra.gmra.mxu1 %v1645_v56  ;;  %1764 = vmatmul.f32.vlgmr.msra.gmra.mxu3 %v1645_v56 }
 0x539   :  { %v6757_v25 = vpop.f32.mrf.mxu2  ;;  %v6759_v59 = vpop.f32.mrf.mxu1  ;;  %2072 = vmatpush.msra.mxu2 %v4475_v52  ;;  %v1971_v52 = vld [vmem:[%s9285_s10 + $0x90] sm:$0xff] }
 0x53b   :  { %v1680_v51 = vpop.f32.mrf.mxu0  ;;  %2073 = vmatpush.msra.mxu2 %v4473_v15 }
 0x53c   :  { %1737 = vmatmul.f32.gmra.mxu2 %v1680_v51  ;;  %1799 = vmatmul.f32.gmra.mxu0 %v1680_v51 }
 0x53d   :  { %2074 = vmatpush.msra.mxu2 %v4471_v61  ;;  %v1969_v61 = vld [vmem:[%s9285_s10 + $0x80] sm:$0xff] }
 0x53f   :  { %v1648_v19 = vpop.f32.mrf.mxu3  ;;  %2075 = vmatpush.msra.mxu2 %v4469_v21  ;;  %v1967_v21 = vld [vmem:[%s9285_s10 + $0x70] sm:$0xff] }
 0x540   :  { %1705 = vmatmul.f32.gmra.mxu1 %v1648_v19  ;;  %1767 = vmatmul.f32.gmra.mxu3 %v1648_v19 }
 0x541   :  { %v6764_v23 = vpop.f32.mrf.mxu2  ;;  %v6775_v18 = vpop.f32.mrf.mxu1 }
 0x543   :  { %v1683_v10 = vpop.f32.mrf.mxu0 }
 0x544   :  { %1740 = vmatmul.f32.gmra.mxu2 %v1683_v10  ;;  %1802 = vmatmul.f32.gmra.mxu0 %v1683_v10 }
 0x547   :  { %v1651_v36 = vpop.f32.mrf.mxu3 }
 0x548   :  { %1708 = vmatmul.f32.gmra.mxu1 %v1651_v36  ;;  %1770 = vmatmul.f32.gmra.mxu3 %v1651_v36 }
 0x549   :  { %v6783_v46 = vpop.f32.mrf.mxu2  ;;  %v6794_v5 = vpop.f32.mrf.mxu1 }
 0x54c   :  { %1855 = vmatmul.f32.vlgmr.msrb.gmra.mxu2 %v1674_v34 }
 0x54f   :  { %v1654_v42 = vpop.f32.mrf.mxu3 }
 0x550   :  { %1711 = vmatmul.f32.gmra.mxu1 %v1654_v42  ;;  %1773 = vmatmul.f32.gmra.mxu3 %v1654_v42 }
 0x554   :  { %1858 = vmatmul.f32.gmra.mxu2 %v1677_v33  ;;  %v4467_v33 = vld [vmem:[%s9285_s10 + $0x130] sm:$0xff] }
 0x555   :  { %2076 = vmatpush.msra.mxu2 %v4467_v33  ;;  %v1965_v33 = vld [vmem:[%s9285_s10 + $0x60] sm:$0xff] }
 0x558   :  { %1826 = vmatmul.f32.vlgmr.msrb.gmra.mxu1 %v1645_v56  ;;  %v4465_v56 = vld [vmem:[%s9285_s10 + $0x120] sm:$0xff] }
 0x559   :  { %2077 = vmatpush.msra.mxu2 %v4465_v56 }
 0x55c   :  { %1861 = vmatmul.f32.gmra.mxu2 %v1680_v51  ;;  %v1981_v51 = vld [vmem:[%s9285_s10 + $0xe0] sm:$0xff] }
 0x55d   :  { %1997 = vmatpush.msrb.mxu0 %v1981_v51  ;;  %v1149_v51 = vadd.f32 %v6693_v53, %v6697_v62  ;;  %v1959_v62 = vld [vmem:[%s9285_s10 + $0x30] sm:$0xff] }
 0x560   :  { %1829 = vmatmul.f32.gmra.mxu1 %v1648_v19  ;;  %v4463_v19 = vld [vmem:[%s9285_s10 + $0x110] sm:$0xff] }
 0x561   :  { %2078 = vmatpush.msra.mxu2 %v4463_v19  ;;  %v9286_v19 = vld [vmem:[#allocation5_spill] sm:$0xff] }
 0x564   :  { %1864 = vmatmul.f32.gmra.mxu2 %v1683_v10 }
 0x568   :  { %1832 = vmatmul.f32.gmra.mxu1 %v1651_v36  ;;  %v1979_v36 = vld [vmem:[%s9285_s10 + $0xd0] sm:$0xff] }
 0x569   :  { %1998 = vmatpush.msrb.mxu0 %v1979_v36  ;;  %v1240_v36 = vadd.f32 %v9286_v19, %v6524_v16  ;;  %v1472_v16 = vadd.f32 %v6737_v54, %v6739_v57  ;;  %v1152_v54 = vadd.f32 %v6701_v40, %v6705_v29  ;;  %v1243_v57 = vadd.f32 %v6526_v8, %v6528_v45  ;;  %v1953_v8 = vld [vmem:[%s9285_s10] sm:$0xff] }
 0x56a   :  { %v1338_v19 = vadd.f32 %v6725_v30, %v6727_v39  ;;  %v1475_v40 = vadd.f32 %v6741_v27, %v6743_v32  ;;  %v1155_v39 = vadd.f32 %v6709_v60, %v6713_v7  ;;  %v1599_v27 = vadd.f32 %v6757_v25, %v6759_v59 }
 0x56b   :  { %1999 = vmatpush.msrb.mxu0 %v1977_v55  ;;  %v1251_v53 = vmax.f32 %v1149_v51, %v1240_v36  ;;  %v1596_v51 = vadd.f32 %v6753_v24, %v6755_v3  ;;  %v1252_v45 = vmax.f32 %v1152_v54, %v1243_v57  ;;  %v1540_v59 = vadd.f32 %v6699_v38, %v6711_v47 }
 0x56d   :  { %2000 = vmatpush.msrb.mxu0 %v1975_v12  ;;  %v1961_v12 = vld [vmem:[%s9285_s10 + $0x40] sm:$0xff] }
 0x56f   :  { %2001 = vmatpush.msrb.mxu0 %v1973_v35 }
 0x570   :  { %1835 = vmatmul.f32.gmra.mxu1 %v1654_v42  ;;  %v4461_v42 = vld [vmem:[%s9285_s10 + $0x100] sm:$0xff] }
 0x571   :  { %2079 = vmatpush.msra.mxu2 %v4461_v42  ;;  %2002 = vmatpush.msrb.mxu0 %v1971_v52  ;;  %v1963_v42 = vld [vmem:[%s9285_s10 + $0x50] sm:$0xff] }
 0x573   :  { %2080 = vmatpush.msra.mxu2 %v4459_v26  ;;  %2003 = vmatpush.msrb.mxu0 %v1969_v61  ;;  %v1335_v26 = vadd.f32 %v6721_v4, %v6723_v58  ;;  %v1534_v4 = vadd.f32 %v6689_v1, %v6695_v48  ;;  %v1957_v58 = vld [vmem:[%s9285_s10 + $0x20] sm:$0xff]  ;;  %v1955_v1 = vld [vmem:[%s9285_s10 + $0x10] sm:$0xff] }
 0x575   :  { %2004 = vmatpush.msrb.mxu0 %v1967_v21  ;;  %v1346_v61 = vmax.f32 %v1251_v53, %v1335_v26  ;;  %v1347_v26 = vmax.f32 %v1252_v45, %v1338_v19 }
 0x577   :  { %2005 = vmatpush.msrb.mxu0 %v1965_v33  ;;  %v1483_v33 = vmax.f32 %v1346_v61, %v1472_v16 }
 0x579   :  { %2006 = vmatpush.msrb.mxu0 %v1963_v42  ;;  %v1545_v36 = vmax.f32 %v1483_v33, %v1534_v4 }
 0x57b   :  { %2007 = vmatpush.msrb.mxu0 %v1961_v12  ;;  %v1607_v29 = vmax.f32 %v1545_v36, %v1596_v51  ;;  %v1537_v12 = vadd.f32 %v6691_v13, %v6703_v2 }
 0x57d   :  { %2008 = vmatpush.msrb.mxu0 %v1959_v62  ;;  %v1484_v62 = vmax.f32 %v1347_v26, %v1475_v40 }
 0x57f   :  { %2009 = vmatpush.msrb.mxu0 %v1957_v58  ;;  %v1546_v13 = vmax.f32 %v1484_v62, %v1537_v12  ;;  %v4474_v62 = vld [vmem:[%s9285_s10 + $0x168] sm:$0xff] }
 0x581   :  { %2010 = vmatpush.msrb.mxu0 %v1955_v1  ;;  %v1608_v4 = vmax.f32 %v1546_v13, %v1599_v27  ;;  %v1344_v1 = vadd.f32 %v6733_v49, %v6735_v50  ;;  %v1543_v49 = vadd.f32 %v6707_v6, %v6715_v37  ;;  %v1905_v27 = vld [vmem:[%s9288_s29 + $0x10] sm:$0xff]  ;;  %v4466_v13 = vld [vmem:[%s9285_s10 + $0x128] sm:$0xff] }
 0x583   :  { %2011 = vmatpush.msrb.mxu0 %v1953_v8 }
 0x5a9   :  { %v1794_v52 = vpop.f32.mrf.mxu0 }
 0x5af   :  { %v6799_v34 = vpop.f32.mrf.mxu2 }
 0x5b1   :  { %v1797_v53 = vpop.f32.mrf.mxu0 }
 0x5b5   :  { %v1703_v10 = vpop.f32.mrf.mxu1 }
 0x5b6   :  { %v1733_v42 = vadd.f32 %v6799_v34, %v1703_v10  ;;  %v9287_v34 = vld [vmem:[#allocation9_spill] sm:$0xff] }
 0x5b7   :  { %v6819_v31 = vpop.f32.mrf.mxu2  ;;  %v1246_v10 = vadd.f32 %v9287_v34, %v6532_v9  ;;  %v1478_v9 = vadd.f32 %v6745_v14, %v6747_v20  ;;  %v1602_v14 = vadd.f32 %v6764_v23, %v6775_v18  ;;  %v1904_v34 = vld [vmem:[%s9288_s29 + $0x8] sm:$0xff] }
 0x5b8   :  { %v1744_v30 = vmax.f32 %v1607_v29, %v1733_v42 }
 0x5b9   :  { %v1253_v7 = vmax.f32 %v1155_v39, %v1246_v10  ;;  %v1800_v51 = vpop.f32.mrf.mxu0  ;;  %v4482_v39 = vld [vmem:[%s9285_s10 + $0x1a8] sm:$0xff]  ;;  %v4480_v10 = vld [vmem:[%s9285_s10 + $0x198] sm:$0xff] }
 0x5bb   :  { %v1765_v35 = vpop.f32.mrf.mxu3 }
 0x5bc   :  { %v1795_v24 = vadd.f32 %v1794_v52, %v1765_v35  ;;  %v1341_v52 = vadd.f32 %v6729_v41, %v6731_v43  ;;  %v1158_v43 = vadd.f32 %v6717_v28, %v6719_v44 }
 0x5bd   :  { %v1706_v17 = vpop.f32.mrf.mxu1 }
 0x5be   :  { %v1806_v32 = vmax.f32 %v1744_v30, %v1795_v24  ;;  %v1736_v2 = vadd.f32 %v6819_v31, %v1706_v17  ;;  %v1348_v25 = vmax.f32 %v1253_v7, %v1341_v52  ;;  %v1249_v31 = vadd.f32 %v6534_v11, %v6536_v0  ;;  %v4484_v30 = vld [vmem:[%s9285_s10 + $0x1b8] sm:$0xff]  ;;  %v4462_v7 = vld [vmem:[%s9285_s10 + $0x108] sm:$0xff] }
 0x5bf   :  { %v6836_v15 = vpop.f32.mrf.mxu2  ;;  %v1481_v0 = vadd.f32 %v6749_v63, %v6751_v22  ;;  %v4468_v52 = vld [vmem:[%s9285_s10 + $0x138] sm:$0xff] }
 0x5c0   :  { %v1745_v41 = vmax.f32 %v1608_v4, %v1736_v2  ;;  %v1485_v57 = vmax.f32 %v1348_v25, %v1478_v9  ;;  %v1254_v44 = vmax.f32 %v1158_v43, %v1249_v31  ;;  %v1906_v2 = vld [vmem:[%s9288_s29 + $0x18] sm:$0x3f]  ;;  %v1982_v4 = vld [vmem:[%s9285_s10 + $0xe8] sm:$0xff] }
 0x5c1   :  { %v1803_v40 = vpop.f32.mrf.mxu0  ;;  %v4460_v9 = vld [vmem:[%s9285_s10 + $0xf8] sm:$0xff]  ;;  %2026 = vmatpush.msra.mxu1 %v1982_v4  ;;  %v1970_v43 = vld [vmem:[%s9285_s10 + $0x88] sm:$0xff] }
 0x5c2   :  { %v1547_v38 = vmax.f32 %v1485_v57, %v1540_v59  ;;  %v1349_v18 = vmax.f32 %v1254_v44, %v1344_v1  ;;  %v1976_v25 = vld [vmem:[%s9285_s10 + $0xb8] sm:$0xff]  ;;  %v1974_v59 = vld [vmem:[%s9285_s10 + $0xa8] sm:$0xff]  ;;  %v4510_v44 = vld [vmem:[%s9288_s29 + $0x40] sm:$0xff] }
 0x5c3   :  { %v1768_v3 = vpop.f32.mrf.mxu3  ;;  %v1968_v31 = vld [vmem:[%s9285_s10 + $0x78] sm:$0xff]  ;;  %v1962_v57 = vld [vmem:[%s9285_s10 + $0x48] sm:$0xff] }
 0x5c4   :  { %v1798_v58 = vadd.f32 %v1797_v53, %v1768_v3  ;;  %v1609_v11 = vmax.f32 %v1547_v38, %v1602_v14  ;;  %v1486_v36 = vmax.f32 %v1349_v18, %v1481_v0  ;;  %v4478_v53 = vld [vmem:[%s9285_s10 + $0x188] sm:$0xff]  ;;  %v1960_v14 = vld [vmem:[%s9285_s10 + $0x38] sm:$0xff] }
 0x5c5   :  { %v6847_v56 = vpop.f32.mrf.mxu1  ;;  %v4511_v0 = vld [vmem:[%s9288_s29 + $0x48] sm:$0xff] }
 0x5c6   :  { %v1807_v20 = vmax.f32 %v1745_v41, %v1798_v58  ;;  %v1739_v47 = vadd.f32 %v6836_v15, %v6847_v56  ;;  %v1605_v15 = vadd.f32 %v6783_v46, %v6794_v5  ;;  %v1548_v63 = vmax.f32 %v1486_v36, %v1543_v49  ;;  %v1903_v5 = vld [vmem:[%s9288_s29] sm:$0xff]  ;;  %v1980_v58 = vld [vmem:[%s9285_s10 + $0xd8] sm:$0xff]  ;;  %v4548_v18 = vld [vmem:[%s9285_s10 + $0x2c8] sm:$0xff] }
 0x5c7   :  { %v6856_v55 = vpop.f32.mrf.mxu2  ;;  %2027 = vmatpush.msra.mxu1 %v1980_v58  ;;  %v1972_v41 = vld [vmem:[%s9285_s10 + $0x98] sm:$0xff]  ;;  %v4545_v49 = vld [vmem:[%s9285_s10 + $0x2b0] sm:$0xff]  ;;  %2242 = vmatpush.msrb.mxu2 %v4548_v18  ;;  %v4544_v36 = vld [vmem:[%s9285_s10 + $0x2a8] sm:$0xff] }
 0x5c8   :  { %v1746_v50 = vmax.f32 %v1609_v11, %v1739_v47  ;;  %v1610_v29 = vmax.f32 %v1548_v63, %v1605_v15  ;;  %v4512_v11 = vld [vmem:[%s9288_s29 + $0x50] sm:$0xff]  ;;  %v2349_v58 = vld [vmem:[%s9289_s7 + $0x78] sm:$0xff]  ;;  %v2338_v18 = vld [vmem:[%s9289_s7 + $0x20] sm:$0xff] }
 0x5c9   :  { %v4541_v15 = vld [vmem:[%s9285_s10 + $0x290] sm:$0xff] }
 0x5ca   :  { %v4537_v63 = vld [vmem:[%s9285_s10 + $0x270] sm:$0xff] }
 0x5cb   :  { %v1771_v17 = vpop.f32.mrf.mxu3 }
 0x5cd   :  { %v6873_v21 = vpop.f32.mrf.mxu1 }
 0x5ce   :  { %v1742_v22 = vadd.f32 %v6856_v55, %v6873_v21  ;;  %v4488_v55 = vld [vmem:[%s9285_s10 + $0x1d8] sm:$0xff]  ;;  %v4486_v21 = vld [vmem:[%s9285_s10 + $0x1c8] sm:$0xff] }
 0x5cf   :  { %v1856_v48 = vpop.f32.mrf.mxu2 }
 0x5d0   :  { %v1747_v6 = vmax.f32 %v1610_v29, %v1742_v22  ;;  %v4538_v22 = vld [vmem:[%s9285_s10 + $0x278] sm:$0xff]  ;;  %v4533_v29 = vld [vmem:[%s9285_s10 + $0x250] sm:$0xff] }
 0x5d3   :  { %v1774_v8 = vpop.f32.mrf.mxu3 }
 0x5d4   :  { %v1804_v24 = vadd.f32 %v1803_v40, %v1774_v8  ;;  %v4540_v8 = vld [vmem:[%s9285_s10 + $0x288] sm:$0xff] }
 0x5d5   :  { %v1827_v16 = vpop.f32.mrf.mxu1  ;;  %v4536_v40 = vld [vmem:[%s9285_s10 + $0x268] sm:$0xff] }
 0x5d6   :  { %v1857_v35 = vadd.f32 %v1856_v48, %v1827_v16  ;;  %v1801_v48 = vadd.f32 %v1800_v51, %v1771_v17  ;;  %v1809_v26 = vmax.f32 %v1747_v6, %v1804_v24  ;;  %v4476_v16 = vld [vmem:[%s9285_s10 + $0x178] sm:$0xff]  ;;  %v1966_v17 = vld [vmem:[%s9285_s10 + $0x68] sm:$0xff]  ;;  %v4531_v6 = vld [vmem:[%s9285_s10 + $0x240] sm:$0xff] }
 0x5d7   :  { %v1859_v60 = vpop.f32.mrf.mxu2  ;;  %v1954_v51 = vld [vmem:[%s9285_s10 + $0x8] sm:$0xff]  ;;  %v4534_v24 = vld [vmem:[%s9285_s10 + $0x258] sm:$0xff] }
 0x5d8   :  { %v6903_v61 = vmax.f32 %v1806_v32, %v1857_v35  ;;  %v1808_v56 = vmax.f32 %v1746_v50, %v1801_v48  ;;  %v4472_v32 = vld [vmem:[%s9285_s10 + $0x158] sm:$0xff]  ;;  %v4470_v35 = vld [vmem:[%s9285_s10 + $0x148] sm:$0xff] }
 0x5d9   :  { %v4513_v48 = vld [vmem:[%s9288_s29 + $0x58] sm:$0x3f] }
 0x5da   :  { %4502 = vmatmul.msk.f32.vlgmr.msra.gmra.mxu2 %vm1983_vm6, %v6903_v61  ;;  %v4546_v50 = vld [vmem:[%s9285_s10 + $0x2b8] sm:$0xff] }
 0x5db   :  { %2243 = vmatpush.msrb.mxu2 %v4546_v50  ;;  %v2337_v50 = vld [vmem:[%s9289_s7 + $0x18] sm:$0xff] }
 0x5dd   :  { %v1830_v54 = vpop.f32.mrf.mxu1  ;;  %2244 = vmatpush.msrb.mxu2 %v4544_v36  ;;  %v2336_v36 = vld [vmem:[%s9289_s7 + $0x10] sm:$0xff] }
 0x5de   :  { %v1860_v33 = vadd.f32 %v1859_v60, %v1830_v54  ;;  %v4464_v60 = vld [vmem:[%s9285_s10 + $0x118] sm:$0xff] }
 0x5df   :  { %v1862_v23 = vpop.f32.mrf.mxu2  ;;  %v1964_v54 = vld [vmem:[%s9285_s10 + $0x58] sm:$0xff] }
 0x5e0   :  { %v6921_v28 = vmax.f32 %v1807_v20, %v1860_v33  ;;  %v1958_v20 = vld [vmem:[%s9285_s10 + $0x28] sm:$0xff]  ;;  %v1956_v33 = vld [vmem:[%s9285_s10 + $0x18] sm:$0xff] }
 0x5e2   :  { %4503 = vmatmul.msk.f32.gmra.mxu2 %vm1983_vm6, %v6921_v28 }
 0x5e5   :  { %v1833_v19 = vpop.f32.mrf.mxu1 }
 0x5e6   :  { %v1863_v42 = vadd.f32 %v1862_v23, %v1833_v19  ;;  %v4547_v23 = vld [vmem:[%s9285_s10 + $0x2c0] sm:$0xff] }
 0x5e7   :  { %v1865_v37 = vpop.f32.mrf.mxu2  ;;  %v4543_v19 = vld [vmem:[%s9285_s10 + $0x2a0] sm:$0xff] }
 0x5e8   :  { %v1870_v45 = vmax.f32 %v1808_v56, %v1863_v42  ;;  %v4542_v56 = vld [vmem:[%s9285_s10 + $0x298] sm:$0xff]  ;;  %v4539_v42 = vld [vmem:[%s9285_s10 + $0x280] sm:$0xff] }
 0x5e9   :  { %2245 = vmatpush.msrb.mxu2 %v4542_v56 }
 0x5ea   :  { %4504 = vmatmul.msk.f32.gmra.mxu2 %vm1983_vm6, %v1870_v45 }
 0x5eb   :  { %2246 = vmatpush.msrb.mxu2 %v4540_v8  ;;  %v2335_v8 = vld [vmem:[%s9289_s7 + $0x8] sm:$0xff] }
 0x5ed   :  { %v1836_v3 = vpop.f32.mrf.mxu1  ;;  %2247 = vmatpush.msrb.mxu2 %v4538_v22 }
 0x5ee   :  { %v1866_v12 = vadd.f32 %v1865_v37, %v1836_v3  ;;  %v4532_v37 = vld [vmem:[%s9285_s10 + $0x248] sm:$0xff]  ;;  %v4529_v3 = vld [vmem:[%s9285_s10 + $0x230] sm:$0xff] }
 0x5ef   :  { %2248 = vmatpush.msrb.mxu2 %v4536_v40  ;;  %v2353_v40 = vld [vmem:[%s9289_s7 + $0x98] sm:$0xff] }
 0x5f0   :  { %v1871_v46 = vmax.f32 %v1809_v26, %v1866_v12  ;;  %v4530_v26 = vld [vmem:[%s9285_s10 + $0x238] sm:$0xff]  ;;  %v4527_v12 = vld [vmem:[%s9285_s10 + $0x220] sm:$0xff] }
 0x5f1   :  { %2249 = vmatpush.msrb.mxu2 %v4534_v24  ;;  %v2351_v24 = vld [vmem:[%s9289_s7 + $0x88] sm:$0xff] }
 0x5f2   :  { %4489 = vmatpush.msk.msrb.mxu3 %vm1920_vm7, %v1871_v46  ;;  %4505 = vmatmul.msk.f32.gmra.mxu2 %vm1983_vm6, %v1871_v46 }
 0x5f3   :  { %4514 = vmatpush.msk.msra.mxu0 %vm1920_vm7, %v1871_v46  ;;  %2250 = vmatpush.msrb.mxu2 %v4532_v37  ;;  %v2350_v37 = vld [vmem:[%s9289_s7 + $0x80] sm:$0xff] }
 0x5f4   :  { %1937 = vmatpush.msrb.mxu3 %v1870_v45 }
 0x5f5   :  { %2153 = vmatpush.msra.mxu0 %v1870_v45  ;;  %2251 = vmatpush.msrb.mxu2 %v4530_v26 }
 0x5f6   :  { %1938 = vmatpush.msrb.mxu3 %v6921_v28 }
 0x5f7   :  { %2154 = vmatpush.msra.mxu0 %v6921_v28 }
 0x5f8   :  { %1939 = vmatpush.msrb.mxu3 %v6903_v61 }
 0x5f9   :  { %2155 = vmatpush.msra.mxu0 %v6903_v61  ;;  %4490 = vmatmul.msk.f32.vlgmr.msrb.gmra.mxu3 %vm1907_vm8, %v1903_v5  ;;  %v4525_v5 = vld [vmem:[%s9285_s10 + $0x210] sm:$0xff] }
 0x5fa   :  { %2095 = vmatpush.msra.mxu3 %v4488_v55  ;;  %v4526_v55 = vld [vmem:[%s9285_s10 + $0x218] sm:$0xff] }
 0x5fc   :  { %2096 = vmatpush.msra.mxu3 %v4486_v21  ;;  %v4523_v21 = vld [vmem:[%s9285_s10 + $0x200] sm:$0xff] }
 0x5fe   :  { %2097 = vmatpush.msra.mxu3 %v4484_v30  ;;  %v4524_v30 = vld [vmem:[%s9285_s10 + $0x208] sm:$0xff] }
 0x600   :  { %2098 = vmatpush.msra.mxu3 %v4482_v39  ;;  %v4521_v39 = vld [vmem:[%s9285_s10 + $0x1f0] sm:$0xff] }
 0x601   :  { %4491 = vmatmul.msk.f32.gmra.mxu3 %vm1907_vm8, %v1904_v34  ;;  %v4522_v34 = vld [vmem:[%s9285_s10 + $0x1f8] sm:$0xff] }
 0x602   :  { %2099 = vmatpush.msra.mxu3 %v4480_v10 }
 0x604   :  { %2100 = vmatpush.msra.mxu3 %v4478_v53  ;;  %v4519_v53 = vld [vmem:[%s9285_s10 + $0x1e0] sm:$0xff] }
 0x606   :  { %2101 = vmatpush.msra.mxu3 %v4476_v16  ;;  %v4520_v16 = vld [vmem:[%s9285_s10 + $0x1e8] sm:$0xff] }
 0x608   :  { %2102 = vmatpush.msra.mxu3 %v4474_v62 }
 0x609   :  { %4492 = vmatmul.msk.f32.gmra.mxu3 %vm1907_vm8, %v1905_v27 }
 0x60a   :  { %2103 = vmatpush.msra.mxu3 %v4472_v32 }
 0x60c   :  { %2104 = vmatpush.msra.mxu3 %v4470_v35 }
 0x60e   :  { %2105 = vmatpush.msra.mxu3 %v4468_v52 }
 0x610   :  { %2106 = vmatpush.msra.mxu3 %v4466_v13 }
 0x611   :  { %4493 = vmatmul.msk.f32.gmra.mxu3 %vm1907_vm8, %v1906_v2 }
 0x612   :  { %2107 = vmatpush.msra.mxu3 %v4464_v60 }
 0x614   :  { %2108 = vmatpush.msra.mxu3 %v4462_v7 }
 0x616   :  { %2109 = vmatpush.msra.mxu3 %v4460_v9 }
 0x618   :  { %2367 = vmatpush.msrb.mxu3 %v2349_v58 }
 0x619   :  { %4506 = vmatmul.msk.f32.vlgmr.msra.gmra.mxu3 %vm1983_vm6, %v6903_v61  ;;  %v1978_v61 = vld [vmem:[%s9285_s10 + $0xc8] sm:$0xff] }
 0x61a   :  { %2028 = vmatpush.msra.mxu1 %v1978_v61  ;;  %v2348_v61 = vld [vmem:[%s9289_s7 + $0x70] sm:$0xff] }
 0x61b   :  { %2368 = vmatpush.msrb.mxu3 %v2348_v61 }
 0x61c   :  { %2029 = vmatpush.msra.mxu1 %v1976_v25 }
 0x61e   :  { %2030 = vmatpush.msra.mxu1 %v1974_v59  ;;  %v2347_v59 = vld [vmem:[%s9289_s7 + $0x68] sm:$0xff] }
 0x61f   :  { %2369 = vmatpush.msrb.mxu3 %v2347_v59 }
 0x620   :  { %2031 = vmatpush.msra.mxu1 %v1972_v41  ;;  %v2346_v41 = vld [vmem:[%s9289_s7 + $0x60] sm:$0xff] }
 0x621   :  { %4507 = vmatmul.msk.f32.gmra.mxu3 %vm1983_vm6, %v6921_v28 }
 0x622   :  { %2032 = vmatpush.msra.mxu1 %v1970_v43  ;;  %2370 = vmatpush.msrb.mxu3 %v2346_v41  ;;  %v2345_v43 = vld [vmem:[%s9289_s7 + $0x58] sm:$0xff] }
 0x624   :  { %2033 = vmatpush.msra.mxu1 %v1968_v31  ;;  %2371 = vmatpush.msrb.mxu3 %v2345_v43 }
 0x626   :  { %2034 = vmatpush.msra.mxu1 %v1966_v17  ;;  %v2344_v17 = vld [vmem:[%s9289_s7 + $0x50] sm:$0xff] }
 0x627   :  { %2372 = vmatpush.msrb.mxu3 %v2344_v17 }
 0x628   :  { %2035 = vmatpush.msra.mxu1 %v1964_v54  ;;  %v2363_v54 = vld [vmem:[%s9289_s7 + $0xe8] sm:$0xff] }
 0x629   :  { %4508 = vmatmul.msk.f32.gmra.mxu3 %vm1983_vm6, %v1870_v45  ;;  %v4535_v45 = vld [vmem:[%s9285_s10 + $0x260] sm:$0xff] }
 0x62a   :  { %2036 = vmatpush.msra.mxu1 %v1962_v57  ;;  %v2343_v57 = vld [vmem:[%s9289_s7 + $0x48] sm:$0xff] }
 0x62b   :  { %2373 = vmatpush.msrb.mxu3 %v2343_v57 }
 0x62c   :  { %2037 = vmatpush.msra.mxu1 %v1960_v14  ;;  %v2362_v14 = vld [vmem:[%s9289_s7 + $0xe0] sm:$0xff] }
 0x62e   :  { %2038 = vmatpush.msra.mxu1 %v1958_v20 }
 0x630   :  { %2039 = vmatpush.msra.mxu1 %v1956_v33  ;;  %v2342_v33 = vld [vmem:[%s9289_s7 + $0x40] sm:$0xff] }
 0x631   :  { %4509 = vmatmul.msk.f32.gmra.mxu3 %vm1983_vm6, %v1871_v46  ;;  %v4528_v46 = vld [vmem:[%s9285_s10 + $0x228] sm:$0xff] }
 0x632   :  { %2040 = vmatpush.msra.mxu1 %v1954_v51  ;;  %2252 = vmatpush.msrb.mxu2 %v4528_v46  ;;  %v2361_v51 = vld [vmem:[%s9289_s7 + $0xd8] sm:$0xff] }
 0x633   :  { %2374 = vmatpush.msrb.mxu3 %v2342_v33 }
 0x634   :  { %2213 = vmatpush.msrb.mxu1 %v4547_v23  ;;  %2253 = vmatpush.msrb.mxu2 %v4526_v55 }
 0x636   :  { %2214 = vmatpush.msrb.mxu1 %v4545_v49  ;;  %2254 = vmatpush.msrb.mxu2 %v4524_v30  ;;  %v2357_v49 = vld [vmem:[%s9289_s7 + $0xb8] sm:$0xff] }
 0x638   :  { %2215 = vmatpush.msrb.mxu1 %v4543_v19  ;;  %2255 = vmatpush.msrb.mxu2 %v4522_v34  ;;  %v2356_v19 = vld [vmem:[%s9289_s7 + $0xb0] sm:$0xff] }
 0x63a   :  { %2216 = vmatpush.msrb.mxu1 %v4541_v15  ;;  %2256 = vmatpush.msrb.mxu2 %v4520_v16  ;;  %v2355_v15 = vld [vmem:[%s9289_s7 + $0xa8] sm:$0xff] }
 0x63c   :  { %2217 = vmatpush.msrb.mxu1 %v4539_v42  ;;  %2432 = vmatpush.msra.mxu2 %v2363_v54 }
 0x63e   :  { %2218 = vmatpush.msrb.mxu1 %v4537_v63  ;;  %2433 = vmatpush.msra.mxu2 %v2362_v14  ;;  %v2354_v63 = vld [vmem:[%s9289_s7 + $0xa0] sm:$0xff] }
 0x640   :  { %2219 = vmatpush.msrb.mxu1 %v4535_v45  ;;  %2434 = vmatpush.msra.mxu2 %v2361_v51  ;;  %v2334_v45 = vld [vmem:[%s9289_s7] sm:$0xff] }
 0x642   :  { %2220 = vmatpush.msrb.mxu1 %v4533_v29  ;;  %v2352_v29 = vld [vmem:[%s9289_s7 + $0x90] sm:$0xff] }
 0x644   :  { %2221 = vmatpush.msrb.mxu1 %v4531_v6 }
 0x646   :  { %2222 = vmatpush.msrb.mxu1 %v4529_v3 }
 0x648   :  { %2223 = vmatpush.msrb.mxu1 %v4527_v12 }
 0x64a   :  { %2224 = vmatpush.msrb.mxu1 %v4525_v5 }
 0x64c   :  { %2225 = vmatpush.msrb.mxu1 %v4523_v21 }
 0x64e   :  { %2226 = vmatpush.msrb.mxu1 %v4521_v39 }
 0x650   :  { %2227 = vmatpush.msrb.mxu1 %v4519_v53 }
 0x65d   :  { %v7185_v7 = vpop.f32.mrf.mxu2 }
 0x665   :  { %v7189_v4 = vpop.f32.mrf.mxu2 }
 0x66d   :  { %v7208_v31 = vpop.f32.mrf.mxu2 }
 0x67c   :  { %v1941_v1 = vpop.f32.mrf.mxu3 }
 0x67d   :  { %4494 = vmatmul.msk.f32.vlgmr.msrb.gmra.mxu0 %vm1983_vm6, %v1941_v1  ;;  %4498 = vmatmul.msk.f32.vlgmr.msra.gmra.mxu1 %vm1983_vm6, %v1941_v1  ;;  %v2341_v1 = vld [vmem:[%s9289_s7 + $0x38] sm:$0xff] }
 0x67e   :  { %2410 = vmatpush.msra.mxu1 %v2349_v58  ;;  %2389 = vmatpush.msrb.mxu0 %v2363_v54 }
 0x67f   :  { %2375 = vmatpush.msrb.mxu3 %v2341_v1 }
 0x680   :  { %2411 = vmatpush.msra.mxu1 %v2348_v61  ;;  %2390 = vmatpush.msrb.mxu0 %v2362_v14 }
 0x682   :  { %2412 = vmatpush.msra.mxu1 %v2347_v59  ;;  %2391 = vmatpush.msrb.mxu0 %v2361_v51 }
 0x684   :  { %v1944_v38 = vpop.f32.mrf.mxu3  ;;  %2413 = vmatpush.msra.mxu1 %v2346_v41 }
 0x685   :  { %4495 = vmatmul.msk.f32.gmra.mxu0 %vm1983_vm6, %v1944_v38  ;;  %4499 = vmatmul.msk.f32.gmra.mxu1 %vm1983_vm6, %v1944_v38  ;;  %v2360_v38 = vld [vmem:[%s9289_s7 + $0xd0] sm:$0xff] }
 0x686   :  { %2414 = vmatpush.msra.mxu1 %v2345_v43  ;;  %2392 = vmatpush.msrb.mxu0 %v2360_v38 }
 0x687   :  { %2435 = vmatpush.msra.mxu2 %v2360_v38 }
 0x688   :  { %2415 = vmatpush.msra.mxu1 %v2344_v17 }
 0x68a   :  { %2416 = vmatpush.msra.mxu1 %v2343_v57 }
 0x68c   :  { %v1947_v47 = vpop.f32.mrf.mxu3  ;;  %2417 = vmatpush.msra.mxu1 %v2342_v33 }
 0x68d   :  { %4496 = vmatmul.msk.f32.gmra.mxu0 %vm1983_vm6, %v1947_v47  ;;  %4500 = vmatmul.msk.f32.gmra.mxu1 %vm1983_vm6, %v1947_v47 }
 0x68e   :  { %2418 = vmatpush.msra.mxu1 %v2341_v1 }
 0x694   :  { %v1950_v28 = vpop.f32.mrf.mxu3 }
 0x695   :  { %4497 = vmatmul.msk.f32.gmra.mxu0 %vm1983_vm6, %v1950_v28  ;;  %4501 = vmatmul.msk.f32.gmra.mxu1 %vm1983_vm6, %v1950_v28  ;;  %v2340_v28 = vld [vmem:[%s9289_s7 + $0x30] sm:$0xff] }
 0x696   :  { %2376 = vmatpush.msrb.mxu3 %v2340_v28  ;;  %2419 = vmatpush.msra.mxu1 %v2340_v28 }
 0x69c   :  { %v7236_v47 = vpop.f32.mrf.mxu3 }
 0x69d   :  { %4515 = vmatmul.msk.f32.vlgmr.msra.gmra.mxu0 %vm1907_vm8, %v4510_v44  ;;  %v2359_v44 = vld [vmem:[%s9289_s7 + $0xc8] sm:$0xff] }
 0x69e   :  { %2393 = vmatpush.msrb.mxu0 %v2359_v44  ;;  %2436 = vmatpush.msra.mxu2 %v2359_v44 }
 0x6a4   :  { %v2114_v42 = vpop.f32.mrf.mxu3 }
 0x6a5   :  { %4516 = vmatmul.msk.f32.gmra.mxu0 %vm1907_vm8, %v4511_v0  ;;  %v7244_v0 = vpop.f32.mrf.mxu2 }
 0x6ac   :  { %v2117_v12 = vpop.f32.mrf.mxu3 }
 0x6ad   :  { %4517 = vmatmul.msk.f32.gmra.mxu0 %vm1907_vm8, %v4512_v11  ;;  %v2339_v11 = vld [vmem:[%s9289_s7 + $0x28] sm:$0xff] }
 0x6ae   :  { %2377 = vmatpush.msrb.mxu3 %v2339_v11  ;;  %2420 = vmatpush.msra.mxu1 %v2339_v11 }
 0x6b0   :  { %2378 = vmatpush.msrb.mxu3 %v2338_v18  ;;  %2421 = vmatpush.msra.mxu1 %v2338_v18 }
 0x6b2   :  { %2379 = vmatpush.msrb.mxu3 %v2337_v50  ;;  %2422 = vmatpush.msra.mxu1 %v2337_v50 }
 0x6b4   :  { %2380 = vmatpush.msrb.mxu3 %v2336_v36  ;;  %2423 = vmatpush.msra.mxu1 %v2336_v36 }
 0x6b5   :  { %4518 = vmatmul.msk.f32.gmra.mxu0 %vm1907_vm8, %v4513_v48  ;;  %v2358_v48 = vld [vmem:[%s9289_s7 + $0xc0] sm:$0xff] }
 0x6b6   :  { %2394 = vmatpush.msrb.mxu0 %v2358_v48  ;;  %2437 = vmatpush.msra.mxu2 %v2358_v48 }
 0x6b7   :  { %2381 = vmatpush.msrb.mxu3 %v2335_v8  ;;  %2424 = vmatpush.msra.mxu1 %v2335_v8 }
 0x6b8   :  { %2395 = vmatpush.msrb.mxu0 %v2357_v49  ;;  %2438 = vmatpush.msra.mxu2 %v2357_v49 }
 0x6b9   :  { %2382 = vmatpush.msrb.mxu3 %v2334_v45  ;;  %2425 = vmatpush.msra.mxu1 %v2334_v45 }
 0x6ba   :  { %2396 = vmatpush.msrb.mxu0 %v2356_v19  ;;  %2439 = vmatpush.msra.mxu2 %v2356_v19 }
 0x6bc   :  { %2397 = vmatpush.msrb.mxu0 %v2355_v15  ;;  %2440 = vmatpush.msra.mxu2 %v2355_v15 }
 0x6be   :  { %2398 = vmatpush.msrb.mxu0 %v2354_v63  ;;  %2441 = vmatpush.msra.mxu2 %v2354_v63 }
 0x6c0   :  { %2399 = vmatpush.msrb.mxu0 %v2353_v40  ;;  %2442 = vmatpush.msra.mxu2 %v2353_v40 }
 0x6c2   :  { %2400 = vmatpush.msrb.mxu0 %v2352_v29  ;;  %2443 = vmatpush.msra.mxu2 %v2352_v29 }
 0x6c4   :  { %2401 = vmatpush.msrb.mxu0 %v2351_v24  ;;  %2444 = vmatpush.msra.mxu2 %v2351_v24 }
 0x6c6   :  { %2402 = vmatpush.msrb.mxu0 %v2350_v37  ;;  %2445 = vmatpush.msra.mxu2 %v2350_v37 }
 0x6fa   :  { %v7161_v10 = vpop.f32.mrf.mxu0  ;;  %v7183_v60 = vpop.f32.mrf.mxu1 }
 0x6fb   :  { %v2083_v46 = vadd.f32 %v7185_v7, %v7161_v10  ;;  %v2112_v30 = vadd.f32 %v7236_v47, %v7183_v60 }
 0x702   :  { %v7169_v62 = vpop.f32.mrf.mxu0  ;;  %v7187_v9 = vpop.f32.mrf.mxu1 }
 0x703   :  { %v2086_v3 = vadd.f32 %v7189_v4, %v7169_v62  ;;  %v2115_v21 = vadd.f32 %v2114_v42, %v7187_v9 }
 0x70a   :  { %v7171_v27 = vpop.f32.mrf.mxu0  ;;  %v7197_v25 = vpop.f32.mrf.mxu1 }
 0x70b   :  { %v2089_v5 = vadd.f32 %v7208_v31, %v7171_v27  ;;  %v2118_v53 = vadd.f32 %v2117_v12, %v7197_v25  ;;  %v2120_v25 = vpop.f32.mrf.mxu3 }
 0x712   :  { %v7173_v32 = vpop.f32.mrf.mxu0  ;;  %v7222_v20 = vpop.f32.mrf.mxu1 }
 0x713   :  { %v2121_v17 = vadd.f32 %v2120_v25, %v7222_v20 }
 0x71a   :  { %v2157_v35 = vpop.f32.mrf.mxu0 }
 0x71b   :  { %4549 = vmatmul.msk.f32.vlgmr.msrb.gmra.mxu1 %vm1983_vm6, %v2157_v35  ;;  %4553 = vmatmul.msk.f32.vlgmr.msrb.gmra.mxu2 %vm1983_vm6, %v2157_v35  ;;  %v2092_v35 = vadd.f32 %v7244_v0, %v7173_v32 }
 0x722   :  { %v2160_v52 = vpop.f32.mrf.mxu0 }
 0x723   :  { %4550 = vmatmul.msk.f32.gmra.mxu1 %vm1983_vm6, %v2160_v52  ;;  %4554 = vmatmul.msk.f32.gmra.mxu2 %vm1983_vm6, %v2160_v52 }
 0x72a   :  { %v2163_v13 = vpop.f32.mrf.mxu0 }
 0x72b   :  { %4551 = vmatmul.msk.f32.gmra.mxu1 %vm1983_vm6, %v2163_v13  ;;  %4555 = vmatmul.msk.f32.gmra.mxu2 %vm1983_vm6, %v2163_v13 }
 0x732   :  { %v2166_v2 = vpop.f32.mrf.mxu0 }
 0x733   :  { %4552 = vmatmul.msk.f32.gmra.mxu1 %vm1983_vm6, %v2166_v2  ;;  %4556 = vmatmul.msk.f32.gmra.mxu2 %vm1983_vm6, %v2166_v2  ;;  %vm4019_vm6 = vcmask 48128  }
 0x798   :  { %v2229_v23 = vpop.f32.mrf.mxu1 }
 0x799   :  { %v7302_v39 = vadd.f32 %v2229_v23, %v2083_v46 }
 0x79b   :  { %v2303_v13 = vmul.f32 %v7302_v39, %v7302_v39 }
 0x79e   :  { %v2258_v56 = vpop.f32.mrf.mxu2 }
 0x79f   :  { %v7309_v62 = vadd.f32 %v2258_v56, %v2112_v30 }
 0x7a0   :  { %v2232_v22 = vpop.f32.mrf.mxu1 }
 0x7a1   :  { %v7297_v55 = vadd.f32 %v2232_v22, %v2086_v3  ;;  %v2304_v32 = vmul.f32 %v7309_v62, %v7309_v62  ;;  %v2289_v14 = vsel %vm2288_vm9, %v7309_v62, 0.0 }
 0x7a3   :  { %v2305_v10 = vmul.f32 %v7297_v55, %v7297_v55  ;;  %v2278_v2 = vadd.f32 %v7297_v55, %v7302_v39  ;;  %v2321_v0 = vsel %vm2288_vm9, %v2304_v32, 0.0 }
 0x7a5   :  { %v2311_v58 = vadd.f32 %v2305_v10, %v2303_v13 }
 0x7a6   :  { %v2261_v6 = vpop.f32.mrf.mxu2 }
 0x7a7   :  { %v7307_v16 = vadd.f32 %v2261_v6, %v2115_v21 }
 0x7a8   :  { %v2235_v26 = vpop.f32.mrf.mxu1 }
 0x7a9   :  { %v7304_v34 = vadd.f32 %v2235_v26, %v2089_v5  ;;  %v2306_v9 = vmul.f32 %v7307_v16, %v7307_v16  ;;  %v2290_v59 = vsel %vm2288_vm9, %v7307_v16, 0.0 }
 0x7aa   :  { %v2291_v38 = vadd.f32 %v2290_v59, %v2289_v14 }
 0x7ab   :  { %v2307_v60 = vmul.f32 %v7304_v34, %v7304_v34  ;;  %v2279_v61 = vadd.f32 %v2278_v2, %v7304_v34  ;;  %v2322_v33 = vsel %vm2288_vm9, %v2306_v9, 0.0  ;;  %v2473_v9 = vld [vmem:[%s9290_s5 + $0x18] sm:$0xff] }
 0x7ac   :  { %v2323_v48 = vadd.f32 %v2322_v33, %v2321_v0  ;;  %2512 = vmatpush.msra.mxu0 %v2473_v9 }
 0x7ad   :  { %v2312_v54 = vadd.f32 %v2311_v58, %v2307_v60  ;;  %v2470_v58 = vld [vmem:[%s9290_s5] sm:$0xff] }
 0x7ae   :  { %v2264_v27 = vpop.f32.mrf.mxu2 }
 0x7af   :  { %v7315_v52 = vadd.f32 %v2264_v27, %v2118_v53 }
 0x7b0   :  { %v2238_v7 = vpop.f32.mrf.mxu1 }
 0x7b1   :  { %v7325_v4 = vadd.f32 %v2238_v7, %v2092_v35  ;;  %v2308_v41 = vmul.f32 %v7315_v52, %v7315_v52  ;;  %v2292_v51 = vsel %vm2288_vm9, %v7315_v52, 0.0  ;;  %v2472_v7 = vld [vmem:[%s9290_s5 + $0x10] sm:$0xff] }
 0x7b2   :  { %v2293_v23 = vadd.f32 %v2292_v51, %v2291_v38  ;;  %2492 = vmatpush.msrb.mxu2 %v2472_v7  ;;  %2535 = vmatpush.msra.mxu3 %v2472_v7  ;;  %v7447_v7 = vld [vmem:[%s8897_s16 + $0x1c0] sm:$0xff] }
 0x7b3   :  { %v2280_v43 = vsel %vm1920_vm7, %v7325_v4, 0.0  ;;  %v2309_v31 = vmul.f32 %v7325_v4, %v7325_v4  ;;  %v2324_v20 = vsel %vm2288_vm9, %v2308_v41, 0.0 }
 0x7b4   :  { %v2281_v57 = vadd.f32 %v2280_v43, %v2279_v61  ;;  %v2325_v36 = vadd.f32 %v2324_v20, %v2323_v48  ;;  %v2471_v61 = vld [vmem:[%s9290_s5 + $0x8] sm:$0xff]  ;;  %2493 = vmatpush.msrb.mxu2 %v2470_v58  ;;  %2536 = vmatpush.msra.mxu3 %v2470_v58  ;;  %v2467_v20 = vld [vmem:[%s8895_s14] sm:$0x1]  ;;  %v7462_v58 = vld [vmem:[%s8897_s16 + $0x1b8] sm:$0xff]  ;;  %s4230_s14 = sshll.u32 %s8909_s28, 4  ;;  %s4231_s14 = int_to_ptr.hbm [resolvable:$true] %s4230_s14 }
 0x7b5   :  { %v2313_v1 = vsel %vm1920_vm7, %v2309_v31, 0.0  ;;  %2513 = vmatpush.msra.mxu0 %v2471_v61 }
 0x7b6   :  { %v2282_v47 = vrot.slane %v2281_v57, 4  ;;  %v2314_v28 = vadd.f32 %v2313_v1, %v2312_v54  ;;  %v2267_v44 = vpop.f32.mrf.mxu2 }
 0x7b7   :  { %v7347_v11 = vadd.f32 %v2267_v44, %v2121_v17 }
 0x7b8   :  { %v2283_v18 = vadd.f32 %v2282_v47, %v2281_v57  ;;  %v2315_v49 = vrot.slane %v2314_v28, 4  ;;  %v2454_v47 = vld [vmem:[%s8894_s13] sm:$0x1] }
 0x7b9   :  { %v2295_v50 = vsel %vm2294_vm10, %v7347_v11, 0.0  ;;  %v2310_v19 = vmul.f32 %v7347_v11, %v7347_v11 }
 0x7ba   :  { %v2284_v15 = vrot.slane %v2283_v18, 2  ;;  %v2316_v56 = vadd.f32 %v2315_v49, %v2314_v28  ;;  %v2296_v42 = vadd.f32 %v2295_v50, %v2293_v23 }
 0x7bb   :  { %v2326_v8 = vsel %vm2294_vm10, %v2310_v19, 0.0 }
 0x7bc   :  { %v2285_v63 = vadd.f32 %v2284_v15, %v2283_v18  ;;  %v2317_v22 = vrot.slane %v2316_v56, 2  ;;  %v2297_v45 = vrot.slane %v2296_v42, 4  ;;  %v2327_v40 = vadd.f32 %v2326_v8, %v2325_v36 }
 0x7be   :  { %v2286_v29 = vrot.slane %v2285_v63, 1  ;;  %v2318_v24 = vadd.f32 %v2317_v22, %v2316_v56  ;;  %v2298_v6 = vadd.f32 %v2297_v45, %v2296_v42  ;;  %v2328_v37 = vrot.slane %v2327_v40, 4 }
 0x7c0   :  { %v2299_v3 = vrot.slane %v2298_v6, 2  ;;  %v2329_v26 = vadd.f32 %v2328_v37, %v2327_v40  ;;  %v2287_v12 = vadd.f32 %v2286_v29, %v2285_v63  ;;  %v2319_v46 = vrot.slane %v2318_v24, 1 }
 0x7c2   :  { %v2300_v5 = vadd.f32 %v2299_v3, %v2298_v6  ;;  %v2330_v21 = vrot.slane %v2329_v26, 2  ;;  %2383 = vmatmul.f32.vlgmr.msrb.gmra.mxu3 %v2287_v12  ;;  %v2320_v30 = vadd.f32 %v2319_v46, %v2318_v24 }
 0x7c4   :  { %v2301_v53 = vrot.slane %v2300_v5, 1  ;;  %v2331_v10 = vadd.f32 %v2330_v21, %v2329_v26  ;;  %2426 = vmatmul.f32.vlgmr.msra.gmra.mxu1 %v2320_v30  ;;  %v2589_v30 = vld [vmem:[%s8896_s15] sm:$0xff] }
 0x7c6   :  { %v2302_v27 = vadd.f32 %v2301_v53, %v2300_v5  ;;  %v2332_v35 = vrot.slane %v2331_v10, 1  ;;  %v7407_v53 = vld [vmem:[%s8897_s16 + $0x1d8] sm:$0xff] }
 0x7c8   :  { %v2333_v13 = vadd.f32 %v2332_v35, %v2331_v10  ;;  %4557 = vmatmul.msk.f32.vlgmr.msrb.gmra.mxu0 %vm2288_vm9, %v2302_v27  ;;  %v7417_v27 = vld [vmem:[%s8897_s16 + $0x168] sm:$0xff]  ;;  %v7422_v35 = vld [vmem:[%s8897_s16 + $0x1d0] sm:$0xff] }
 0x7c9   :  { %2555 = vmatpush.msrb.mxu0 %v2473_v9  ;;  %v2590_v9 = vld [vmem:[%s8896_s15 + $0x8] sm:$0x3f] }
 0x7ca   :  { %4558 = vmatmul.msk.f32.vlgmr.msra.gmra.mxu2 %vm2288_vm9, %v2333_v13  ;;  %v7430_v13 = vld [vmem:[%s8897_s16 + $0x160] sm:$0xff] }
 0x7cb   :  { %2556 = vmatpush.msrb.mxu0 %v2471_v61  ;;  %9294 = vst [vmem:[#allocation7_spill] sm:$0xff] %v7430_v13  ;;  %v7470_v61 = vld [vmem:[%s8897_s16 + $0x148] sm:$0xff] }
 0x841   :  { %v2427_v59 = vpop.f32.mrf.mxu1 }
 0x845   :  { %v2384_v2 = vpop.f32.mrf.mxu3  ;;  %v2404_v60 = vpop.f32.mrf.mxu0 }
 0x846   :  { %v2405_v32 = vadd.f32 %v2404_v60, %v2384_v2  ;;  %v7435_v2 = vld [vmem:[%s8897_s16 + $0x1c8] sm:$0xff]  ;;  %v7442_v60 = vld [vmem:[%s8897_s16 + $0x158] sm:$0xff] }
 0x848   :  { %v2450_v25 = vmul.f32 0.0022222223, %v2405_v32  ;;  %v7457_v32 = vld [vmem:[%s8897_s16 + $0x150] sm:$0xff] }
 0x84a   :  { %v2452_v31 = vmul.f32 %v2450_v25, %v2450_v25 }
 0x84d   :  { %v2447_v41 = vpop.f32.mrf.mxu2 }
 0x84e   :  { %v2448_v43 = vadd.f32 %v2447_v41, %v2427_v59  ;;  %v7480_v59 = vld [vmem:[%s8897_s16 + $0xe8] sm:$0xff]  ;;  %v7487_v41 = vld [vmem:[%s8897_s16 + $0xe0] sm:$0xff] }
 0x84f   :  { %2710 = vmatpush.msra.mxu2 %v7480_v59 }
 0x850   :  { %v2451_v17 = vmul.f32 0.0022222223, %v2448_v43  ;;  %v7492_v43 = vld [vmem:[%s8897_s16 + $0x78] sm:$0xff] }
 0x851   :  { %2711 = vmatpush.msra.mxu2 %v7487_v41  ;;  %2685 = vmatpush.msrb.mxu1 %v7492_v43 }
 0x852   :  { %v2453_v54 = vsub.f32 %v2451_v17, %v2452_v31  ;;  %v7498_v31 = vld [vmem:[%s8897_s16 + $0x140] sm:$0xff]  ;;  %v7503_v17 = vld [vmem:[%s8897_s16 + $0x1a8] sm:$0xff] }
 0x854   :  { %v2455_v57 = vadd.f32 1e-05, %v2453_v54  ;;  %v7511_v54 = vld [vmem:[%s8897_s16 + $0xd8] sm:$0xff] }
 0x855   :  { %2712 = vmatpush.msra.mxu2 %v7511_v54 }
 0x856   :  { %4789 = vrsqrt.f32 %v2455_v57  ;;  %vm2462_vm12 = vweird.f32 %v2455_v57 }
 0x85c   :  { %v4790_v14 = vpop.eup %4789 }
 0x85d   :  { %v2457_v33 = vmul.f32 %v4790_v14, %v2455_v57  ;;  %vm2463_vm11 = vweird.f32 %v4790_v14  ;;  %v7516_v57 = vld [vmem:[%s8897_s16 + $0x70] sm:$0xff] }
 0x85e   :  { %vm2464_vm13 = vmor %vm2462_vm12, %vm2463_vm11  ;;  %2686 = vmatpush.msrb.mxu1 %v7516_v57 }
 0x85f   :  { %v2458_v51 = vmul.f32 %v4790_v14, %v2457_v33  ;;  %v7526_v33 = vld [vmem:[%s8897_s16 + $0x1a0] sm:$0xff] }
 0x861   :  { %v2459_v1 = vmul.f32 0.5, %v2458_v51  ;;  %v7535_v51 = vld [vmem:[%s8897_s16 + $0xd0] sm:$0xff] }
 0x862   :  { %9295 = vst [vmem:[#allocation13_spill] sm:$0xff] %v7535_v51  ;;  %2713 = vmatpush.msra.mxu2 %v7535_v51 }
 0x863   :  { %v2460_v38 = vsub.f32 1.5, %v2459_v1  ;;  %v7540_v1 = vld [vmem:[%s8897_s16 + $0x68] sm:$0xff] }
 0x864   :  { %2687 = vmatpush.msrb.mxu1 %v7540_v1 }
 0x865   :  { %v2461_v28 = vmul.f32 %v4790_v14, %v2460_v38  ;;  %v7545_v38 = vld [vmem:[%s8897_s16 + $0x130] sm:$0xff] }
 0x867   :  { %v2465_v44 = vsel %vm2464_vm13, %v4790_v14, %v2461_v28  ;;  %v7521_v14 = vld [vmem:[%s8897_s16 + $0x138] sm:$0xff]  ;;  %v7559_v28 = vld [vmem:[%s8897_s16 + $0xc8] sm:$0xff] }
 0x868   :  { %v2466_v0 = vmul.f32 %v2465_v44, %v2454_v47  ;;  %v7550_v47 = vld [vmem:[%s8897_s16 + $0x198] sm:$0xff]  ;;  %v7564_v44 = vld [vmem:[%s8897_s16 + $0x60] sm:$0xff]  ;;  %2714 = vmatpush.msra.mxu2 %v7559_v28 }
 0x869   :  { %2688 = vmatpush.msrb.mxu1 %v7564_v44 }
 0x86a   :  { %v2468_v48 = vmul.f32 %v2466_v0, %v2450_v25  ;;  %4559 = vmatmul.msk.f32.vlgmr.msrb.gmra.mxu2 %vm2474_vm14, %v2466_v0  ;;  %4560 = vmatmul.msk.f32.vlgmr.msra.gmra.mxu0 %vm2474_vm14, %v2466_v0  ;;  %v7475_v25 = vld [vmem:[%s8897_s16 + $0x1b0] sm:$0xff]  ;;  %v7569_v0 = vld [vmem:[%s8897_s16 + $0x128] sm:$0xff] }
 0x86c   :  { %v2469_v23 = vsub.f32 %v2467_v20, %v2468_v48  ;;  %v7574_v20 = vld [vmem:[%s8897_s16 + $0x190] sm:$0xff]  ;;  %v7583_v48 = vld [vmem:[%s8897_s16 + $0xc0] sm:$0xff] }
 0x86d   :  { %2715 = vmatpush.msra.mxu2 %v7583_v48 }
 0x86e   :  { %4561 = vmatmul.msk.f32.vlgmr.msra.gmra.mxu3 %vm2474_vm14, %v2469_v23 }
 0x872   :  { %4562 = vmatmul.msk.f32.vlgmr.msrb.gmra.mxu0 %vm2474_vm14, %v2469_v23  ;;  %v7588_v23 = vld [vmem:[%s8897_s16 + $0x58] sm:$0xff] }
 0x873   :  { %2689 = vmatpush.msrb.mxu1 %v7588_v23 }
 0x8e7   :  { %v2515_v18 = vpop.f32.mrf.mxu0 }
 0x8e8   :  { %v2562_v49 = vperm.slane %v2515_v18, 0  ;;  %v7593_v18 = vld [vmem:[%s8897_s16 + $0x120] sm:$0xff] }
 0x8e9   :  { %9296 = vst [vmem:[#allocation8_spill] sm:$0xff] %v7593_v18 }
 0x8ea   :  { %v2570_v15 = vmul.f32 %v2562_v49, %v7347_v11  ;;  %v2568_v42 = vmul.f32 %v2562_v49, %v7315_v52  ;;  %v2566_v22 = vmul.f32 %v2562_v49, %v7307_v16  ;;  %v2564_v37 = vmul.f32 %v2562_v49, %v7309_v62  ;;  %v7598_v49 = vld [vmem:[%s8897_s16 + $0x188] sm:$0xff] }
 0x8ed   :  { %v2495_v50 = vpop.f32.mrf.mxu2 }
 0x8ee   :  { %v2561_v19 = vperm.slane %v2495_v50, 0  ;;  %v7607_v50 = vld [vmem:[%s8897_s16 + $0xb8] sm:$0xff] }
 0x8ef   :  { %v2558_v36 = vpop.f32.mrf.mxu0  ;;  %2716 = vmatpush.msra.mxu2 %v7607_v50 }
 0x8f0   :  { %v2572_v56 = vperm.slane %v2558_v36, 0  ;;  %v2569_v8 = vmul.f32 %v2561_v19, %v7325_v4  ;;  %v2567_v24 = vmul.f32 %v2561_v19, %v7304_v34  ;;  %v2565_v6 = vmul.f32 %v2561_v19, %v7297_v55  ;;  %v7617_v36 = vld [vmem:[%s8897_s16 + $0x118] sm:$0xff] }
 0x8f1   :  { %v2538_v63 = vpop.f32.mrf.mxu3  ;;  %v2563_v52 = vmul.f32 %v2561_v19, %v7302_v39  ;;  %v7612_v19 = vld [vmem:[%s8897_s16 + $0x50] sm:$0xff]  ;;  %9297 = vst [vmem:[#allocation15_spill] sm:$0xff] %v7617_v36 }
 0x8f2   :  { %v2580_v45 = vadd.f32 %v2572_v56, %v2570_v15  ;;  %v2571_v40 = vperm.slane %v2538_v63, 0  ;;  %v2578_v29 = vadd.f32 %v2572_v56, %v2568_v42  ;;  %v2576_v12 = vadd.f32 %v2572_v56, %v2566_v22  ;;  %v7622_v15 = vld [vmem:[%s8897_s16 + $0x180] sm:$0xff]  ;;  %v7636_v42 = vld [vmem:[%s8897_s16 + $0x48] sm:$0xff]  ;;  %v7646_v63 = vld [vmem:[%s8897_s16 + $0x178] sm:$0xff]  ;;  %2690 = vmatpush.msrb.mxu1 %v7612_v19 }
 0x8f3   :  { %v2574_v34 = vadd.f32 %v2572_v56, %v2564_v37  ;;  %v7631_v56 = vld [vmem:[%s8897_s16 + $0xb0] sm:$0xff]  ;;  %v7655_v22 = vld [vmem:[%s8897_s16 + $0xa8] sm:$0xff]  ;;  %v7691_v37 = vld [vmem:[%s8897_s16 + $0x38] sm:$0xff] }
 0x8f4   :  { %v7379_v3 = vmax.f32 %v2580_v45, 0.0  ;;  %v2579_v11 = vadd.f32 %v2571_v40, %v2569_v8  ;;  %v2577_v26 = vadd.f32 %v2571_v40, %v2567_v24  ;;  %v7386_v16 = vmax.f32 %v2578_v29, 0.0  ;;  %v7641_v8 = vld [vmem:[%s8897_s16 + $0x110] sm:$0xff]  ;;  %v7660_v45 = vld [vmem:[%s8897_s16 + $0x40] sm:$0xff]  ;;  %2717 = vmatpush.msra.mxu2 %v7631_v56  ;;  %2691 = vmatpush.msrb.mxu1 %v7636_v42 }
 0x8f5   :  { %v2575_v46 = vadd.f32 %v2571_v40, %v2565_v6  ;;  %v7393_v62 = vmax.f32 %v2576_v12, 0.0  ;;  %v2573_v5 = vadd.f32 %v2571_v40, %v2563_v52  ;;  %v7399_v21 = vmax.f32 %v2574_v34, 0.0  ;;  %9298 = vst [vmem:[#allocation34_spill] sm:$0xff] %v7641_v8  ;;  %v7665_v40 = vld [vmem:[%s8897_s16 + $0x108] sm:$0xff]  ;;  %v7670_v29 = vld [vmem:[%s8897_s16 + $0x170] sm:$0xff]  ;;  %v7679_v24 = vld [vmem:[%s8897_s16 + $0xa0] sm:$0xff] }
 0x8f6   :  { %v7382_v4 = vmax.f32 %v2579_v11, 0.0  ;;  %4566 = vmatpush.msk.msra.mxu0 %vm1920_vm7, %v7379_v3  ;;  %9291 = vst [vmem:[#allocation31_spill] sm:$0xff] %v7386_v16  ;;  %v7391_v55 = vmax.f32 %v2577_v26, 0.0  ;;  %v7684_v6 = vld [vmem:[%s8897_s16 + $0x100] sm:$0xff]  ;;  %2718 = vmatpush.msra.mxu2 %v7655_v22  ;;  %v7698_v11 = vld [vmem:[%s8897_s16 + $0x98] sm:$0xff]  ;;  %v7711_v12 = vld [vmem:[%s8897_s16 + $0x30] sm:$0xff] }
 0x8f7   :  { %9292 = vst [vmem:[#allocation6_spill] sm:$0xff] %v7393_v62  ;;  %v7397_v39 = vmax.f32 %v2575_v46, 0.0  ;;  %v7411_v10 = vmax.f32 %v2573_v5, 0.0  ;;  %2692 = vmatpush.msrb.mxu1 %v7660_v45  ;;  %v7705_v26 = vld [vmem:[%s8897_s16 + $0xf8] sm:$0xff]  ;;  %v7717_v52 = vld [vmem:[%s8897_s16 + $0x90] sm:$0xff]  ;;  %v7730_v34 = vld [vmem:[%s8897_s16 + $0x28] sm:$0xff] }
 0x8f8   :  { %4563 = vmatpush.msk.msrb.mxu3 %vm1920_vm7, %v7382_v4  ;;  %2639 = vmatpush.msra.mxu0 %v7386_v16  ;;  %9293 = vst [vmem:[#allocation11_spill] sm:$0xff] %v7399_v21  ;;  %v7724_v46 = vld [vmem:[%s8897_s16 + $0xf0] sm:$0xff]  ;;  %v7739_v5 = vld [vmem:[%s8897_s16 + $0x88] sm:$0xff] }
 0x8f9   :  { %9299 = vst [vmem:[#allocation10_spill] sm:$0xff] %v7665_v40  ;;  %2719 = vmatpush.msra.mxu2 %v7679_v24  ;;  %2693 = vmatpush.msrb.mxu1 %v7691_v37 }
 0x8fa   :  { %2616 = vmatpush.msrb.mxu3 %v7391_v55  ;;  %2640 = vmatpush.msra.mxu0 %v7393_v62  ;;  %9300 = vst [vmem:[#allocation17_spill] sm:$0xff] %v7684_v6 }
 0x8fb   :  { %9301 = vst [vmem:[#allocation36_spill] sm:$0xff] %v7705_v26  ;;  %2720 = vmatpush.msra.mxu2 %v7698_v11  ;;  %2694 = vmatpush.msrb.mxu1 %v7711_v12 }
 0x8fc   :  { %2617 = vmatpush.msrb.mxu3 %v7397_v39  ;;  %2641 = vmatpush.msra.mxu0 %v7399_v21  ;;  %9302 = vst [vmem:[#allocation12_spill] sm:$0xff] %v7711_v12  ;;  %v7822_v12 = vld [vmem:[%s8897_s16 + $0x2c0] sm:$0xff] }
 0x8fd   :  { %4567 = vmatmul.msk.f32.vlgmr.msra.gmra.mxu0 %vm1907_vm8, %v2589_v30  ;;  %9303 = vst [vmem:[#allocation18_spill] sm:$0xff] %v7717_v52  ;;  %2721 = vmatpush.msra.mxu2 %v7717_v52 }
 0x8fe   :  { %2787 = vmatpush.msrb.mxu0 %v7407_v53  ;;  %2618 = vmatpush.msrb.mxu3 %v7411_v10  ;;  %9304 = vst [vmem:[#allocation38_spill] sm:$0xff] %v7724_v46 }
 0x8ff   :  { %4564 = vmatmul.msk.f32.vlgmr.msrb.gmra.mxu3 %vm1907_vm8, %v2589_v30  ;;  %9305 = vst [vmem:[#allocation14_spill] sm:$0xff] %v7730_v34  ;;  %v7744_v30 = vld [vmem:[%s8897_s16 + $0x20] sm:$0xff]  ;;  %2695 = vmatpush.msrb.mxu1 %v7730_v34  ;;  %v7765_v34 = vld [vmem:[%s8897_s16 + $0x258] sm:$0xff] }
 0x900   :  { %2762 = vmatpush.msra.mxu3 %v7417_v27  ;;  %2788 = vmatpush.msrb.mxu0 %v7422_v35  ;;  %9306 = vst [vmem:[#allocation19_spill] sm:$0xff] %v7739_v5 }
 0x901   :  { %9307 = vst [vmem:[#allocation40_spill] sm:$0xff] %v7744_v30  ;;  %2722 = vmatpush.msra.mxu2 %v7739_v5  ;;  %2696 = vmatpush.msrb.mxu1 %v7744_v30  ;;  %v7786_v30 = vld [vmem:[%s8897_s16 + $0x8] sm:$0xff] }
 0x902   :  { %2763 = vmatpush.msra.mxu3 %v7430_v13  ;;  %2789 = vmatpush.msrb.mxu0 %v7435_v2  ;;  %9310 = vst [vmem:[#allocation62_spill] sm:$0xff] %v7765_v34 }
 0x903   :  { %9313 = vst [vmem:[#allocation16_spill] sm:$0xff] %v7786_v30 }
 0x904   :  { %2764 = vmatpush.msra.mxu3 %v7442_v60  ;;  %2790 = vmatpush.msrb.mxu0 %v7447_v7  ;;  %9319 = vst [vmem:[#allocation29_spill] sm:$0xff] %v7822_v12 }
 0x905   :  { %4568 = vmatmul.msk.f32.gmra.mxu0 %vm1907_vm8, %v2590_v9 }
 0x906   :  { %2765 = vmatpush.msra.mxu3 %v7457_v32  ;;  %2791 = vmatpush.msrb.mxu0 %v7462_v58 }
 0x907   :  { %4565 = vmatmul.msk.f32.gmra.mxu3 %vm1907_vm8, %v2590_v9  ;;  %v7754_v9 = vld [vmem:[%s8897_s16 + $0x80] sm:$0xff] }
 0x908   :  { %2766 = vmatpush.msra.mxu3 %v7470_v61  ;;  %2792 = vmatpush.msrb.mxu0 %v7475_v25  ;;  %9308 = vst [vmem:[#allocation58_spill] sm:$0xff] %v7754_v9 }
 0x909   :  { %2723 = vmatpush.msra.mxu2 %v7754_v9  ;;  %v7791_v9 = vld [vmem:[%s8897_s16 + $0x248] sm:$0xff] }
 0x90a   :  { %2767 = vmatpush.msra.mxu3 %v7498_v31  ;;  %2793 = vmatpush.msrb.mxu0 %v7503_v17  ;;  %9314 = vst [vmem:[#allocation20_spill] sm:$0xff] %v7791_v9 }
 0x90b   :  { %2841 = vmatpush.msrb.mxu2 %v7765_v34  ;;  %v7804_v34 = vld [vmem:[%s8897_s16 + $0x240] sm:$0xff] }
 0x90c   :  { %2768 = vmatpush.msra.mxu3 %v7521_v14  ;;  %2794 = vmatpush.msrb.mxu0 %v7526_v33  ;;  %9316 = vst [vmem:[#allocation23_spill] sm:$0xff] %v7804_v34 }
 0x90e   :  { %2769 = vmatpush.msra.mxu3 %v7545_v38  ;;  %2795 = vmatpush.msrb.mxu0 %v7550_v47 }
 0x910   :  { %2770 = vmatpush.msra.mxu3 %v7569_v0  ;;  %2796 = vmatpush.msrb.mxu0 %v7574_v20 }
 0x912   :  { %2771 = vmatpush.msra.mxu3 %v7593_v18  ;;  %2797 = vmatpush.msrb.mxu0 %v7598_v49 }
 0x914   :  { %2772 = vmatpush.msra.mxu3 %v7617_v36  ;;  %2798 = vmatpush.msrb.mxu0 %v7622_v15 }
 0x916   :  { %2773 = vmatpush.msra.mxu3 %v7641_v8  ;;  %2799 = vmatpush.msrb.mxu0 %v7646_v63 }
 0x918   :  { %2774 = vmatpush.msra.mxu3 %v7665_v40  ;;  %2800 = vmatpush.msrb.mxu0 %v7670_v29 }
 0x91a   :  { %4640 = vmatpush.msk.msra.mxu0 %vm1920_vm7, %v7379_v3  ;;  %2775 = vmatpush.msra.mxu3 %v7684_v6 }
 0x91c   :  { %2934 = vmatpush.msra.mxu0 %v7386_v16  ;;  %2776 = vmatpush.msra.mxu3 %v7705_v26  ;;  %v7778_v16 = vld [vmem:[%s8897_s16 + $0x250] sm:$0xff] }
 0x91d   :  { %9312 = vst [vmem:[#allocation21_spill] sm:$0xff] %v7778_v16  ;;  %2842 = vmatpush.msrb.mxu2 %v7778_v16  ;;  %v7816_v16 = vld [vmem:[%s8897_s16 + $0x238] sm:$0xff] }
 0x91e   :  { %2935 = vmatpush.msra.mxu0 %v7393_v62  ;;  %2777 = vmatpush.msra.mxu3 %v7724_v46  ;;  %v7759_v62 = vld [vmem:[%s8897_s16 + $0x18] sm:$0xff]  ;;  %9318 = vst [vmem:[#allocation42_spill] sm:$0xff] %v7816_v16 }
 0x91f   :  { %9309 = vst [vmem:[#allocation60_spill] sm:$0xff] %v7759_v62  ;;  %2697 = vmatpush.msrb.mxu1 %v7759_v62  ;;  %v7799_v62 = vld [vmem:[%s8897_s16] sm:$0xff]  ;;  %2843 = vmatpush.msrb.mxu2 %v7791_v9  ;;  %v7834_v9 = vld [vmem:[%s8897_s16 + $0x2b8] sm:$0xff] }
 0x920   :  { %4637 = vmatpush.msk.msrb.mxu3 %vm1920_vm7, %v7382_v4  ;;  %2936 = vmatpush.msra.mxu0 %v7399_v21  ;;  %v7772_v21 = vld [vmem:[%s8897_s16 + $0x10] sm:$0xff]  ;;  %9315 = vst [vmem:[#allocation22_spill] sm:$0xff] %v7799_v62 }
 0x921   :  { %9311 = vst [vmem:[#allocation64_spill] sm:$0xff] %v7772_v21  ;;  %2698 = vmatpush.msrb.mxu1 %v7772_v21  ;;  %v7810_v21 = vld [vmem:[%s8897_s16 + $0x2c8] sm:$0xff]  ;;  %2844 = vmatpush.msrb.mxu2 %v7804_v34 }
 0x922   :  { %2911 = vmatpush.msrb.mxu3 %v7391_v55  ;;  %9317 = vst [vmem:[#allocation24_spill] sm:$0xff] %v7810_v21 }
 0x923   :  { %2699 = vmatpush.msrb.mxu1 %v7786_v30  ;;  %v7829_v30 = vld [vmem:[%s8897_s16 + $0x230] sm:$0xff]  ;;  %9321 = vst [vmem:[#allocation25_spill] sm:$0xff] %v7834_v9  ;;  %2845 = vmatpush.msrb.mxu2 %v7816_v16  ;;  %v7853_v16 = vld [vmem:[%s8897_s16 + $0x220] sm:$0xff] }
 0x924   :  { %2912 = vmatpush.msrb.mxu3 %v7397_v39  ;;  %9320 = vst [vmem:[#allocation32_spill] sm:$0xff] %v7829_v30 }
 0x925   :  { %2700 = vmatpush.msrb.mxu1 %v7799_v62  ;;  %v7841_v62 = vld [vmem:[%s8897_s16 + $0x228] sm:$0xff]  ;;  %2846 = vmatpush.msrb.mxu2 %v7829_v30  ;;  %9324 = vst [vmem:[#allocation33_spill] sm:$0xff] %v7853_v16  ;;  %v7865_v30 = vld [vmem:[%s8897_s16 + $0x218] sm:$0xff] }
 0x926   :  { %2913 = vmatpush.msrb.mxu3 %v7411_v10  ;;  %9322 = vst [vmem:[#allocation30_spill] sm:$0xff] %v7841_v62 }
 0x927   :  { %2866 = vmatpush.msra.mxu1 %v7810_v21  ;;  %v7846_v21 = vld [vmem:[%s8897_s16 + $0x2b0] sm:$0xff]  ;;  %2847 = vmatpush.msrb.mxu2 %v7841_v62  ;;  %9326 = vst [vmem:[#allocation46_spill] sm:$0xff] %v7865_v30 }
 0x928   :  { %9323 = vst [vmem:[#allocation44_spill] sm:$0xff] %v7846_v21  ;;  %v7877_v62 = vld [vmem:[%s8897_s16 + $0x210] sm:$0xff] }
 0x929   :  { %2867 = vmatpush.msra.mxu1 %v7822_v12  ;;  %v7858_v12 = vld [vmem:[%s8897_s16 + $0x2a8] sm:$0xff]  ;;  %2848 = vmatpush.msrb.mxu2 %v7853_v16  ;;  %9328 = vst [vmem:[#allocation27_spill] sm:$0xff] %v7877_v62 }
 0x92a   :  { %9325 = vst [vmem:[#allocation26_spill] sm:$0xff] %v7858_v12  ;;  %v7889_v16 = vld [vmem:[%s8897_s16 + $0x208] sm:$0xff] }
 0x92b   :  { %2868 = vmatpush.msra.mxu1 %v7834_v9  ;;  %v7870_v9 = vld [vmem:[%s8897_s16 + $0x2a0] sm:$0xff]  ;;  %2849 = vmatpush.msrb.mxu2 %v7865_v30  ;;  %9330 = vst [vmem:[#allocation37_spill] sm:$0xff] %v7889_v16 }
 0x92c   :  { %9327 = vst [vmem:[#allocation35_spill] sm:$0xff] %v7870_v9  ;;  %v7901_v30 = vld [vmem:[%s8897_s16 + $0x200] sm:$0xff] }
 0x92d   :  { %2869 = vmatpush.msra.mxu1 %v7846_v21  ;;  %v7882_v21 = vld [vmem:[%s8897_s16 + $0x298] sm:$0xff]  ;;  %2850 = vmatpush.msrb.mxu2 %v7877_v62  ;;  %9332 = vst [vmem:[#allocation50_spill] sm:$0xff] %v7901_v30 }
 0x92e   :  { %9329 = vst [vmem:[#allocation48_spill] sm:$0xff] %v7882_v21  ;;  %v7913_v62 = vld [vmem:[%s8897_s16 + $0x1f8] sm:$0xff] }
 0x92f   :  { %2870 = vmatpush.msra.mxu1 %v7858_v12  ;;  %v7894_v12 = vld [vmem:[%s8897_s16 + $0x290] sm:$0xff]  ;;  %2851 = vmatpush.msrb.mxu2 %v7889_v16  ;;  %9334 = vst [vmem:[#allocation52_spill] sm:$0xff] %v7913_v62 }
 0x930   :  { %9331 = vst [vmem:[#allocation28_spill] sm:$0xff] %v7894_v12 }
 0x931   :  { %2871 = vmatpush.msra.mxu1 %v7870_v9  ;;  %v7906_v9 = vld [vmem:[%s8897_s16 + $0x288] sm:$0xff]  ;;  %2852 = vmatpush.msrb.mxu2 %v7901_v30  ;;  %v7938_v30 = vld [vmem:[%s8897_s16 + $0x280] sm:$0xff] }
 0x932   :  { %9333 = vst [vmem:[#allocation39_spill] sm:$0xff] %v7906_v9 }
 0x933   :  { %2872 = vmatpush.msra.mxu1 %v7882_v21  ;;  %v7920_v21 = vld [vmem:[%s8897_s16 + $0x1f0] sm:$0xff]  ;;  %2853 = vmatpush.msrb.mxu2 %v7913_v62  ;;  %9338 = vst [vmem:[#allocation56_spill] sm:$0xff] %v7938_v30 }
 0x934   :  { %9335 = vst [vmem:[#allocation41_spill] sm:$0xff] %v7920_v21 }
 0x935   :  { %2873 = vmatpush.msra.mxu1 %v7894_v12  ;;  %v7926_v12 = vld [vmem:[%s8897_s16 + $0x1e8] sm:$0xff]  ;;  %2854 = vmatpush.msrb.mxu2 %v7920_v21  ;;  %v7945_v21 = vld [vmem:[%s8897_s16 + $0x278] sm:$0xff] }
 0x936   :  { %9336 = vst [vmem:[#allocation54_spill] sm:$0xff] %v7926_v12 }
 0x937   :  { %2874 = vmatpush.msra.mxu1 %v7906_v9  ;;  %2855 = vmatpush.msrb.mxu2 %v7926_v12  ;;  %v7933_v9 = vld [vmem:[%s8897_s16 + $0x1e0] sm:$0xff]  ;;  %9339 = vst [vmem:[#allocation45_spill] sm:$0xff] %v7945_v21  ;;  %v7951_v12 = vld [vmem:[%s8897_s16 + $0x270] sm:$0xff] }
 0x938   :  { %9337 = vst [vmem:[#allocation43_spill] sm:$0xff] %v7933_v9 }
 0x939   :  { %2856 = vmatpush.msrb.mxu2 %v7933_v9  ;;  %2875 = vmatpush.msra.mxu1 %v7938_v30  ;;  %v7957_v9 = vld [vmem:[%s8897_s16 + $0x268] sm:$0xff]  ;;  %v7963_v30 = vld [vmem:[%s8897_s16 + $0x260] sm:$0xff] }
 0x93a   :  { %9340 = vst [vmem:[#allocation47_spill] sm:$0xff] %v7957_v9 }
 0x93b   :  { %2876 = vmatpush.msra.mxu1 %v7945_v21  ;;  %9341 = vst [vmem:[#allocation49_spill] sm:$0xff] %v7963_v30 }
 0x93d   :  { %2877 = vmatpush.msra.mxu1 %v7951_v12 }
 0x93f   :  { %2878 = vmatpush.msra.mxu1 %v7957_v9 }
 0x941   :  { %2879 = vmatpush.msra.mxu1 %v7963_v30 }
 0x97a   :  { %v2643_v21 = vpop.f32.mrf.mxu0 }
 0x97b   :  { %4569 = vmatmul.msk.f32.vlgmr.msra.gmra.mxu2 %vm2288_vm9, %v2643_v21  ;;  %4601 = vmatmul.msk.f32.vlgmr.msrb.gmra.mxu0 %vm2288_vm9, %v2643_v21 }
 0x97c   :  { %3023 = vmatpush.msra.mxu2 %v7407_v53  ;;  %2975 = vmatpush.msrb.mxu0 %v7480_v59 }
 0x97e   :  { %3024 = vmatpush.msra.mxu2 %v7422_v35  ;;  %2976 = vmatpush.msrb.mxu0 %v7487_v41 }
 0x980   :  { %3025 = vmatpush.msra.mxu2 %v7435_v2  ;;  %2977 = vmatpush.msrb.mxu0 %v7511_v54 }
 0x982   :  { %3026 = vmatpush.msra.mxu2 %v7447_v7  ;;  %v2620_v30 = vpop.f32.mrf.mxu3  ;;  %v2646_v9 = vpop.f32.mrf.mxu0  ;;  %2978 = vmatpush.msrb.mxu0 %v7535_v51 }
 0x983   :  { %2701 = vmatmul.f32.vlgmr.msrb.gmra.mxu1 %v2620_v30  ;;  %2778 = vmatmul.f32.vlgmr.msra.gmra.mxu3 %v2620_v30 }
 0x984   :  { %2998 = vmatpush.msrb.mxu1 %v7417_v27  ;;  %3027 = vmatpush.msra.mxu2 %v7462_v58 }
 0x985   :  { %4570 = vmatmul.msk.f32.gmra.mxu2 %vm2288_vm9, %v2646_v9  ;;  %4602 = vmatmul.msk.f32.gmra.mxu0 %vm2288_vm9, %v2646_v9 }
 0x986   :  { %2999 = vmatpush.msrb.mxu1 %v7430_v13  ;;  %3028 = vmatpush.msra.mxu2 %v7475_v25  ;;  %v4635_v13 = vld [vmem:[%s8896_s15 + $0x10] sm:$0xff] }
 0x987   :  { %2950 = vmatpush.msra.mxu3 %v7492_v43  ;;  %2979 = vmatpush.msrb.mxu0 %v7559_v28 }
 0x988   :  { %3000 = vmatpush.msrb.mxu1 %v7442_v60  ;;  %3029 = vmatpush.msra.mxu2 %v7503_v17 }
 0x989   :  { %2951 = vmatpush.msra.mxu3 %v7516_v57  ;;  %2980 = vmatpush.msrb.mxu0 %v7583_v48 }
 0x98a   :  { %3001 = vmatpush.msrb.mxu1 %v7457_v32  ;;  %3030 = vmatpush.msra.mxu2 %v7526_v33  ;;  %v2623_v51 = vpop.f32.mrf.mxu3 }
 0x98b   :  { %2704 = vmatmul.f32.gmra.mxu1 %v2623_v51  ;;  %2781 = vmatmul.f32.gmra.mxu3 %v2623_v51 }
 0x98c   :  { %3002 = vmatpush.msrb.mxu1 %v7470_v61  ;;  %3031 = vmatpush.msra.mxu2 %v7550_v47 }
 0x98d   :  { %2857 = vmatmul.f32.vlgmr.msrb.gmra.mxu2 %v2620_v30  ;;  %4641 = vmatmul.msk.f32.vlgmr.msra.gmra.mxu0 %vm1907_vm8, %v4635_v13  ;;  %v4636_v30 = vld [vmem:[%s8896_s15 + $0x18] sm:$0x3f] }
 0x98e   :  { %3003 = vmatpush.msrb.mxu1 %v7498_v31  ;;  %3032 = vmatpush.msra.mxu2 %v7574_v20 }
 0x98f   :  { %2952 = vmatpush.msra.mxu3 %v7540_v1  ;;  %2981 = vmatpush.msrb.mxu0 %v7607_v50 }
 0x990   :  { %3004 = vmatpush.msrb.mxu1 %v7521_v14  ;;  %3033 = vmatpush.msra.mxu2 %v7598_v49 }
 0x991   :  { %2953 = vmatpush.msra.mxu3 %v7564_v44  ;;  %2982 = vmatpush.msrb.mxu0 %v7631_v56 }
 0x992   :  { %3005 = vmatpush.msrb.mxu1 %v7545_v38  ;;  %3034 = vmatpush.msra.mxu2 %v7622_v15 }
 0x993   :  { %4633 = vmatmul.msk.f32.vlgmr.msra.gmra.mxu1 %vm2288_vm9, %v2643_v21  ;;  %4638 = vmatmul.msk.f32.vlgmr.msrb.gmra.mxu3 %vm1907_vm8, %v4635_v13  ;;  %v9345_v21 = vld [vmem:[#allocation14_spill] sm:$0xff] }
 0x994   :  { %3006 = vmatpush.msrb.mxu1 %v7569_v0  ;;  %3035 = vmatpush.msra.mxu2 %v7646_v63  ;;  %v9347_v13 = vld [vmem:[#allocation6_spill] sm:$0xff] }
 0x995   :  { %2860 = vmatmul.f32.gmra.mxu2 %v2623_v51  ;;  %4642 = vmatmul.msk.f32.gmra.mxu0 %vm1907_vm8, %v4636_v30  ;;  %v9348_v51 = vld [vmem:[#allocation40_spill] sm:$0xff] }
 0x996   :  { %3007 = vmatpush.msrb.mxu1 %v7593_v18  ;;  %3036 = vmatpush.msra.mxu2 %v7670_v29 }
 0x997   :  { %2954 = vmatpush.msra.mxu3 %v7588_v23  ;;  %2983 = vmatpush.msrb.mxu0 %v7655_v22 }
 0x998   :  { %4651 = vmatpush.msk.msrb.mxu2 %vm1920_vm7, %v7382_v4  ;;  %3008 = vmatpush.msrb.mxu1 %v7617_v36  ;;  %v9342_v4 = vld [vmem:[#allocation12_spill] sm:$0xff]  ;;  %v9367_v36 = vld [vmem:[#allocation35_spill] sm:$0xff] }
 0x999   :  { %2955 = vmatpush.msra.mxu3 %v7612_v19  ;;  %2984 = vmatpush.msrb.mxu0 %v7679_v24 }
 0x99a   :  { %3116 = vmatpush.msrb.mxu2 %v7391_v55  ;;  %3009 = vmatpush.msrb.mxu1 %v7641_v8  ;;  %v9343_v55 = vld [vmem:[#allocation58_spill] sm:$0xff]  ;;  %v9363_v8 = vld [vmem:[#allocation44_spill] sm:$0xff] }
 0x99b   :  { %4634 = vmatmul.msk.f32.gmra.mxu1 %vm2288_vm9, %v2646_v9  ;;  %4639 = vmatmul.msk.f32.gmra.mxu3 %vm1907_vm8, %v4636_v30  ;;  %v9349_v9 = vld [vmem:[#allocation21_spill] sm:$0xff]  ;;  %v9350_v30 = vld [vmem:[#allocation11_spill] sm:$0xff] }
 0x99c   :  { %3117 = vmatpush.msrb.mxu2 %v7397_v39  ;;  %3010 = vmatpush.msrb.mxu1 %v7665_v40  ;;  %v9344_v39 = vld [vmem:[#allocation31_spill] sm:$0xff]  ;;  %v9356_v40 = vld [vmem:[#allocation22_spill] sm:$0xff] }
 0x99d   :  { %2956 = vmatpush.msra.mxu3 %v7636_v42  ;;  %2985 = vmatpush.msrb.mxu0 %v7698_v11 }
 0x99e   :  { %3118 = vmatpush.msrb.mxu2 %v7411_v10  ;;  %3011 = vmatpush.msrb.mxu1 %v7684_v6  ;;  %v9346_v10 = vld [vmem:[#allocation62_spill] sm:$0xff] }
 0x99f   :  { %2957 = vmatpush.msra.mxu3 %v7660_v45  ;;  %2986 = vmatpush.msrb.mxu0 %v7717_v52  ;;  %v9355_v6 = vld [vmem:[#allocation42_spill] sm:$0xff] }
 0x9a0   :  { %3012 = vmatpush.msrb.mxu1 %v7705_v26  ;;  %v9353_v26 = vld [vmem:[#allocation64_spill] sm:$0xff] }
 0x9a1   :  { %2958 = vmatpush.msra.mxu3 %v7691_v37  ;;  %2987 = vmatpush.msrb.mxu0 %v7739_v5  ;;  %v9365_v5 = vld [vmem:[#allocation26_spill] sm:$0xff] }
 0x9a2   :  { %3013 = vmatpush.msrb.mxu1 %v7724_v46  ;;  %v9351_v46 = vld [vmem:[#allocation60_spill] sm:$0xff] }
 0x9a3   :  { %2959 = vmatpush.msra.mxu3 %v9342_v4  ;;  %2988 = vmatpush.msrb.mxu0 %v9343_v55  ;;  %v9361_v55 = vld [vmem:[#allocation25_spill] sm:$0xff] }
 0x9a4   :  { %4654 = vmatpush.msk.msra.mxu1 %vm1920_vm7, %v7379_v3  ;;  %v9352_v3 = vld [vmem:[#allocation20_spill] sm:$0xff] }
 0x9a5   :  { %2960 = vmatpush.msra.mxu3 %v9345_v21  ;;  %3046 = vmatpush.msra.mxu0 %v9346_v10  ;;  %v9358_v10 = vld [vmem:[#allocation32_spill] sm:$0xff] }
 0x9a6   :  { %3139 = vmatpush.msra.mxu1 %v9344_v39  ;;  %v9354_v39 = vld [vmem:[#allocation16_spill] sm:$0xff] }
 0x9a7   :  { %2961 = vmatpush.msra.mxu3 %v9348_v51  ;;  %3047 = vmatpush.msra.mxu0 %v9349_v9  ;;  %v9359_v9 = vld [vmem:[#allocation29_spill] sm:$0xff] }
 0x9a8   :  { %3140 = vmatpush.msra.mxu1 %v9347_v13  ;;  %v9357_v13 = vld [vmem:[#allocation24_spill] sm:$0xff] }
 0x9a9   :  { %2962 = vmatpush.msra.mxu3 %v9351_v46  ;;  %3048 = vmatpush.msra.mxu0 %v9352_v3  ;;  %v9362_v3 = vld [vmem:[#allocation33_spill] sm:$0xff] }
 0x9aa   :  { %3141 = vmatpush.msra.mxu1 %v9350_v30  ;;  %v9360_v30 = vld [vmem:[#allocation30_spill] sm:$0xff] }
 0x9ab   :  { %2963 = vmatpush.msra.mxu3 %v9353_v26  ;;  %3049 = vmatpush.msra.mxu0 %v7804_v34  ;;  %v9364_v34 = vld [vmem:[#allocation46_spill] sm:$0xff] }
 0x9ad   :  { %2964 = vmatpush.msra.mxu3 %v9354_v39  ;;  %3050 = vmatpush.msra.mxu0 %v9355_v6  ;;  %v9366_v6 = vld [vmem:[#allocation27_spill] sm:$0xff] }
 0x9af   :  { %2965 = vmatpush.msra.mxu3 %v9356_v40  ;;  %3051 = vmatpush.msra.mxu0 %v9358_v10  ;;  %v9368_v10 = vld [vmem:[#allocation48_spill] sm:$0xff] }
 0x9b1   :  { %3071 = vmatpush.msrb.mxu3 %v9357_v13  ;;  %3052 = vmatpush.msra.mxu0 %v9360_v30  ;;  %v9370_v30 = vld [vmem:[#allocation28_spill] sm:$0xff] }
 0x9b3   :  { %3072 = vmatpush.msrb.mxu3 %v9359_v9  ;;  %3053 = vmatpush.msra.mxu0 %v9362_v3  ;;  %v9369_v9 = vld [vmem:[#allocation50_spill] sm:$0xff]  ;;  %v9371_v3 = vld [vmem:[#allocation39_spill] sm:$0xff] }
 0x9b5   :  { %3073 = vmatpush.msrb.mxu3 %v9361_v55  ;;  %3054 = vmatpush.msra.mxu0 %v9364_v34  ;;  %v9373_v34 = vld [vmem:[#allocation56_spill] sm:$0xff] }
 0x9b7   :  { %3074 = vmatpush.msrb.mxu3 %v9363_v8  ;;  %3055 = vmatpush.msra.mxu0 %v9366_v6  ;;  %v9372_v8 = vld [vmem:[#allocation41_spill] sm:$0xff] }
 0x9b8   :  { %v9375_v6 = vld [vmem:[#allocation45_spill] sm:$0xff] }
 0x9b9   :  { %3075 = vmatpush.msrb.mxu3 %v9365_v5  ;;  %3056 = vmatpush.msra.mxu0 %v7889_v16  ;;  %v9374_v5 = vld [vmem:[#allocation54_spill] sm:$0xff]  ;;  %v9377_v16 = vld [vmem:[#allocation47_spill] sm:$0xff] }
 0x9bb   :  { %3076 = vmatpush.msrb.mxu3 %v9367_v36  ;;  %3057 = vmatpush.msra.mxu0 %v9369_v9  ;;  %v9376_v36 = vld [vmem:[#allocation43_spill] sm:$0xff]  ;;  %v9378_v9 = vld [vmem:[#allocation49_spill] sm:$0xff] }
 0x9bd   :  { %3077 = vmatpush.msrb.mxu3 %v9368_v10  ;;  %3058 = vmatpush.msra.mxu0 %v7913_v62 }
 0x9bf   :  { %3078 = vmatpush.msrb.mxu3 %v9370_v30  ;;  %3059 = vmatpush.msra.mxu0 %v9372_v8 }
 0x9c1   :  { %3079 = vmatpush.msrb.mxu3 %v9371_v3  ;;  %3060 = vmatpush.msra.mxu0 %v9374_v5 }
 0x9c3   :  { %3080 = vmatpush.msrb.mxu3 %v9373_v34  ;;  %3061 = vmatpush.msra.mxu0 %v9376_v36 }
 0x9c5   :  { %3081 = vmatpush.msrb.mxu3 %v9375_v6 }
 0x9c7   :  { %3082 = vmatpush.msrb.mxu3 %v7951_v12 }
 0x9c9   :  { %3083 = vmatpush.msrb.mxu3 %v9377_v16 }
 0x9cb   :  { %3084 = vmatpush.msrb.mxu3 %v9378_v9 }
 0x9f8   :  { %v2802_v30 = vpop.f32.mrf.mxu0 }
 0x9fe   :  { %v2725_v62 = vpop.f32.mrf.mxu2 }
 0xa00   :  { %v2702_v10 = vpop.f32.mrf.mxu1 }
 0xa01   :  { %v2726_v3 = vadd.f32 %v2725_v62, %v2702_v10 }
 0xa02   :  { %v2805_v55 = vpop.f32.mrf.mxu0 }
 0xa06   :  { %v2779_v8 = vpop.f32.mrf.mxu3 }
 0xa07   :  { %v2803_v13 = vadd.f32 %v2802_v30, %v2779_v8 }
 0xa08   :  { %v2705_v34 = vpop.f32.mrf.mxu1  ;;  %v2728_v52 = vpop.f32.mrf.mxu2 }
 0xa09   :  { %v2808_v5 = vmax.f32 %v2726_v3, %v2803_v13  ;;  %v8082_v18 = vadd.f32 %v2728_v52, %v2705_v34 }
 0xa0a   :  { %v8084_v6 = vpop.f32.mrf.mxu0 }
 0xa0b   :  { %4645 = vmatmul.msk.f32.vlgmr.msra.gmra.mxu2 %vm2288_vm9, %v8084_v6  ;;  %4643 = vmatmul.msk.f32.vlgmr.msrb.gmra.mxu0 %vm2288_vm9, %v8084_v6 }
 0xa0c   :  { %3155 = vmatpush.msra.mxu2 %v7492_v43  ;;  %3228 = vmatpush.msrb.mxu0 %v7407_v53 }
 0xa0e   :  { %v2782_v62 = vpop.f32.mrf.mxu3  ;;  %3156 = vmatpush.msra.mxu2 %v7516_v57  ;;  %3229 = vmatpush.msrb.mxu0 %v7422_v35  ;;  %v9389_v57 = vld [vmem:[#allocation25_spill] sm:$0xff] }
 0xa0f   :  { %v8094_v8 = vadd.f32 %v2805_v55, %v2782_v62 }
 0xa10   :  { %v2858_v52 = vpop.f32.mrf.mxu2  ;;  %v2881_v34 = vpop.f32.mrf.mxu1  ;;  %3157 = vmatpush.msra.mxu2 %v7540_v1  ;;  %3230 = vmatpush.msrb.mxu0 %v7435_v2  ;;  %v4649_v2 = vld [vmem:[%s8896_s15 + $0x20] sm:$0xff] }
 0xa11   :  { %v2809_v10 = vmax.f32 %v8082_v18, %v8094_v8  ;;  %v2882_v3 = vadd.f32 %v2881_v34, %v2858_v52  ;;  %v9392_v1 = vld [vmem:[#allocation44_spill] sm:$0xff]  ;;  %v4689_v52 = vld [vmem:[%s8899_s18 + $0x1b0] sm:$0xff]  ;;  %v4688_v18 = vld [vmem:[%s8899_s18 + $0x1a8] sm:$0xff] }
 0xa12   :  { %v8100_v43 = vpop.f32.mrf.mxu0  ;;  %3158 = vmatpush.msra.mxu2 %v7564_v44  ;;  %3231 = vmatpush.msrb.mxu0 %v7447_v7  ;;  %v9379_v7 = vld [vmem:[#allocation7_spill] sm:$0xff]  ;;  %v9396_v44 = vld [vmem:[#allocation20_spill] sm:$0xff] }
 0xa13   :  { %v8104_v53 = vmax.f32 %v2808_v5, %v2882_v3  ;;  %4646 = vmatmul.msk.f32.gmra.mxu2 %vm2288_vm9, %v8100_v43  ;;  %4644 = vmatmul.msk.f32.gmra.mxu0 %vm2288_vm9, %v8100_v43  ;;  %v4687_v34 = vld [vmem:[%s8899_s18 + $0x1a0] sm:$0xff] }
 0xa14   :  { %3159 = vmatpush.msra.mxu2 %v7588_v23  ;;  %3232 = vmatpush.msrb.mxu0 %v7462_v58  ;;  %v9380_v58 = vld [vmem:[#allocation13_spill] sm:$0xff]  ;;  %v9400_v23 = vld [vmem:[#allocation38_spill] sm:$0xff] }
 0xa16   :  { %v2915_v35 = vpop.f32.mrf.mxu3  ;;  %3160 = vmatpush.msra.mxu2 %v7612_v19  ;;  %3233 = vmatpush.msrb.mxu0 %v7475_v25  ;;  %v4650_v25 = vld [vmem:[%s8896_s15 + $0x28] sm:$0x3f]  ;;  %v9403_v19 = vld [vmem:[#allocation28_spill] sm:$0xff] }
 0xa17   :  { %2966 = vmatmul.f32.vlgmr.msra.gmra.mxu3 %v2915_v35  ;;  %3014 = vmatmul.f32.vlgmr.msrb.gmra.mxu1 %v2915_v35 }
 0xa18   :  { %3180 = vmatpush.msrb.mxu1 %v7480_v59  ;;  %3161 = vmatpush.msra.mxu2 %v7636_v42  ;;  %v9384_v59 = vld [vmem:[#allocation15_spill] sm:$0xff]  ;;  %v9406_v42 = vld [vmem:[#allocation30_spill] sm:$0xff] }
 0xa19   :  { %3203 = vmatpush.msra.mxu3 %v7417_v27  ;;  %3234 = vmatpush.msrb.mxu0 %v7503_v17  ;;  %v9387_v17 = vld [vmem:[#allocation34_spill] sm:$0xff] }
 0xa1a   :  { %3181 = vmatpush.msrb.mxu1 %v7487_v41  ;;  %3162 = vmatpush.msra.mxu2 %v7660_v45  ;;  %v9385_v41 = vld [vmem:[#allocation19_spill] sm:$0xff]  ;;  %v9409_v45 = vld [vmem:[#allocation45_spill] sm:$0xff] }
 0xa1b   :  { %4652 = vmatmul.msk.f32.vlgmr.msrb.gmra.mxu2 %vm1907_vm8, %v4649_v2  ;;  %3062 = vmatmul.f32.vlgmr.msra.gmra.mxu0 %v2915_v35 }
 0xa1c   :  { %3182 = vmatpush.msrb.mxu1 %v7511_v54  ;;  %3204 = vmatpush.msra.mxu3 %v9379_v7  ;;  %v9388_v54 = vld [vmem:[#allocation58_spill] sm:$0xff] }
 0xa1d   :  { %3163 = vmatpush.msra.mxu2 %v7691_v37  ;;  %3235 = vmatpush.msrb.mxu0 %v7526_v33  ;;  %v9391_v33 = vld [vmem:[#allocation10_spill] sm:$0xff]  ;;  %v9414_v37 = vld [vmem:[#allocation52_spill] sm:$0xff] }
 0xa1e   :  { %3183 = vmatpush.msrb.mxu1 %v9380_v58  ;;  %3205 = vmatpush.msra.mxu3 %v7442_v60  ;;  %v2918_v27 = vpop.f32.mrf.mxu3  ;;  %v9381_v60 = vld [vmem:[#allocation8_spill] sm:$0xff] }
 0xa1f   :  { %3164 = vmatpush.msra.mxu2 %v9342_v4  ;;  %3236 = vmatpush.msrb.mxu0 %v7550_v47  ;;  %v9394_v47 = vld [vmem:[#allocation17_spill] sm:$0xff] }
 0xa20   :  { %2969 = vmatmul.f32.gmra.mxu3 %v2918_v27  ;;  %3017 = vmatmul.f32.gmra.mxu1 %v2918_v27 }
 0xa21   :  { %3184 = vmatpush.msrb.mxu1 %v7559_v28  ;;  %3206 = vmatpush.msra.mxu3 %v7457_v32  ;;  %v9382_v32 = vld [vmem:[#allocation18_spill] sm:$0xff] }
 0xa22   :  { %3165 = vmatpush.msra.mxu2 %v9345_v21  ;;  %3237 = vmatpush.msrb.mxu0 %v7574_v20  ;;  %v9395_v28 = vld [vmem:[#allocation26_spill] sm:$0xff]  ;;  %v9398_v20 = vld [vmem:[#allocation35_spill] sm:$0xff] }
 0xa23   :  { %4653 = vmatmul.msk.f32.gmra.mxu2 %vm1907_vm8, %v4650_v25  ;;  %3065 = vmatmul.f32.gmra.mxu0 %v2918_v27  ;;  %v4690_v27 = vld [vmem:[%s8899_s18 + $0x1b8] sm:$0xff] }
 0xa24   :  { %3185 = vmatpush.msrb.mxu1 %v7583_v48  ;;  %3207 = vmatpush.msra.mxu3 %v7470_v61  ;;  %v9383_v61 = vld [vmem:[#allocation24_spill] sm:$0xff]  ;;  %v9399_v48 = vld [vmem:[#allocation23_spill] sm:$0xff] }
 0xa25   :  { %3166 = vmatpush.msra.mxu2 %v9348_v51  ;;  %3238 = vmatpush.msrb.mxu0 %v7598_v49  ;;  %v9401_v49 = vld [vmem:[#allocation48_spill] sm:$0xff] }
 0xa26   :  { %3186 = vmatpush.msrb.mxu1 %v7607_v50  ;;  %3208 = vmatpush.msra.mxu3 %v7498_v31  ;;  %v9386_v31 = vld [vmem:[#allocation29_spill] sm:$0xff]  ;;  %v9402_v50 = vld [vmem:[#allocation42_spill] sm:$0xff] }
 0xa27   :  { %3167 = vmatpush.msra.mxu2 %v9351_v46  ;;  %3239 = vmatpush.msrb.mxu0 %v7622_v15  ;;  %v9404_v15 = vld [vmem:[#allocation32_spill] sm:$0xff]  ;;  %v2861_v46 = vpop.f32.mrf.mxu2 }
 0xa28   :  { %4647 = vmatmul.msk.f32.vlgmr.msrb.gmra.mxu3 %vm2288_vm9, %v8084_v6  ;;  %4655 = vmatmul.msk.f32.vlgmr.msra.gmra.mxu1 %vm1907_vm8, %v4649_v2  ;;  %v9413_v6 = vld [vmem:[#allocation50_spill] sm:$0xff] }
 0xa29   :  { %3187 = vmatpush.msrb.mxu1 %v7631_v56  ;;  %3209 = vmatpush.msra.mxu3 %v7521_v14  ;;  %v9390_v14 = vld [vmem:[#allocation62_spill] sm:$0xff]  ;;  %v9405_v56 = vld [vmem:[#allocation39_spill] sm:$0xff] }
 0xa2a   :  { %3168 = vmatpush.msra.mxu2 %v9353_v26  ;;  %3240 = vmatpush.msrb.mxu0 %v7646_v63  ;;  %v9407_v63 = vld [vmem:[#allocation56_spill] sm:$0xff]  ;;  %v9416_v26 = vld [vmem:[#allocation54_spill] sm:$0xff] }
 0xa2b   :  { %3188 = vmatpush.msrb.mxu1 %v7655_v22  ;;  %3210 = vmatpush.msra.mxu3 %v7545_v38  ;;  %v9393_v38 = vld [vmem:[#allocation21_spill] sm:$0xff] }
 0xa2c   :  { %3169 = vmatpush.msra.mxu2 %v9354_v39  ;;  %3241 = vmatpush.msrb.mxu0 %v7670_v29  ;;  %v9408_v22 = vld [vmem:[#allocation33_spill] sm:$0xff]  ;;  %v9411_v29 = vld [vmem:[#allocation27_spill] sm:$0xff] }
 0xa2d   :  { %3189 = vmatpush.msrb.mxu1 %v7679_v24  ;;  %3211 = vmatpush.msra.mxu3 %v7569_v0  ;;  %v9397_v0 = vld [vmem:[#allocation36_spill] sm:$0xff]  ;;  %v9412_v24 = vld [vmem:[#allocation37_spill] sm:$0xff] }
 0xa2e   :  { %3170 = vmatpush.msra.mxu2 %v9356_v40  ;;  %v9410_v40 = vld [vmem:[#allocation46_spill] sm:$0xff] }
 0xa2f   :  { %3190 = vmatpush.msrb.mxu1 %v7698_v11  ;;  %3212 = vmatpush.msra.mxu3 %v9381_v60  ;;  %v9415_v11 = vld [vmem:[#allocation41_spill] sm:$0xff] }
 0xa30   :  { %4648 = vmatmul.msk.f32.gmra.mxu3 %vm2288_vm9, %v8100_v43  ;;  %4656 = vmatmul.msk.f32.gmra.mxu1 %vm1907_vm8, %v4650_v25  ;;  %v4685_v43 = vld [vmem:[%s8899_s18 + $0x190] sm:$0xff] }
 0xa31   :  { %3191 = vmatpush.msrb.mxu1 %v9382_v32  ;;  %3276 = vmatpush.msrb.mxu2 %v9383_v61  ;;  %v4683_v61 = vld [vmem:[%s8899_s18 + $0x180] sm:$0xff] }
 0xa32   :  { %3213 = vmatpush.msra.mxu3 %v9384_v59  ;;  %v4684_v59 = vld [vmem:[%s8899_s18 + $0x188] sm:$0xff] }
 0xa33   :  { %3192 = vmatpush.msrb.mxu1 %v9385_v41  ;;  %3277 = vmatpush.msrb.mxu2 %v9386_v31  ;;  %v3389_v41 = vld [vmem:[%s8899_s18 + $0xd0] sm:$0xff] }
 0xa34   :  { %3214 = vmatpush.msra.mxu3 %v9387_v17  ;;  %v4681_v31 = vld [vmem:[%s8899_s18 + $0x170] sm:$0xff]  ;;  %v4682_v17 = vld [vmem:[%s8899_s18 + $0x178] sm:$0xff] }
 0xa35   :  { %3193 = vmatpush.msrb.mxu1 %v9388_v54  ;;  %3278 = vmatpush.msrb.mxu2 %v9389_v57  ;;  %v3387_v54 = vld [vmem:[%s8899_s18 + $0xc0] sm:$0xff] }
 0xa36   :  { %3215 = vmatpush.msra.mxu3 %v9391_v33  ;;  %v4679_v57 = vld [vmem:[%s8899_s18 + $0x160] sm:$0xff]  ;;  %v3385_v33 = vld [vmem:[%s8899_s18 + $0xb0] sm:$0xff] }
 0xa37   :  { %3251 = vmatpush.msra.mxu1 %v9390_v14  ;;  %3279 = vmatpush.msrb.mxu2 %v9392_v1  ;;  %v4680_v14 = vld [vmem:[%s8899_s18 + $0x168] sm:$0xff]  ;;  %v4677_v1 = vld [vmem:[%s8899_s18 + $0x150] sm:$0xff] }
 0xa38   :  { %3216 = vmatpush.msra.mxu3 %v9394_v47  ;;  %v3383_v47 = vld [vmem:[%s8899_s18 + $0xa0] sm:$0xff] }
 0xa39   :  { %3252 = vmatpush.msra.mxu1 %v9393_v38  ;;  %3280 = vmatpush.msrb.mxu2 %v9395_v28  ;;  %v4678_v38 = vld [vmem:[%s8899_s18 + $0x158] sm:$0xff]  ;;  %v4675_v28 = vld [vmem:[%s8899_s18 + $0x140] sm:$0xff] }
 0xa3a   :  { %3217 = vmatpush.msra.mxu3 %v9397_v0  ;;  %v3381_v0 = vld [vmem:[%s8899_s18 + $0x90] sm:$0xff] }
 0xa3b   :  { %3253 = vmatpush.msra.mxu1 %v9396_v44  ;;  %3281 = vmatpush.msrb.mxu2 %v9398_v20  ;;  %v4676_v44 = vld [vmem:[%s8899_s18 + $0x148] sm:$0xff]  ;;  %v4673_v20 = vld [vmem:[%s8899_s18 + $0x130] sm:$0xff] }
 0xa3c   :  { %3218 = vmatpush.msra.mxu3 %v9400_v23  ;;  %v3379_v23 = vld [vmem:[%s8899_s18 + $0x80] sm:$0xff] }
 0xa3d   :  { %3254 = vmatpush.msra.mxu1 %v9399_v48  ;;  %3282 = vmatpush.msrb.mxu2 %v9401_v49  ;;  %v4674_v48 = vld [vmem:[%s8899_s18 + $0x138] sm:$0xff]  ;;  %v4671_v49 = vld [vmem:[%s8899_s18 + $0x120] sm:$0xff] }
 0xa3e   :  { %3399 = vmatpush.msrb.mxu3 %v3389_v41 }
 0xa3f   :  { %3255 = vmatpush.msra.mxu1 %v9402_v50  ;;  %3283 = vmatpush.msrb.mxu2 %v9403_v19  ;;  %v4672_v50 = vld [vmem:[%s8899_s18 + $0x128] sm:$0xff]  ;;  %v3377_v19 = vld [vmem:[%s8899_s18 + $0x70] sm:$0xff] }
 0xa40   :  { %3400 = vmatpush.msrb.mxu3 %v3387_v54  ;;  %v3390_v54 = vld [vmem:[%s8899_s18 + $0xd8] sm:$0xff] }
 0xa41   :  { %3256 = vmatpush.msra.mxu1 %v9404_v15  ;;  %3284 = vmatpush.msrb.mxu2 %v9405_v56  ;;  %v4669_v15 = vld [vmem:[%s8899_s18 + $0x110] sm:$0xff]  ;;  %v4670_v56 = vld [vmem:[%s8899_s18 + $0x118] sm:$0xff] }
 0xa42   :  { %3401 = vmatpush.msrb.mxu3 %v3385_v33  ;;  %v3384_v33 = vld [vmem:[%s8899_s18 + $0xa8] sm:$0xff] }
 0xa43   :  { %3257 = vmatpush.msra.mxu1 %v9406_v42  ;;  %3285 = vmatpush.msrb.mxu2 %v9407_v63  ;;  %v3375_v42 = vld [vmem:[%s8899_s18 + $0x60] sm:$0xff] }
 0xa44   :  { %3402 = vmatpush.msrb.mxu3 %v3383_v47  ;;  %v4667_v63 = vld [vmem:[%s8899_s18 + $0x100] sm:$0xff]  ;;  %v3380_v47 = vld [vmem:[%s8899_s18 + $0x88] sm:$0xff] }
 0xa45   :  { %3258 = vmatpush.msra.mxu1 %v9408_v22  ;;  %3286 = vmatpush.msrb.mxu2 %v9409_v45  ;;  %v4668_v22 = vld [vmem:[%s8899_s18 + $0x108] sm:$0xff]  ;;  %v3373_v45 = vld [vmem:[%s8899_s18 + $0x50] sm:$0xff] }
 0xa46   :  { %3403 = vmatpush.msrb.mxu3 %v3381_v0  ;;  %v3374_v0 = vld [vmem:[%s8899_s18 + $0x58] sm:$0xff] }
 0xa47   :  { %3259 = vmatpush.msra.mxu1 %v9410_v40  ;;  %3287 = vmatpush.msrb.mxu2 %v7951_v12  ;;  %v2884_v12 = vpop.f32.mrf.mxu1  ;;  %v4665_v40 = vld [vmem:[%s8899_s18 + $0xf0] sm:$0xff] }
 0xa48   :  { %v2885_v3 = vadd.f32 %v2884_v12, %v2861_v46  ;;  %3404 = vmatpush.msrb.mxu3 %v3379_v23  ;;  %v3367_v12 = vld [vmem:[%s8899_s18 + $0x20] sm:$0xff]  ;;  %v3368_v23 = vld [vmem:[%s8899_s18 + $0x28] sm:$0xff] }
 0xa49   :  { %3260 = vmatpush.msra.mxu1 %v9411_v29  ;;  %3288 = vmatpush.msrb.mxu2 %v9377_v16  ;;  %v4666_v29 = vld [vmem:[%s8899_s18 + $0xf8] sm:$0xff] }
 0xa4a   :  { %v2888_v2 = vmax.f32 %v2809_v10, %v2885_v3  ;;  %v4686_v10 = vld [vmem:[%s8899_s18 + $0x198] sm:$0xff]  ;;  %3405 = vmatpush.msrb.mxu3 %v3377_v19  ;;  %v4733_v19 = vld [vmem:[%s8899_s18 + $0x290] sm:$0xff] }
 0xa4b   :  { %3261 = vmatpush.msra.mxu1 %v9412_v24  ;;  %3289 = vmatpush.msrb.mxu2 %v9378_v9  ;;  %v3371_v24 = vld [vmem:[%s8899_s18 + $0x40] sm:$0xff] }
 0xa4c   :  { %3406 = vmatpush.msrb.mxu3 %v3375_v42 }
 0xa4d   :  { %3262 = vmatpush.msra.mxu1 %v9413_v6  ;;  %v4663_v6 = vld [vmem:[%s8899_s18 + $0xe0] sm:$0xff] }
 0xa4e   :  { %3407 = vmatpush.msrb.mxu3 %v3373_v45  ;;  %v4702_v45 = vld [vmem:[%s8898_s17 + $0x20] sm:$0xff] }
 0xa4f   :  { %3263 = vmatpush.msra.mxu1 %v9414_v37  ;;  %v4664_v37 = vld [vmem:[%s8899_s18 + $0xe8] sm:$0xff] }
 0xa50   :  { %3408 = vmatpush.msrb.mxu3 %v3371_v24  ;;  %v4730_v24 = vld [vmem:[%s8899_s18 + $0x278] sm:$0xff] }
 0xa51   :  { %3264 = vmatpush.msra.mxu1 %v9415_v11  ;;  %v3369_v11 = vld [vmem:[%s8899_s18 + $0x30] sm:$0xff] }
 0xa52   :  { %3409 = vmatpush.msrb.mxu3 %v3369_v11  ;;  %v4725_v11 = vld [vmem:[%s8899_s18 + $0x250] sm:$0xff] }
 0xa53   :  { %3265 = vmatpush.msra.mxu1 %v9416_v26 }
 0xa54   :  { %3410 = vmatpush.msrb.mxu3 %v3367_v12  ;;  %v4724_v12 = vld [vmem:[%s8899_s18 + $0x248] sm:$0xff] }
 0xa55   :  { %3266 = vmatpush.msra.mxu1 %v9376_v36 }
 0xa88   :  { %v2990_v21 = vpop.f32.mrf.mxu0 }
 0xa8e   :  { %v3038_v5 = vpop.f32.mrf.mxu2 }
 0xa94   :  { %v3015_v4 = vpop.f32.mrf.mxu1 }
 0xa95   :  { %v3039_v55 = vadd.f32 %v3038_v5, %v3015_v4  ;;  %v3365_v5 = vld [vmem:[%s8899_s18 + $0x10] sm:$0xff]  ;;  %v3363_v4 = vld [vmem:[%s8899_s18] sm:$0xff] }
 0xa96   :  { %v3041_v16 = vpop.f32.mrf.mxu2  ;;  %3411 = vmatpush.msrb.mxu3 %v3365_v5  ;;  %v4721_v5 = vld [vmem:[%s8899_s18 + $0x230] sm:$0xff] }
 0xa98   :  { %3412 = vmatpush.msrb.mxu3 %v3363_v4  ;;  %v4722_v4 = vld [vmem:[%s8899_s18 + $0x238] sm:$0xff] }
 0xa9a   :  { %v2967_v51 = vpop.f32.mrf.mxu3 }
 0xa9b   :  { %v2991_v39 = vadd.f32 %v2990_v21, %v2967_v51 }
 0xa9d   :  { %v2996_v9 = vmax.f32 %v8104_v53, %v2991_v39  ;;  %v3018_v13 = vpop.f32.mrf.mxu1  ;;  %v2993_v53 = vpop.f32.mrf.mxu0 }
 0xa9e   :  { %v3042_v30 = vadd.f32 %v3041_v16, %v3018_v13  ;;  %v3120_v62 = vpop.f32.mrf.mxu2 }
 0xa9f   :  { %3171 = vmatmul.f32.vlgmr.msra.gmra.mxu2 %v3120_v62  ;;  %3219 = vmatmul.f32.vlgmr.msra.gmra.mxu3 %v3120_v62  ;;  %v8210_v36 = vmax.f32 %v2996_v9, %v3039_v55 }
 0xaa0   :  { %3450 = vmatpush.msra.mxu2 %v4689_v52 }
 0xaa2   :  { %3451 = vmatpush.msra.mxu2 %v4687_v34 }
 0xaa3   :  { %v2970_v35 = vpop.f32.mrf.mxu3 }
 0xaa4   :  { %v2994_v7 = vadd.f32 %v2993_v53, %v2970_v35  ;;  %3452 = vmatpush.msra.mxu2 %v4685_v43 }
 0xaa5   :  { %v3143_v58 = vpop.f32.mrf.mxu1  ;;  %v3063_v26 = vpop.f32.mrf.mxu0 }
 0xaa6   :  { %v2997_v25 = vmax.f32 %v2888_v2, %v2994_v7  ;;  %4657 = vmatmul.msk.f32.vlgmr.msrb.gmra.mxu1 %vm2288_vm9, %v3143_v58  ;;  %v3123_v60 = vpop.f32.mrf.mxu2  ;;  %4659 = vmatmul.msk.f32.vlgmr.msrb.gmra.mxu0 %vm2288_vm9, %v3143_v58 }
 0xaa7   :  { %3174 = vmatmul.f32.gmra.mxu2 %v3123_v60  ;;  %3222 = vmatmul.f32.gmra.mxu3 %v3123_v60 }
 0xaa8   :  { %v8229_v8 = vmax.f32 %v2997_v25, %v3042_v30  ;;  %3473 = vmatpush.msrb.mxu1 %v4690_v27  ;;  %3453 = vmatpush.msra.mxu2 %v4683_v61 }
 0xaaa   :  { %3474 = vmatpush.msrb.mxu1 %v4688_v18  ;;  %3454 = vmatpush.msra.mxu2 %v4681_v31 }
 0xaab   :  { %v3086_v46 = vpop.f32.mrf.mxu3 }
 0xaac   :  { %3475 = vmatpush.msrb.mxu1 %v4686_v10  ;;  %3455 = vmatpush.msra.mxu2 %v4679_v57  ;;  %v3087_v39 = vadd.f32 %v3086_v46, %v3063_v26  ;;  %v3388_v57 = vld [vmem:[%s8899_s18 + $0xc8] sm:$0xff]  ;;  %v4726_v26 = vld [vmem:[%s8899_s18 + $0x258] sm:$0xff]  ;;  %v4723_v46 = vld [vmem:[%s8899_s18 + $0x240] sm:$0xff] }
 0xaad   :  { %v3146_v32 = vpop.f32.mrf.mxu1  ;;  %v3066_v21 = vpop.f32.mrf.mxu0 }
 0xaae   :  { %4658 = vmatmul.msk.f32.gmra.mxu1 %vm2288_vm9, %v3146_v32  ;;  %4660 = vmatmul.msk.f32.gmra.mxu0 %vm2288_vm9, %v3146_v32  ;;  %v3092_v34 = vmax.f32 %v8210_v36, %v3087_v39  ;;  %v4715_v39 = vld [vmem:[%s8899_s18 + $0x200] sm:$0xff] }
 0xaaf   :  { %4661 = vmatmul.msk.f32.vlgmr.msrb.gmra.mxu2 %vm2288_vm9, %v3143_v58  ;;  %3476 = vmatpush.msrb.mxu1 %v4684_v59 }
 0xab0   :  { %3456 = vmatpush.msra.mxu2 %v4677_v1  ;;  %v3329_v1 = vld [vmem:[%s8898_s17 + $0x8] sm:$0x3f] }
 0xab1   :  { %3477 = vmatpush.msrb.mxu1 %v4682_v17 }
 0xab2   :  { %3457 = vmatpush.msra.mxu2 %v4675_v28  ;;  %v3378_v28 = vld [vmem:[%s8899_s18 + $0x78] sm:$0xff] }
 0xab3   :  { %3478 = vmatpush.msrb.mxu1 %v4680_v14  ;;  %v3089_v51 = vpop.f32.mrf.mxu3  ;;  %v3386_v14 = vld [vmem:[%s8899_s18 + $0xb8] sm:$0xff] }
 0xab4   :  { %3458 = vmatpush.msra.mxu2 %v4673_v20  ;;  %v3090_v43 = vadd.f32 %v3089_v51, %v3066_v21  ;;  %v3372_v20 = vld [vmem:[%s8899_s18 + $0x48] sm:$0xff]  ;;  %v4717_v21 = vld [vmem:[%s8899_s18 + $0x210] sm:$0xff]  ;;  %v4718_v51 = vld [vmem:[%s8899_s18 + $0x218] sm:$0xff] }
 0xab5   :  { %3479 = vmatpush.msrb.mxu1 %v4678_v38  ;;  %v3382_v38 = vld [vmem:[%s8899_s18 + $0x98] sm:$0xff] }
 0xab6   :  { %3267 = vmatmul.f32.vlgmr.msra.gmra.mxu1 %v3120_v62  ;;  %3459 = vmatpush.msra.mxu2 %v4671_v49  ;;  %v3093_v25 = vmax.f32 %v8229_v8, %v3090_v43  ;;  %v3328_v8 = vld [vmem:[%s8898_s17] sm:$0xff]  ;;  %v3366_v49 = vld [vmem:[%s8899_s18 + $0x18] sm:$0xff] }
 0xab7   :  { %4662 = vmatmul.msk.f32.gmra.mxu2 %vm2288_vm9, %v3146_v32  ;;  %3480 = vmatpush.msrb.mxu1 %v4676_v44  ;;  %v3376_v44 = vld [vmem:[%s8899_s18 + $0x68] sm:$0xff]  ;;  %v4707_v43 = vld [vmem:[%s8899_s18 + $0x1c0] sm:$0xff] }
 0xab8   :  { %3460 = vmatpush.msra.mxu2 %v4669_v15  ;;  %v4731_v15 = vld [vmem:[%s8899_s18 + $0x280] sm:$0xff] }
 0xab9   :  { %3481 = vmatpush.msrb.mxu1 %v4674_v48  ;;  %v3370_v48 = vld [vmem:[%s8899_s18 + $0x38] sm:$0xff] }
 0xaba   :  { %3461 = vmatpush.msra.mxu2 %v4667_v63  ;;  %v4732_v63 = vld [vmem:[%s8899_s18 + $0x288] sm:$0xff] }
 0xabb   :  { %3482 = vmatpush.msrb.mxu1 %v4672_v50  ;;  %v3364_v50 = vld [vmem:[%s8899_s18 + $0x8] sm:$0xff] }
 0xabc   :  { %3462 = vmatpush.msra.mxu2 %v4665_v40  ;;  %v4703_v40 = vld [vmem:[%s8898_s17 + $0x28] sm:$0x3f] }
 0xabd   :  { %3483 = vmatpush.msrb.mxu1 %v4670_v56  ;;  %v4734_v56 = vld [vmem:[%s8899_s18 + $0x298] sm:$0xff] }
 0xabe   :  { %3270 = vmatmul.f32.gmra.mxu1 %v3123_v60  ;;  %3463 = vmatpush.msra.mxu2 %v4663_v6  ;;  %v4727_v6 = vld [vmem:[%s8899_s18 + $0x260] sm:$0xff] }
 0xabf   :  { %3484 = vmatpush.msrb.mxu1 %v4668_v22 }
 0xac1   :  { %3485 = vmatpush.msrb.mxu1 %v4666_v29  ;;  %v4729_v29 = vld [vmem:[%s8899_s18 + $0x270] sm:$0xff] }
 0xac3   :  { %3486 = vmatpush.msrb.mxu1 %v4664_v37  ;;  %v4728_v37 = vld [vmem:[%s8899_s18 + $0x268] sm:$0xff] }
 0xb22   :  { %v3172_v55 = vpop.f32.mrf.mxu2  ;;  %v3220_v62 = vpop.f32.mrf.mxu3 }
 0xb23   :  { %v3195_v16 = vpop.f32.mrf.mxu1  ;;  %v3243_v52 = vpop.f32.mrf.mxu0 }
 0xb24   :  { %v3196_v30 = vadd.f32 %v3195_v16, %v3172_v55  ;;  %v3244_v53 = vadd.f32 %v3243_v52, %v3220_v62  ;;  %v4719_v55 = vld [vmem:[%s8899_s18 + $0x220] sm:$0xff]  ;;  %v4720_v16 = vld [vmem:[%s8899_s18 + $0x228] sm:$0xff] }
 0xb25   :  { %v4711_v62 = vld [vmem:[%s8899_s18 + $0x1e0] sm:$0xff]  ;;  %v4712_v52 = vld [vmem:[%s8899_s18 + $0x1e8] sm:$0xff] }
 0xb26   :  { %v3201_v3 = vmax.f32 %v3092_v34, %v3196_v30  ;;  %v4714_v30 = vld [vmem:[%s8899_s18 + $0x1f8] sm:$0xff]  ;;  %v4709_v34 = vld [vmem:[%s8899_s18 + $0x1d0] sm:$0xff] }
 0xb28   :  { %v3249_v7 = vmax.f32 %v3201_v3, %v3244_v53  ;;  %v4710_v3 = vld [vmem:[%s8899_s18 + $0x1d8] sm:$0xff]  ;;  %v4708_v53 = vld [vmem:[%s8899_s18 + $0x1c8] sm:$0xff] }
 0xb2a   :  { %v3175_v9 = vpop.f32.mrf.mxu2  ;;  %v3223_v18 = vpop.f32.mrf.mxu3 }
 0xb2b   :  { %v3198_v13 = vpop.f32.mrf.mxu1  ;;  %v3246_v10 = vpop.f32.mrf.mxu0 }
 0xb2c   :  { %v3199_v58 = vadd.f32 %v3198_v13, %v3175_v9  ;;  %v3247_v61 = vadd.f32 %v3246_v10, %v3223_v18  ;;  %v4716_v9 = vld [vmem:[%s8899_s18 + $0x208] sm:$0xff]  ;;  %v4713_v13 = vld [vmem:[%s8899_s18 + $0x1f0] sm:$0xff]  ;;  %v3662_v18 = vld [vmem:[%s8900_s19 + $0x60] sm:$0xff] }
 0xb2d   :  { %v3661_v10 = vld [vmem:[%s8900_s19 + $0x58] sm:$0xff] }
 0xb2e   :  { %v3202_v32 = vmax.f32 %v3093_v25, %v3199_v58 }
 0xb30   :  { %v3250_v41 = vmax.f32 %v3202_v32, %v3247_v61  ;;  %v3660_v32 = vld [vmem:[%s8900_s19 + $0x50] sm:$0xff]  ;;  %v3659_v61 = vld [vmem:[%s8900_s19 + $0x48] sm:$0xff] }
 0xb32   :  { %v3291_v35 = vpop.f32.mrf.mxu2 }
 0xb33   :  { %v3268_v2 = vpop.f32.mrf.mxu1 }
 0xb34   :  { %v3292_v27 = vadd.f32 %v3291_v35, %v3268_v2  ;;  %v3665_v35 = vld [vmem:[%s8900_s19 + $0x78] sm:$0xff]  ;;  %v3664_v2 = vld [vmem:[%s8900_s19 + $0x70] sm:$0xff] }
 0xb35   :  { %3681 = vmatpush.msrb.mxu2 %v3665_v35 }
 0xb36   :  { %v3297_v60 = vmax.f32 %v3249_v7, %v3292_v27  ;;  %v3663_v7 = vld [vmem:[%s8900_s19 + $0x68] sm:$0xff] }
 0xb37   :  { %3682 = vmatpush.msrb.mxu2 %v3664_v2 }
 0xb38   :  { %4698 = vmatmul.msk.f32.vlgmr.msra.gmra.mxu2 %vm2288_vm9, %v3297_v60  ;;  %4700 = vmatmul.msk.f32.vlgmr.msrb.gmra.mxu1 %vm2288_vm9, %v3297_v60 }
 0xb39   :  { %3683 = vmatpush.msrb.mxu2 %v3663_v7 }
 0xb3a   :  { %v3294_v59 = vpop.f32.mrf.mxu2 }
 0xb3b   :  { %v3271_v36 = vpop.f32.mrf.mxu1  ;;  %3684 = vmatpush.msrb.mxu2 %v3662_v18 }
 0xb3c   :  { %v3295_v31 = vadd.f32 %v3294_v59, %v3271_v36  ;;  %v3658_v36 = vld [vmem:[%s8900_s19 + $0x40] sm:$0xff]  ;;  %v3677_v59 = vld [vmem:[%s8900_s19 + $0xd8] sm:$0xff] }
 0xb3d   :  { %3685 = vmatpush.msrb.mxu2 %v3661_v10  ;;  %3705 = vmatpush.msra.mxu1 %v3677_v59 }
 0xb3e   :  { %v3298_v17 = vmax.f32 %v3250_v41, %v3295_v31  ;;  %v3657_v41 = vld [vmem:[%s8900_s19 + $0x38] sm:$0xff]  ;;  %v3676_v31 = vld [vmem:[%s8900_s19 + $0xd0] sm:$0xff] }
 0xb3f   :  { %3686 = vmatpush.msrb.mxu2 %v3660_v32  ;;  %3706 = vmatpush.msra.mxu1 %v3676_v31 }
 0xb40   :  { %4691 = vmatpush.msk.msra.mxu0 %vm1920_vm7, %v3298_v17  ;;  %4699 = vmatmul.msk.f32.gmra.mxu2 %vm2288_vm9, %v3298_v17 }
 0xb41   :  { %4701 = vmatmul.msk.f32.gmra.mxu1 %vm2288_vm9, %v3298_v17  ;;  %4704 = vmatpush.msk.msra.mxu3 %vm1920_vm7, %v3298_v17  ;;  %v3656_v17 = vld [vmem:[%s8900_s19 + $0x30] sm:$0xff] }
 0xb42   :  { %3355 = vmatpush.msra.mxu0 %v3297_v60  ;;  %3687 = vmatpush.msrb.mxu2 %v3659_v61 }
 0xb43   :  { %3518 = vmatpush.msra.mxu3 %v3297_v60  ;;  %4692 = vmatmul.msk.f32.vlgmr.msra.gmra.mxu0 %vm3330_vm15, %v3328_v8  ;;  %v3675_v8 = vld [vmem:[%s8900_s19 + $0xc8] sm:$0xff] }
 0xb44   :  { %3422 = vmatpush.msrb.mxu0 %v3390_v54  ;;  %3688 = vmatpush.msrb.mxu2 %v3658_v36 }
 0xb45   :  { %3707 = vmatpush.msra.mxu1 %v3675_v8 }
 0xb46   :  { %3423 = vmatpush.msrb.mxu0 %v3388_v57  ;;  %3689 = vmatpush.msrb.mxu2 %v3657_v41  ;;  %v3655_v57 = vld [vmem:[%s8900_s19 + $0x28] sm:$0xff] }
 0xb48   :  { %3424 = vmatpush.msrb.mxu0 %v3386_v14  ;;  %3690 = vmatpush.msrb.mxu2 %v3656_v17  ;;  %v3674_v14 = vld [vmem:[%s8900_s19 + $0xc0] sm:$0xff] }
 0xb49   :  { %3708 = vmatpush.msra.mxu1 %v3674_v14 }
 0xb4a   :  { %3425 = vmatpush.msrb.mxu0 %v3384_v33  ;;  %3691 = vmatpush.msrb.mxu2 %v3655_v57  ;;  %v3654_v33 = vld [vmem:[%s8900_s19 + $0x20] sm:$0xff] }
 0xb4b   :  { %4693 = vmatmul.msk.f32.gmra.mxu0 %vm3330_vm15, %v3329_v1  ;;  %v3673_v1 = vld [vmem:[%s8900_s19 + $0xb8] sm:$0xff] }
 0xb4c   :  { %3426 = vmatpush.msrb.mxu0 %v3382_v38  ;;  %3692 = vmatpush.msrb.mxu2 %v3654_v33  ;;  %v3653_v38 = vld [vmem:[%s8900_s19 + $0x18] sm:$0xff] }
 0xb4d   :  { %3709 = vmatpush.msra.mxu1 %v3673_v1 }
 0xb4e   :  { %3427 = vmatpush.msrb.mxu0 %v3380_v47  ;;  %v3672_v47 = vld [vmem:[%s8900_s19 + $0xb0] sm:$0xff]  ;;  %3693 = vmatpush.msrb.mxu2 %v3653_v38 }
 0xb4f   :  { %3710 = vmatpush.msra.mxu1 %v3672_v47 }
 0xb50   :  { %3428 = vmatpush.msrb.mxu0 %v3378_v28  ;;  %v3652_v28 = vld [vmem:[%s8900_s19 + $0x10] sm:$0xff] }
 0xb51   :  { %3694 = vmatpush.msrb.mxu2 %v3652_v28 }
 0xb52   :  { %3429 = vmatpush.msrb.mxu0 %v3376_v44  ;;  %v3671_v44 = vld [vmem:[%s8900_s19 + $0xa8] sm:$0xff] }
 0xb53   :  { %3711 = vmatpush.msra.mxu1 %v3671_v44 }
 0xb54   :  { %3430 = vmatpush.msrb.mxu0 %v3374_v0  ;;  %v3651_v0 = vld [vmem:[%s8900_s19 + $0x8] sm:$0xff] }
 0xb55   :  { %3695 = vmatpush.msrb.mxu2 %v3651_v0 }
 0xb56   :  { %3431 = vmatpush.msrb.mxu0 %v3372_v20  ;;  %v3670_v20 = vld [vmem:[%s8900_s19 + $0xa0] sm:$0xff] }
 0xb57   :  { %3712 = vmatpush.msra.mxu1 %v3670_v20 }
 0xb58   :  { %3432 = vmatpush.msrb.mxu0 %v3370_v48 }
 0xb5a   :  { %3433 = vmatpush.msrb.mxu0 %v3368_v23  ;;  %v3650_v23 = vld [vmem:[%s8900_s19] sm:$0xff] }
 0xb5b   :  { %3696 = vmatpush.msrb.mxu2 %v3650_v23 }
 0xb5c   :  { %3434 = vmatpush.msrb.mxu0 %v3366_v49  ;;  %v3669_v49 = vld [vmem:[%s8900_s19 + $0x98] sm:$0xff] }
 0xb5d   :  { %3713 = vmatpush.msra.mxu1 %v3669_v49 }
 0xb5e   :  { %3435 = vmatpush.msrb.mxu0 %v3364_v50  ;;  %v3668_v50 = vld [vmem:[%s8900_s19 + $0x90] sm:$0xff] }
 0xb5f   :  { %3714 = vmatpush.msra.mxu1 %v3668_v50 }
 0xb60   :  { %3563 = vmatpush.msra.mxu0 %v4733_v19 }
 0xb62   :  { %3564 = vmatpush.msra.mxu0 %v4731_v15  ;;  %v3667_v15 = vld [vmem:[%s8900_s19 + $0x88] sm:$0xff] }
 0xb63   :  { %3715 = vmatpush.msra.mxu1 %v3667_v15 }
 0xb64   :  { %3565 = vmatpush.msra.mxu0 %v4729_v29 }
 0xb66   :  { %3566 = vmatpush.msra.mxu0 %v4727_v6 }
 0xb68   :  { %3567 = vmatpush.msra.mxu0 %v4725_v11 }
 0xb6a   :  { %3568 = vmatpush.msra.mxu0 %v4723_v46 }
 0xb6c   :  { %3569 = vmatpush.msra.mxu0 %v4721_v5 }
 0xb6e   :  { %3570 = vmatpush.msra.mxu0 %v4719_v55 }
 0xb70   :  { %3571 = vmatpush.msra.mxu0 %v4717_v21 }
 0xb72   :  { %3572 = vmatpush.msra.mxu0 %v4715_v39 }
 0xb74   :  { %3573 = vmatpush.msra.mxu0 %v4713_v13 }
 0xb76   :  { %3574 = vmatpush.msra.mxu0 %v4711_v62 }
 0xb78   :  { %3575 = vmatpush.msra.mxu0 %v4709_v34 }
 0xb7a   :  { %3576 = vmatpush.msra.mxu0 %v4707_v43 }
 0xbbb   :  { %v3465_v19 = vpop.f32.mrf.mxu2 }
 0xbc0   :  { %v3357_v42 = vpop.f32.mrf.mxu0 }
 0xbc1   :  { %4694 = vmatmul.msk.f32.vlgmr.msrb.gmra.mxu3 %vm2288_vm9, %v3357_v42  ;;  %4696 = vmatmul.msk.f32.vlgmr.msrb.gmra.mxu0 %vm2288_vm9, %v3357_v42 }
 0xbc2   :  { %3586 = vmatpush.msrb.mxu3 %v4734_v56  ;;  %3724 = vmatpush.msrb.mxu0 %v3665_v35  ;;  %v3666_v56 = vld [vmem:[%s8900_s19 + $0x80] sm:$0xff] }
 0xbc3   :  { %3716 = vmatpush.msra.mxu1 %v3666_v56 }
 0xbc4   :  { %3587 = vmatpush.msrb.mxu3 %v4732_v63  ;;  %3725 = vmatpush.msrb.mxu0 %v3664_v2  ;;  %v3488_v63 = vpop.f32.mrf.mxu1 }
 0xbc6   :  { %3588 = vmatpush.msrb.mxu3 %v4730_v24  ;;  %3726 = vmatpush.msrb.mxu0 %v3663_v7 }
 0xbc8   :  { %v3360_v22 = vpop.f32.mrf.mxu0  ;;  %3589 = vmatpush.msrb.mxu3 %v4728_v37  ;;  %3727 = vmatpush.msrb.mxu0 %v3662_v18 }
 0xbc9   :  { %4695 = vmatmul.msk.f32.gmra.mxu3 %vm2288_vm9, %v3360_v22  ;;  %4697 = vmatmul.msk.f32.gmra.mxu0 %vm2288_vm9, %v3360_v22  ;;  %v3468_v22 = vpop.f32.mrf.mxu2 }
 0xbca   :  { %3590 = vmatpush.msrb.mxu3 %v4726_v26  ;;  %3728 = vmatpush.msrb.mxu0 %v3661_v10 }
 0xbcc   :  { %3591 = vmatpush.msrb.mxu3 %v4724_v12  ;;  %3729 = vmatpush.msrb.mxu0 %v3660_v32  ;;  %v3491_v5 = vpop.f32.mrf.mxu1 }
 0xbce   :  { %3592 = vmatpush.msrb.mxu3 %v4722_v4  ;;  %3730 = vmatpush.msrb.mxu0 %v3659_v61 }
 0xbd0   :  { %3593 = vmatpush.msrb.mxu3 %v4720_v16  ;;  %3731 = vmatpush.msrb.mxu0 %v3658_v36 }
 0xbd1   :  { %4705 = vmatmul.msk.f32.vlgmr.msra.gmra.mxu3 %vm3330_vm15, %v4702_v45 }
 0xbd2   :  { %3594 = vmatpush.msrb.mxu3 %v4718_v51  ;;  %3732 = vmatpush.msrb.mxu0 %v3657_v41 }
 0xbd4   :  { %3595 = vmatpush.msrb.mxu3 %v4716_v9  ;;  %3733 = vmatpush.msrb.mxu0 %v3656_v17 }
 0xbd6   :  { %3596 = vmatpush.msrb.mxu3 %v4714_v30  ;;  %3734 = vmatpush.msrb.mxu0 %v3655_v57 }
 0xbd8   :  { %3597 = vmatpush.msrb.mxu3 %v4712_v52  ;;  %3735 = vmatpush.msrb.mxu0 %v3654_v33 }
 0xbd9   :  { %4706 = vmatmul.msk.f32.gmra.mxu3 %vm3330_vm15, %v4703_v40 }
 0xbda   :  { %3598 = vmatpush.msrb.mxu3 %v4710_v3  ;;  %3736 = vmatpush.msrb.mxu0 %v3653_v38 }
 0xbdc   :  { %3599 = vmatpush.msrb.mxu3 %v4708_v53  ;;  %3737 = vmatpush.msrb.mxu0 %v3652_v28  ;;  %v3790_v28 = vld [vmem:[%s8901_s20 + $0x30] sm:$0xff] }
 0xbdd   :  { %3808 = vmatpush.msrb.mxu1 %v3790_v28 }
 0xbde   :  { %3748 = vmatpush.msra.mxu3 %v3677_v59  ;;  %3738 = vmatpush.msrb.mxu0 %v3651_v0 }
 0xbe0   :  { %3749 = vmatpush.msra.mxu3 %v3676_v31  ;;  %3739 = vmatpush.msrb.mxu0 %v3650_v23  ;;  %v3789_v23 = vld [vmem:[%s8901_s20 + $0x28] sm:$0xff] }
 0xbe2   :  { %3750 = vmatpush.msra.mxu3 %v3675_v8 }
 0xbe4   :  { %3751 = vmatpush.msra.mxu3 %v3674_v14 }
 0xbe6   :  { %3752 = vmatpush.msra.mxu3 %v3673_v1 }
 0xbe8   :  { %3753 = vmatpush.msra.mxu3 %v3672_v47 }
 0xbea   :  { %3754 = vmatpush.msra.mxu3 %v3671_v44  ;;  %v3791_v44 = vld [vmem:[%s8901_s20 + $0x38] sm:$0xff] }
 0xbeb   :  { %3828 = vmatpush.msra.mxu2 %v3791_v44 }
 0xbec   :  { %3755 = vmatpush.msra.mxu3 %v3670_v20 }
 0xbed   :  { %3829 = vmatpush.msra.mxu2 %v3789_v23 }
 0xbee   :  { %3756 = vmatpush.msra.mxu3 %v3669_v49  ;;  %v3786_v49 = vld [vmem:[%s8901_s20 + $0x10] sm:$0xff] }
 0xbf0   :  { %3757 = vmatpush.msra.mxu3 %v3668_v50  ;;  %v3787_v50 = vld [vmem:[%s8901_s20 + $0x18] sm:$0xff] }
 0xbf1   :  { %3830 = vmatpush.msra.mxu2 %v3787_v50 }
 0xbf2   :  { %3758 = vmatpush.msra.mxu3 %v3667_v15  ;;  %v3784_v15 = vld [vmem:[%s8901_s20] sm:$0xff] }
 0xbf4   :  { %3759 = vmatpush.msra.mxu3 %v3666_v56  ;;  %v3785_v56 = vld [vmem:[%s8901_s20 + $0x8] sm:$0xff] }
 0xbf5   :  { %3831 = vmatpush.msra.mxu2 %v3785_v56 }
 0xc3e   :  { %v3437_v54 = vpop.f32.mrf.mxu0 }
 0xc3f   :  { %v3489_v37 = vadd.f32 %v3488_v63, %v3437_v54 }
 0xc44   :  { %v8509_v58 = vpop.f32.mrf.mxu3 }
 0xc45   :  { %v3466_v45 = vadd.f32 %v3465_v19, %v8509_v58 }
 0xc46   :  { %v3440_v48 = vpop.f32.mrf.mxu0 }
 0xc47   :  { %v3492_v16 = vadd.f32 %v3491_v5, %v3440_v48  ;;  %v3788_v48 = vld [vmem:[%s8901_s20 + $0x20] sm:$0xff] }
 0xc48   :  { %3809 = vmatpush.msrb.mxu1 %v3788_v48 }
 0xc4a   :  { %3810 = vmatpush.msrb.mxu1 %v3786_v49 }
 0xc4c   :  { %v8511_v27 = vpop.f32.mrf.mxu3  ;;  %3811 = vmatpush.msrb.mxu1 %v3784_v15 }
 0xc4d   :  { %v3469_v29 = vadd.f32 %v3468_v22, %v8511_v27 }
 0xc54   :  { %v3520_v25 = vpop.f32.mrf.mxu3 }
 0xc55   :  { %4735 = vmatmul.msk.f32.vlgmr.msra.gmra.mxu0 %vm2288_vm9, %v3520_v25  ;;  %4737 = vmatmul.msk.f32.vlgmr.msrb.gmra.mxu3 %vm2288_vm9, %v3520_v25 }
 0xc5c   :  { %v3523_v60 = vpop.f32.mrf.mxu3 }
 0xc5d   :  { %4736 = vmatmul.msk.f32.gmra.mxu0 %vm2288_vm9, %v3523_v60  ;;  %4738 = vmatmul.msk.f32.gmra.mxu3 %vm2288_vm9, %v3523_v60 }
 0xcd2   :  { %v3578_v42 = vpop.f32.mrf.mxu0 }
 0xcd3   :  { %v8594_v24 = vadd.f32 %v3578_v42, %v3466_v45 }
 0xcd5   :  { %v3629_v4 = vmul.f32 %v8594_v24, %v8594_v24 }
 0xcd8   :  { %v3601_v40 = vpop.f32.mrf.mxu3 }
 0xcd9   :  { %v8598_v26 = vadd.f32 %v3601_v40, %v3489_v37 }
 0xcda   :  { %v3581_v6 = vpop.f32.mrf.mxu0 }
 0xcdb   :  { %v8596_v11 = vadd.f32 %v3581_v6, %v3469_v29  ;;  %v3630_v13 = vmul.f32 %v8598_v26, %v8598_v26  ;;  %v3619_v34 = vsel %vm221_vm1, %v8598_v26, 0.0 }
 0xcdd   :  { %v3611_v46 = vsel %vm1920_vm7, %v8596_v11, 0.0  ;;  %v3631_v12 = vmul.f32 %v8596_v11, %v8596_v11  ;;  %v3641_v7 = vsel %vm221_vm1, %v3630_v13, 0.0  ;;  %v3781_v13 = vld [vmem:[%s8903_s22] sm:$0x1] }
 0xcde   :  { %v3612_v55 = vadd.f32 %v3611_v46, %v8594_v24 }
 0xcdf   :  { %v3633_v21 = vsel %vm1920_vm7, %v3631_v12, 0.0 }
 0xce0   :  { %v3613_v51 = vrot.slane %v3612_v55, 4  ;;  %v3634_v39 = vadd.f32 %v3633_v21, %v3629_v4  ;;  %v3604_v9 = vpop.f32.mrf.mxu3 }
 0xce1   :  { %v8610_v30 = vadd.f32 %v3604_v9, %v3492_v16  ;;  %v3768_v16 = vld [vmem:[%s8902_s21] sm:$0x1] }
 0xce2   :  { %v3614_v62 = vadd.f32 %v3613_v51, %v3612_v55  ;;  %v3635_v52 = vrot.slane %v3634_v39, 4 }
 0xce3   :  { %v3621_v3 = vsel %vm3620_vm0, %v8610_v30, 0.0  ;;  %v3632_v43 = vmul.f32 %v8610_v30, %v8610_v30 }
 0xce4   :  { %v3615_v53 = vrot.slane %v3614_v62, 2  ;;  %v3636_v35 = vadd.f32 %v3635_v52, %v3634_v39  ;;  %v3622_v2 = vadd.f32 %v3621_v3, %v3619_v34  ;;  %v3960_v52 = vld [vmem:[%s8905_s24 + $0x78] sm:$0xff]  ;;  %v3959_v34 = vld [vmem:[%s8905_s24 + $0x70] sm:$0xff]  ;;  %v3958_v3 = vld [vmem:[%s8905_s24 + $0x68] sm:$0xff] }
 0xce5   :  { %v3642_v58 = vsel %vm3620_vm0, %v3632_v43, 0.0  ;;  %v3972_v43 = vld [vmem:[%s8905_s24 + $0xd8] sm:$0xff] }
 0xce6   :  { %v3616_v27 = vadd.f32 %v3615_v53, %v3614_v62  ;;  %v3637_v25 = vrot.slane %v3636_v35, 2  ;;  %v3623_v60 = vrot.slane %v3622_v2, 4  ;;  %v3643_v18 = vadd.f32 %v3642_v58, %v3641_v7  ;;  %4000 = vmatpush.msra.mxu0 %v3972_v43  ;;  %v3971_v53 = vld [vmem:[%s8905_s24 + $0xd0] sm:$0xff]  ;;  %v3956_v7 = vld [vmem:[%s8905_s24 + $0x58] sm:$0xff]  ;;  %v3969_v58 = vld [vmem:[%s8905_s24 + $0xc0] sm:$0xff] }
 0xce7   :  { %v4769_v43 = vld [vmem:[%s8906_s25 + $0x4] sm:$0x3] }
 0xce8   :  { %v3617_v10 = vrot.slane %v3616_v27, 1  ;;  %v3638_v32 = vadd.f32 %v3637_v25, %v3636_v35  ;;  %v3624_v61 = vadd.f32 %v3623_v60, %v3622_v2  ;;  %v3644_v36 = vrot.slane %v3643_v18, 4  ;;  %v3957_v35 = vld [vmem:[%s8905_s24 + $0x60] sm:$0xff]  ;;  %v3970_v2 = vld [vmem:[%s8905_s24 + $0xc8] sm:$0xff]  ;;  %4001 = vmatpush.msra.mxu0 %v3971_v53  ;;  %v3955_v25 = vld [vmem:[%s8905_s24 + $0x50] sm:$0xff] }
 0xce9   :  { %v3968_v60 = vld [vmem:[%s8905_s24 + $0xb8] sm:$0xff]  ;;  %v4046_v53 = vld [vmem:[%s8907_s26] sm:$0xff] }
 0xcea   :  { %v3625_v59 = vrot.slane %v3624_v61, 2  ;;  %v3645_v41 = vadd.f32 %v3644_v36, %v3643_v18  ;;  %v3618_v31 = vadd.f32 %v3617_v10, %v3616_v27  ;;  %v3639_v17 = vrot.slane %v3638_v32, 1  ;;  %4002 = vmatpush.msra.mxu0 %v3970_v2  ;;  %v3954_v18 = vld [vmem:[%s8905_s24 + $0x48] sm:$0xff]  ;;  %v3967_v10 = vld [vmem:[%s8905_s24 + $0xb0] sm:$0xff]  ;;  %v4767_v2 = vld [vmem:[%s8907_s26 + $0xb8] sm:$0xff] }
 0xcec   :  { %v3626_v8 = vadd.f32 %v3625_v59, %v3624_v61  ;;  %v3646_v54 = vrot.slane %v3645_v41, 2  ;;  %3697 = vmatmul.f32.vlgmr.msrb.gmra.mxu2 %v3618_v31  ;;  %v3640_v57 = vadd.f32 %v3639_v17, %v3638_v32  ;;  %4003 = vmatpush.msra.mxu0 %v3969_v58  ;;  %v3953_v32 = vld [vmem:[%s8905_s24 + $0x40] sm:$0xff]  ;;  %v3966_v61 = vld [vmem:[%s8905_s24 + $0xa8] sm:$0xff]  ;;  %v4766_v58 = vld [vmem:[%s8907_s26 + $0xb0] sm:$0xff] }
 0xced   :  { %3871 = vmatpush.msrb.mxu2 %v3791_v44  ;;  %v3965_v31 = vld [vmem:[%s8905_s24 + $0xa0] sm:$0xff] }
 0xcee   :  { %v3627_v14 = vrot.slane %v3626_v8, 1  ;;  %v3647_v33 = vadd.f32 %v3646_v54, %v3645_v41  ;;  %3740 = vmatmul.f32.vlgmr.msrb.gmra.mxu0 %v3640_v57  ;;  %v3952_v41 = vld [vmem:[%s8905_s24 + $0x38] sm:$0xff] }
 0xcef   :  { %3872 = vmatpush.msrb.mxu2 %v3789_v23  ;;  %4004 = vmatpush.msra.mxu0 %v3968_v60  ;;  %v4753_v60 = vld [vmem:[%s8906_s25 + $0x2] sm:$0x3] }
 0xcf0   :  { %v3628_v1 = vadd.f32 %v3627_v14, %v3626_v8  ;;  %v3648_v38 = vrot.slane %v3647_v33, 1  ;;  %v3951_v8 = vld [vmem:[%s8905_s24 + $0x30] sm:$0xff] }
 0xcf1   :  { %3873 = vmatpush.msrb.mxu2 %v3787_v50  ;;  %4005 = vmatpush.msra.mxu0 %v3967_v10  ;;  %v3947_v50 = vld [vmem:[%s8905_s24 + $0x10] sm:$0xff]  ;;  %v4764_v10 = vld [vmem:[%s8907_s26 + $0xa0] sm:$0xff] }
 0xcf2   :  { %v3649_v47 = vadd.f32 %v3648_v38, %v3647_v33  ;;  %4739 = vmatmul.msk.f32.vlgmr.msra.gmra.mxu1 %vm221_vm1, %v3628_v1  ;;  %v3950_v33 = vld [vmem:[%s8905_s24 + $0x28] sm:$0xff] }
 0xcf3   :  { %3851 = vmatpush.msra.mxu1 %v3790_v28  ;;  %3874 = vmatpush.msrb.mxu2 %v3785_v56  ;;  %v3949_v28 = vld [vmem:[%s8905_s24 + $0x20] sm:$0xff] }
 0xcf4   :  { %4740 = vmatmul.msk.f32.vlgmr.msra.gmra.mxu3 %vm221_vm1, %v3649_v47  ;;  %4006 = vmatpush.msra.mxu0 %v3966_v61  ;;  %v4763_v61 = vld [vmem:[%s8907_s26 + $0x98] sm:$0xff] }
 0xcf5   :  { %3852 = vmatpush.msra.mxu1 %v3788_v48 }
 0xcf6   :  { %4007 = vmatpush.msra.mxu0 %v3965_v31  ;;  %v4761_v31 = vld [vmem:[%s8907_s26 + $0x88] sm:$0xff] }
 0xcf7   :  { %3853 = vmatpush.msra.mxu1 %v3786_v49  ;;  %v3895_v49 = vld [vmem:[%s8904_s23] sm:$0x3f] }
 0xcf9   :  { %3854 = vmatpush.msra.mxu1 %v3784_v15 }
 0xd6b   :  { %v3741_v63 = vpop.f32.mrf.mxu0 }
 0xd6f   :  { %v3698_v0 = vpop.f32.mrf.mxu2  ;;  %v3718_v20 = vpop.f32.mrf.mxu1 }
 0xd70   :  { %v3719_v19 = vadd.f32 %v3718_v20, %v3698_v0 }
 0xd72   :  { %v3764_v42 = vmul.f32 0.010204081, %v3719_v19 }
 0xd74   :  { %v3766_v40 = vmul.f32 %v3764_v42, %v3764_v42 }
 0xd77   :  { %v3761_v22 = vpop.f32.mrf.mxu3 }
 0xd78   :  { %v3762_v45 = vadd.f32 %v3761_v22, %v3741_v63  ;;  %v3964_v63 = vld [vmem:[%s8905_s24 + $0x98] sm:$0xff]  ;;  %v3963_v22 = vld [vmem:[%s8905_s24 + $0x90] sm:$0xff] }
 0xd79   :  { %4008 = vmatpush.msra.mxu0 %v3964_v63 }
 0xd7a   :  { %v3765_v29 = vmul.f32 0.010204081, %v3762_v45  ;;  %v3962_v45 = vld [vmem:[%s8905_s24 + $0x88] sm:$0xff] }
 0xd7b   :  { %4009 = vmatpush.msra.mxu0 %v3963_v22 }
 0xd7c   :  { %v3767_v6 = vsub.f32 %v3765_v29, %v3766_v40  ;;  %v3961_v40 = vld [vmem:[%s8905_s24 + $0x80] sm:$0xff] }
 0xd7d   :  { %4010 = vmatpush.msra.mxu0 %v3962_v45 }
 0xd7e   :  { %v3769_v37 = vadd.f32 1e-05, %v3767_v6 }
 0xd7f   :  { %4011 = vmatpush.msra.mxu0 %v3961_v40 }
 0xd80   :  { %4791 = vrsqrt.f32 %v3769_v37  ;;  %vm3776_vm3 = vweird.f32 %v3769_v37 }
 0xd86   :  { %v4792_v46 = vpop.eup %4791 }
 0xd87   :  { %v3771_v12 = vmul.f32 %v4792_v46, %v3769_v37  ;;  %vm3777_vm2 = vweird.f32 %v4792_v46  ;;  %v4057_v37 = vld [vmem:[%s8907_s26 + $0x58] sm:$0xff] }
 0xd88   :  { %vm3778_vm4 = vmor %vm3776_vm3, %vm3777_vm2 }
 0xd89   :  { %v3772_v5 = vmul.f32 %v4792_v46, %v3771_v12  ;;  %v4055_v12 = vld [vmem:[%s8907_s26 + $0x48] sm:$0xff] }
 0xd8b   :  { %v3773_v4 = vmul.f32 0.5, %v3772_v5  ;;  %v4054_v5 = vld [vmem:[%s8907_s26 + $0x40] sm:$0xff] }
 0xd8d   :  { %v3774_v55 = vsub.f32 1.5, %v3773_v4  ;;  %v4053_v4 = vld [vmem:[%s8907_s26 + $0x38] sm:$0xff] }
 0xd8f   :  { %v3775_v21 = vmul.f32 %v4792_v46, %v3774_v55  ;;  %v4052_v55 = vld [vmem:[%s8907_s26 + $0x30] sm:$0xff] }
 0xd91   :  { %v3779_v51 = vsel %vm3778_vm4, %v4792_v46, %v3775_v21  ;;  %v4056_v46 = vld [vmem:[%s8907_s26 + $0x50] sm:$0xff]  ;;  %v4050_v21 = vld [vmem:[%s8907_s26 + $0x20] sm:$0xff] }
 0xd92   :  { %v3780_v39 = vmul.f32 %v3779_v51, %v3768_v16  ;;  %v4051_v16 = vld [vmem:[%s8907_s26 + $0x28] sm:$0xff]  ;;  %v4049_v51 = vld [vmem:[%s8907_s26 + $0x18] sm:$0xff] }
 0xd94   :  { %4741 = vmatmul.msk.f32.vlgmr.msrb.gmra.mxu1 %vm3792_vm5, %v3780_v39  ;;  %4742 = vmatmul.msk.f32.vlgmr.msra.gmra.mxu2 %vm3792_vm5, %v3780_v39  ;;  %v3782_v9 = vmul.f32 %v3780_v39, %v3764_v42  ;;  %v3945_v42 = vld [vmem:[%s8905_s24] sm:$0xff] }
 0xd95   :  { %3976 = vmatpush.msra.mxu2 %v3960_v52 }
 0xd96   :  { %v3783_v62 = vsub.f32 %v3781_v13, %v3782_v9  ;;  %v4048_v9 = vld [vmem:[%s8907_s26 + $0x10] sm:$0xff] }
 0xd97   :  { %3977 = vmatpush.msra.mxu2 %v3959_v34  ;;  %v4018_v34 = vld [vmem:[%s8906_s25] sm:$0x3] }
 0xd99   :  { %3978 = vmatpush.msra.mxu2 %v3958_v3 }
 0xd9b   :  { %3979 = vmatpush.msra.mxu2 %v3957_v35  ;;  %v4783_v35 = vld [vmem:[%s8907_s26 + $0x118] sm:$0xff] }
 0xd9c   :  { %4743 = vmatmul.msk.f32.vlgmr.msra.gmra.mxu1 %vm3792_vm5, %v3783_v62  ;;  %4744 = vmatmul.msk.f32.vlgmr.msrb.gmra.mxu2 %vm3792_vm5, %v3783_v62  ;;  %v4047_v62 = vld [vmem:[%s8907_s26 + $0x8] sm:$0xff] }
 0xd9d   :  { %3980 = vmatpush.msra.mxu2 %v3956_v7  ;;  %v4782_v7 = vld [vmem:[%s8907_s26 + $0x110] sm:$0xff] }
 0xd9f   :  { %3981 = vmatpush.msra.mxu2 %v3955_v25  ;;  %v4765_v25 = vld [vmem:[%s8907_s26 + $0xa8] sm:$0xff] }
 0xda1   :  { %3982 = vmatpush.msra.mxu2 %v3954_v18  ;;  %v4780_v18 = vld [vmem:[%s8907_s26 + $0x100] sm:$0xff] }
 0xda3   :  { %3983 = vmatpush.msra.mxu2 %v3953_v32  ;;  %v4779_v32 = vld [vmem:[%s8907_s26 + $0xf8] sm:$0xff] }
 0xda5   :  { %3984 = vmatpush.msra.mxu2 %v3952_v41  ;;  %v4762_v41 = vld [vmem:[%s8907_s26 + $0x90] sm:$0xff] }
 0xda7   :  { %3985 = vmatpush.msra.mxu2 %v3951_v8  ;;  %v4760_v8 = vld [vmem:[%s8907_s26 + $0x80] sm:$0xff] }
 0xda9   :  { %3986 = vmatpush.msra.mxu2 %v3950_v33  ;;  %v4758_v33 = vld [vmem:[%s8907_s26 + $0x70] sm:$0xff] }
 0xdab   :  { %3987 = vmatpush.msra.mxu2 %v3949_v28  ;;  %v4756_v28 = vld [vmem:[%s8907_s26 + $0x60] sm:$0xff] }
 0xe11   :  { %v3813_v27 = vpop.f32.mrf.mxu1 }
 0xe12   :  { %v3879_v36 = vperm.slane %v3813_v27, 0  ;;  %v4781_v27 = vld [vmem:[%s8907_s26 + $0x108] sm:$0xff] }
 0xe14   :  { %v3881_v54 = vmul.f32 %v3879_v36, %v8594_v24  ;;  %v3883_v57 = vmul.f32 %v3879_v36, %v8596_v11  ;;  %v3948_v11 = vld [vmem:[%s8905_s24 + $0x18] sm:$0xff]  ;;  %v4778_v36 = vld [vmem:[%s8907_s26 + $0xf0] sm:$0xff] }
 0xe15   :  { %3988 = vmatpush.msra.mxu2 %v3948_v11 }
 0xe17   :  { %v3833_v59 = vpop.f32.mrf.mxu2  ;;  %3989 = vmatpush.msra.mxu2 %v3947_v50 }
 0xe18   :  { %v3880_v1 = vperm.slane %v3833_v59, 0  ;;  %v4777_v59 = vld [vmem:[%s8907_s26 + $0xe8] sm:$0xff] }
 0xe19   :  { %v3856_v17 = vpop.f32.mrf.mxu1 }
 0xe1a   :  { %v3885_v14 = vperm.slane %v3856_v17, 0  ;;  %v3882_v0 = vmul.f32 %v3880_v1, %v8598_v26  ;;  %v3884_v20 = vmul.f32 %v3880_v1, %v8610_v30  ;;  %v3946_v26 = vld [vmem:[%s8905_s24 + $0x8] sm:$0xff]  ;;  %v4776_v17 = vld [vmem:[%s8907_s26 + $0xe0] sm:$0xff] }
 0xe1b   :  { %3990 = vmatpush.msra.mxu2 %v3946_v26  ;;  %v4773_v1 = vld [vmem:[%s8907_s26 + $0xc8] sm:$0xff] }
 0xe1c   :  { %v3887_v38 = vadd.f32 %v3885_v14, %v3881_v54  ;;  %v3889_v47 = vadd.f32 %v3885_v14, %v3883_v57  ;;  %v4775_v54 = vld [vmem:[%s8907_s26 + $0xd8] sm:$0xff]  ;;  %v4774_v14 = vld [vmem:[%s8907_s26 + $0xd0] sm:$0xff] }
 0xe1d   :  { %3991 = vmatpush.msra.mxu2 %v3945_v42  ;;  %v4759_v57 = vld [vmem:[%s8907_s26 + $0x78] sm:$0xff] }
 0xe1e   :  { %v3893_v44 = vmax.f32 %v3889_v47, 0.0  ;;  %v3891_v48 = vmax.f32 %v3887_v38, 0.0  ;;  %v4772_v38 = vld [vmem:[%s8907_s26 + $0xc0] sm:$0xff]  ;;  %v4757_v47 = vld [vmem:[%s8907_s26 + $0x68] sm:$0xff]  ;;  %s4823_s26 = smov [#allocation2]  }
 0xe1f   :  { %v3876_v24 = vpop.f32.mrf.mxu2 }
 0xe20   :  { %v3886_v23 = vperm.slane %v3876_v24, 0  ;;  %4745 = vmatpush.msk.msrb.mxu1 %vm1920_vm7, %v3893_v44 }
 0xe22   :  { %v3888_v19 = vadd.f32 %v3886_v23, %v3882_v0  ;;  %v3890_v15 = vadd.f32 %v3886_v23, %v3884_v20  ;;  %3920 = vmatpush.msrb.mxu1 %v3891_v48  ;;  %v4786_v0 = vld [vmem:[%s8908_s27] ss:$0 sm:$0xff]  ;;  %s4228_s27 = sshll.u32 %s4823_s26, 4  ;;  %s4229_s27 = int_to_ptr.vmem [resolvable:$true] %s4228_s27 }
 0xe23   :  { %4746 = vmatmul.msk.f32.vlgmr.msrb.gmra.mxu1 %vm3330_vm15, %v3895_v49 }
 0xe24   :  { %v3894_v30 = vmax.f32 %v3890_v15, 0.0  ;;  %v3892_v56 = vmax.f32 %v3888_v19, 0.0 }
 0xe26   :  { %4747 = vmatpush.msk.msrb.mxu3 %vm1920_vm7, %v3894_v30 }
 0xe28   :  { %3940 = vmatpush.msrb.mxu3 %v3892_v56 }
 0xe29   :  { %4748 = vmatmul.msk.f32.vlgmr.msrb.gmra.mxu3 %vm3330_vm15, %v3895_v49 }
 0xe2a   :  { %4065 = vmatpush.msra.mxu3 %v4057_v37 }
 0xe2c   :  { %4066 = vmatpush.msra.mxu3 %v4056_v46 }
 0xe2e   :  { %4067 = vmatpush.msra.mxu3 %v4055_v12 }
 0xe30   :  { %4068 = vmatpush.msra.mxu3 %v4054_v5 }
 0xe32   :  { %4069 = vmatpush.msra.mxu3 %v4053_v4 }
 0xe34   :  { %4070 = vmatpush.msra.mxu3 %v4052_v55 }
 0xe36   :  { %4071 = vmatpush.msra.mxu3 %v4051_v16 }
 0xe38   :  { %4072 = vmatpush.msra.mxu3 %v4050_v21 }
 0xe3a   :  { %4073 = vmatpush.msra.mxu3 %v4049_v51 }
 0xe3c   :  { %4074 = vmatpush.msra.mxu3 %v4048_v9 }
 0xe3e   :  { %4075 = vmatpush.msra.mxu3 %v4047_v62 }
 0xe40   :  { %4076 = vmatpush.msra.mxu3 %v4046_v53 }
 0xe42   :  { %4192 = vmatpush.msrb.mxu3 %v4783_v35 }
 0xe44   :  { %4193 = vmatpush.msrb.mxu3 %v4782_v7 }
 0xe46   :  { %4194 = vmatpush.msrb.mxu3 %v4781_v27 }
 0xe48   :  { %4195 = vmatpush.msrb.mxu3 %v4780_v18 }
 0xe4a   :  { %4196 = vmatpush.msrb.mxu3 %v4779_v32 }
 0xe4c   :  { %4197 = vmatpush.msrb.mxu3 %v4778_v36 }
 0xe4e   :  { %4198 = vmatpush.msrb.mxu3 %v4777_v59 }
 0xe50   :  { %4199 = vmatpush.msrb.mxu3 %v4776_v17 }
 0xe52   :  { %4200 = vmatpush.msrb.mxu3 %v4775_v54 }
 0xe54   :  { %4201 = vmatpush.msrb.mxu3 %v4774_v14 }
 0xe56   :  { %4202 = vmatpush.msrb.mxu3 %v4773_v1 }
 0xe58   :  { %4203 = vmatpush.msrb.mxu3 %v4772_v38 }
 0xea0   :  { %v3922_v29 = vpop.f32.mrf.mxu1 }
 0xea1   :  { %3992 = vmatmul.f32.vlgmr.msra.gmra.mxu2 %v3922_v29 }
 0xeac   :  { %v3942_v6 = vpop.f32.mrf.mxu3 }
 0xead   :  { %4749 = vmatmul.msk.f32.vlgmr.msra.gmra.mxu0 %vm221_vm1, %v3942_v6 }
 0xf24   :  { %v3993_v39 = vpop.f32.mrf.mxu2 }
 0xf2a   :  { %v4013_v13 = vpop.f32.mrf.mxu0 }
 0xf2b   :  { %v4014_v52 = vadd.f32 %v4013_v13, %v3993_v39 }
 0xf2d   :  { %v4016_v3 = vmul.f32 0.04, %v4014_v52 }
 0xf2f   :  { %4750 = vmatpush.msk.msra.mxu1 %vm1920_vm7, %v4016_v3  ;;  %4770 = vmatpush.msk.msrb.mxu0 %vm1920_vm7, %v4016_v3 }
 0xf30   :  { %4751 = vmatmul.msk.f32.vlgmr.msra.gmra.mxu1 %vm4019_vm6, %v4018_v34  ;;  %4771 = vmatmul.msk.f32.vlgmr.msrb.gmra.mxu0 %vm4019_vm6, %v4769_v43 }
 0xf31   :  { %4754 = vmatpush.msk.msrb.mxu1 %vm1920_vm7, %v4016_v3  ;;  %vm4209_vm7 = vcmask 74752  }
 0xf33   :  { %4130 = vmatpush.msra.mxu1 %v4767_v2 }
 0xf35   :  { %4131 = vmatpush.msra.mxu1 %v4766_v58 }
 0xf37   :  { %4132 = vmatpush.msra.mxu1 %v4765_v25 }
 0xf38   :  { %4755 = vmatmul.msk.f32.vlgmr.msrb.gmra.mxu1 %vm4019_vm6, %v4753_v60 }
 0xf39   :  { %4133 = vmatpush.msra.mxu1 %v4764_v10 }
 0xf3b   :  { %4134 = vmatpush.msra.mxu1 %v4763_v61 }
 0xf3d   :  { %4135 = vmatpush.msra.mxu1 %v4762_v41 }
 0xf3f   :  { %4136 = vmatpush.msra.mxu1 %v4761_v31 }
 0xf41   :  { %4137 = vmatpush.msra.mxu1 %v4760_v8 }
 0xf43   :  { %4138 = vmatpush.msra.mxu1 %v4759_v57 }
 0xf45   :  { %4139 = vmatpush.msra.mxu1 %v4758_v33 }
 0xf47   :  { %4140 = vmatpush.msra.mxu1 %v4757_v47 }
 0xf49   :  { %4141 = vmatpush.msra.mxu1 %v4756_v28 }
 0xfad   :  { %v4043_v44 = vpop.f32.mrf.mxu1  ;;  %v4169_v24 = vpop.f32.mrf.mxu0 }
 0xfae   :  { %4752 = vmatmul.msk.f32.vlgmr.msra.gmra.mxu3 %vm221_vm1, %v4043_v44 }
 0xfb5   :  { %v4107_v11 = vpop.f32.mrf.mxu1 }
 0xfb6   :  { %4784 = vmatmul.msk.f32.vlgmr.msrb.gmra.mxu3 %vm221_vm1, %v4169_v24  ;;  %4768 = vmatmul.msk.f32.vlgmr.msra.gmra.mxu1 %vm221_vm1, %v4107_v11 }
0x1031   :  { %v4078_v20 = vpop.f32.mrf.mxu3 }
0x1032   :  { %v4084_v48 = vadd.f32 %v4786_v0, %v4078_v20 }
0x1033   :  { %v4143_v23 = vpop.f32.mrf.mxu1 }
0x1034   :  { %v4146_v49 = vadd.f32 %v4143_v23, %v4084_v48 }
0x1039   :  { %v4205_v50 = vpop.f32.mrf.mxu3 }
0x103a   :  { %v4208_v19 = vadd.f32 %v4205_v50, %v4146_v49 }
0x103c   :  { %v4210_v15 = vsel %vm4209_vm7, %v4208_v19, -inf }
0x103d   :  { %4211 = vmax.xlane.f32.xlu0 %v4210_v15 }
0x10b0   :  { %v4212_v26 = vpop.xlane.xlu0 %4211 }
0x10b1   :  { %v4213_v30 = vsub.f32 %v4208_v19, %v4212_v26 }
0x10b3   :  { %v4214_v56 = vmul.f32 1.442695, %v4213_v30 }
0x10b5   :  { %4793 = vpow2.f32 %v4214_v56 }
0x10bb   :  { %v4794_v42 = vpop.eup %4793 }
0x10bc   :  { %v4216_v63 = vsel %vm4209_vm7, %v4794_v42, 0.0 }
0x10bd   :  { %4217 = vadd.xlane.f32.xlu0 %v4216_v63 }
0x1130   :  { %v4218_v22 = vpop.xlane.xlu0 %4217 }
0x1131   :  { %4795 = vlog2.f32 %v4218_v22 }
0x1137   :  { %v4796_v45 = vpop.eup %4795 }
0x1138   :  { %v4220_v40 = vmul.f32 0.6931472, %v4796_v45 }
0x113a   :  { %v4221_v29 = vsub.f32 %v4213_v30, %v4220_v40 }
0x113c   :  { %4222 = vst.msk [vmem:[#allocation2] sm:$0x3] %vm4209_vm7, %v4221_v29 }
0x113d   :  { %4233 = dma.vmem_to_hbm [thread:$0]  %s4229_s27, 32, %s4231_s14, [#allocation3]  }
0x113e   :  { %4821 = dma.done.wait [#allocation3], 32  }
0x113f   :  { %4822 = vsyncadd [#allocation3], 4294967264 }
0x1140   :  { %4238 = vsyncpa [#allocation3], 1 }

</bundles_post_ra>
